<compile_context>
chip_gen: v6e
topology: v6e:2x2x1
jax: 0.10.0
libtpu: 0.0.40
codegen_flags: <defaults>
</compile_context>

<pallas_src>
import numpy as np
import jax
import jax.numpy as jnp
from jax.experimental import pallas as pl
from jax.experimental.pallas import tpu as pltpu

# ---------------- small config mirroring EmbeddingHybrid.__init__ ----------------
WAVE_LENGTH  = 640
WINDOW_SIZE  = 80          # == n_fft
HOP_SIZE     = 16
NUM_FEATURES = 64

N_FFT        = WINDOW_SIZE
STFT_PADDING = HOP_SIZE // 2
T            = WAVE_LENGTH // HOP_SIZE                       # frames / targetLout
WAVE_PADDING = ((T - 1) * HOP_SIZE + WINDOW_SIZE - WAVE_LENGTH + 1) // 2
LOUT         = (WAVE_LENGTH + 2 * WAVE_PADDING - (WINDOW_SIZE - 1) - 1) // HOP_SIZE + 1
assert LOUT == T                                             # same assert as the module
HALF         = NUM_FEATURES // 2
K_IN         = NUM_FEATURES * T                              # flattened (c, t) input features


# ---------------- host-side structural constants ----------------
def hann_periodic(n):
    k = np.arange(n)
    return (0.5 * (1.0 - np.cos(2.0 * np.pi * k / n))).astype(np.float32)


def irfft_interleaved_basis(n_fft):
    """Maps convtrans1 output channels (interleaved re/im of freq bins 1..n_fft//2,
    DC bin is zero-padded by the module) to an ortho-normalized irfft frame."""
    half = n_fft // 2
    b = np.arange(1, half + 1)[:, None].astype(np.float64)   # freq bin
    s = np.arange(n_fft)[None, :].astype(np.float64)         # time sample
    ang = 2.0 * np.pi * b * s / n_fft
    w = np.where(b < half, 2.0, 1.0)                         # hermitian doubling, Nyquist once
    scale = 1.0 / np.sqrt(n_fft)                             # normalized=True -> 'ortho'
    basis = np.zeros((n_fft, n_fft), np.float64)
    basis[0::2, :] = w * np.cos(ang) * scale                 # even channels -> real part
    basis[1::2, :] = -w * np.sin(ang) * scale                # odd channels  -> imag part
    return basis


def build_affine_map(w1, b1, w2, b2):
    """Fold the entire DecodeHybrid forward (an affine map of z) into
       W: (NUM_FEATURES*T, WAVE_LENGTH), const: (WAVE_LENGTH,), all in float64.
       Input flattening order matches z.reshape(N, C*T): k = c*T + r."""
    win   = hann_periodic(N_FFT).astype(np.float64)
    basis = irfft_interleaved_basis(N_FFT)
    w1 = np.asarray(w1, np.float64); b1 = np.asarray(b1, np.float64)
    w2 = np.asarray(w2, np.float64); b2 = np.asarray(b2, np.float64)
    assert b2.size == 1, "convtrans2 is expected to have out_channels == 1"

    # conv1 (k=1) composed with irfft (ortho) and the hann analysis window
    W1f = w1 @ (basis * win[None, :])                         # (HALF, n_fft)
    c1  = (b1 @ basis) * win                                  # (n_fft,) constant frame (bias)

    # istft window-squared envelope over all T+2 frames (first/last frames are the zero
    # pad frames from F.pad; they contribute to the envelope but not to the numerator).
    Tf = T + 2
    L1 = (Tf - 1) * HOP_SIZE + N_FFT
    env = np.zeros(L1, np.float64)
    for t in range(Tf):
        env[t * HOP_SIZE: t * HOP_SIZE + N_FFT] += win * win
    off1 = N_FFT // 2 + STFT_PADDING                          # center trim + stft_padding
    env_kept = env[off1: off1 + WAVE_LENGTH]
    assert env_kept.min() > 1e-3, "istft envelope too close to zero in the kept region"
    inv_env = 1.0 / env_kept                                  # folded into W / const

    W = np.zeros((K_IN, WAVE_LENGTH), np.float64)
    const = np.full(WAVE_LENGTH, 0.5 * float(b2.reshape(-1)[0]), np.float64)
    rows1 = np.arange(HALF) * T                               # branch-1 channel rows (c <  HALF)
    rows2 = (HALF + np.arange(HALF)) * T                      # branch-2 channel rows (c >= HALF)
    for r in range(T):
        # ---- branch 1 (istft): real frame r is padded frame r+1, starts at (r+1)*hop ----
        s0 = off1 - (r + 1) * HOP_SIZE                        # frame sample for output o = 0
        o_lo, o_hi = max(0, -s0), min(WAVE_LENGTH, N_FFT - s0)
        if o_lo < o_hi:
            cols, samp = slice(o_lo, o_hi), slice(s0 + o_lo, s0 + o_hi)
            W[rows1 + r, cols] += 0.5 * W1f[:, samp] * inv_env[cols][None, :]
            const[cols] += 0.5 * c1[samp] * inv_env[cols]
        # ---- branch 2 (ConvTranspose1d k=window, stride=hop, padding=wave_padding) ----
        s0 = WAVE_PADDING - r * HOP_SIZE
        o_lo, o_hi = max(0, -s0), min(WAVE_LENGTH, WINDOW_SIZE - s0)
        if o_lo < o_hi:
            cols, samp = slice(o_lo, o_hi), slice(s0 + o_lo, s0 + o_hi)
            W[rows2 + r, cols] += 0.5 * w2[:, samp]
    return W.astype(np.float32), const.astype(np.float32)


# ---------------- the Pallas kernel ----------------
def _decode_kernel(z_ref, w_ref, c_ref, o_ref):
    # One lane-dense MXU matmul per batch block: (NB, 2560) @ (2560, 640) + const row.
    o_ref[...] = (
        jnp.dot(z_ref[...], w_ref[...], preferred_element_type=jnp.float32)
        + c_ref[...]
    ).astype(o_ref.dtype)


def decode_hybrid_pallas(z, w1, b1, w2, b2):
    """z: (N, num_features, T) float32 (same layout as the PyTorch module input)."""
    N = z.shape[0]
    assert z.shape[1] == NUM_FEATURES and z.shape[2] == T

    # Offline (float64) constant folding of the whole decoder affine map.
    W_np, const_np = build_affine_map(w1, b1, w2, b2)
    W = jnp.asarray(W_np)                                      # (2560, 640), 128-aligned dims
    const = jnp.asarray(const_np).reshape(1, WAVE_LENGTH)      # (1, 640)

    # Free, row-major flatten: k = c*T + r matches the W row ordering (no transpose needed).
    zf = jnp.asarray(z, jnp.float32).reshape(N, K_IN)

    # Batch-block size: whole batch if small, else 16 rows per grid step (pad to multiple)
    # so the batch axis stays a proper "parallel" grid dim (v7x megacore sharding).
    if N <= 16:
        NB, Np = N, N
    else:
        NB = 16
        Np = ((N + NB - 1) // NB) * NB
    if Np != N:
        zf = jnp.concatenate([zf, jnp.zeros((Np - N, K_IN), zf.dtype)], axis=0)

    out = pl.pallas_call(
        _decode_kernel,
        out_shape=jax.ShapeDtypeStruct((Np, WAVE_LENGTH), jnp.float32),
        grid_spec=pltpu.PrefetchScalarGridSpec(
            num_scalar_prefetch=0,
            grid=(Np // NB,),
            in_specs=[
                pl.BlockSpec((NB, K_IN), lambda n: (n, 0)),             # activations
                pl.BlockSpec((K_IN, WAVE_LENGTH), lambda n: (0, 0)),    # folded weight (resident)
                pl.BlockSpec((1, WAVE_LENGTH), lambda n: (0, 0)),       # folded constant row
            ],
            out_specs=pl.BlockSpec((NB, WAVE_LENGTH), lambda n: (n, 0)),
        ),
        compiler_params=pltpu.CompilerParams(
            dimension_semantics=("parallel",),
            vmem_limit_bytes=32 * 1024 * 1024,   # weight (6.25 MiB) + double buffers, with headroom
        ),
    )(zf, W, const)
    return out[:N]


# ---------------- exact float64 NumPy reference (mirrors DecodeHybrid.forward) ----------------
def reference_forward(z, w1, b1, w2, b2):
    z = np.asarray(z, np.float64); w1 = np.asarray(w1, np.float64)
    b1 = np.asarray(b1, np.float64); w2 = np.asarray(w2, np.float64)
    b2 = np.asarray(b2, np.float64)
    N, C, Tt = z.shape
    f = C // 2
    z1, z2 = z[:, :f, :], z[:, f:, :]
    # ConvTranspose1d(kernel_size=1)
    y1 = np.einsum('nit,io->not', z1, w1) + b1[None, :, None]
    y1 = y1.reshape(N, N_FFT // 2, 2, Tt).transpose(0, 1, 3, 2)
    spec = np.pad(y1, ((0, 0), (1, 0), (1, 1), (0, 0)))                 # F.pad (0,0,1,1,1,0)
    half_spec = spec[..., 0] + 1j * spec[..., 1]                        # (N, n/2+1, T+2)
    mirror = np.conj(half_spec[:, 1:-1, :])[:, ::-1, :]
    full_spec = np.concatenate([half_spec, mirror], axis=1)             # hermitian extension
    kk = np.arange(N_FFT)
    idft = np.exp(2j * np.pi * np.outer(kk, kk) / N_FFT)
    frames = np.real(np.einsum('nkt,ks->nts', full_spec, idft)) / np.sqrt(N_FFT)  # ortho irfft
    win = hann_periodic(N_FFT).astype(np.float64)
    frames = frames * win[None, None, :]
    Tf = Tt + 2
    L1 = (Tf - 1) * HOP_SIZE + N_FFT
    y = np.zeros((N, L1)); env = np.zeros(L1)
    for t in range(Tf):
        y[:, t * HOP_SIZE: t * HOP_SIZE + N_FFT] += frames[:, t, :]
        env[t * HOP_SIZE: t * HOP_SIZE + N_FFT] += win * win
    start, end = N_FFT // 2, L1 - N_FFT // 2
    x1 = y[:, start:end] / env[start:end][None, :]
    x1 = x1[:, STFT_PADDING: x1.shape[1] - STFT_PADDING]
    # ConvTranspose1d(kernel=window, stride=hop, padding=wave_padding)
    frames2 = np.einsum('nit,ik->ntk', z2, w2)
    L2 = (Tt - 1) * HOP_SIZE + WINDOW_SIZE
    y2 = np.zeros((N, L2))
    for r in range(Tt):
        y2[:, r * HOP_SIZE: r * HOP_SIZE + WINDOW_SIZE] += frames2[:, r, :]
    x2 = y2[:, WAVE_PADDING: WAVE_PADDING + WAVE_LENGTH] + b2[0]
    return (x1 + x2) / 2.0


if __name__ == "__main__":
    key = jax.random.PRNGKey(0)
    kz, k1, k2, k3, k4 = jax.random.split(key, 5)
    N = 2
    z = jax.random.normal(kz, (N, NUM_FEATURES, T), jnp.float32)

    # Deterministic parameter init (ConvTranspose1d shapes, kernel dim squeezed):
    bound1 = 1.0 / np.sqrt(HALF)
    w1 = jax.random.uniform(k1, (HALF, N_FFT), jnp.float32, -bound1, bound1)        # (in, out, 1)
    b1 = jax.random.uniform(k2, (N_FFT,), jnp.float32, -bound1, bound1)
    bound2 = 1.0 / np.sqrt(HALF * WINDOW_SIZE)
    w2 = jax.random.uniform(k3, (HALF, WINDOW_SIZE), jnp.float32, -bound2, bound2)   # (in, 1, K)
    b2 = jax.random.uniform(k4, (1,), jnp.float32, -bound2, bound2)

    out = jax.block_until_ready(decode_hybrid_pallas(z, w1, b1, w2, b2))
    assert out.shape == (N, WAVE_LENGTH) and out.dtype == jnp.float32

    ref = reference_forward(np.asarray(z), np.asarray(w1), np.asarray(b1),
                            np.asarray(w2), np.asarray(b2))
    err = float(np.max(np.abs(np.asarray(out, np.float64) - ref)))
    # Default (single-pass bf16) MXU precision vs an exact float64 reference: expected
    # max-abs error ~5e-3 for these O(1) outputs (K_eff ~ 320 nonzero terms); 2e-2 gives
    # comfortable margin while still catching any structural/indexing bug.
    if not np.isfinite(err) or err > 2e-2:
        raise AssertionError(f"Pallas kernel mismatch vs reference: max abs err = {err}")
    print("KERNEL_OK")
</pallas_src>

<mosaic_0001>
module attributes {stable_mosaic.version = 11 : i64} {
  func.func @_decode_kernel(%arg0: i32, %arg1: memref<2x2560xf32, #tpu.memory_space<vmem>>, %arg2: memref<2560x640xf32, #tpu.memory_space<vmem>>, %arg3: memref<1x640xf32, #tpu.memory_space<vmem>>, %arg4: memref<2x640xf32, #tpu.memory_space<vmem>>) attributes {dimension_semantics = [#tpu.dimension_semantics<parallel>], iteration_bounds = array<i64: 1>, scalar_prefetch = 0 : i64, scratch_operands = 0 : i64, tpu.core_type = #tpu.core_type<tc>, window_params = [{transform_indices = @transform_0, window_bounds = array<i64: 2, 2560>}, {pipeline_mode = #tpu.pipeline_mode<synchronous>, transform_indices = @transform_1, window_bounds = array<i64: 2560, 640>}, {pipeline_mode = #tpu.pipeline_mode<synchronous>, transform_indices = @transform_2, window_bounds = array<i64: 1, 640>}, {transform_indices = @transform_3, window_bounds = array<i64: 2, 640>}]} {
    %c0 = arith.constant 0 : index
    %c0_0 = arith.constant 0 : index
    %0 = vector.load %arg1[%c0, %c0_0] : memref<2x2560xf32, #tpu.memory_space<vmem>>, vector<2x2560xf32>
    %c0_1 = arith.constant 0 : index
    %c0_2 = arith.constant 0 : index
    %1 = vector.load %arg2[%c0_1, %c0_2] : memref<2560x640xf32, #tpu.memory_space<vmem>>, vector<2560x640xf32>
    %cst = arith.constant dense<0.000000e+00> : vector<2x640xf32>
    %2 = tpu.matmul %0, %1, %cst {dimension_numbers = #tpu.dot_dimension_numbers<[1], [0], [0], [1], [0, 0, 1, 1], [], []>} : vector<2x2560xf32>, vector<2560x640xf32>, vector<2x640xf32> -> vector<2x640xf32>
    %c0_3 = arith.constant 0 : index
    %c0_4 = arith.constant 0 : index
    %3 = vector.load %arg3[%c0_3, %c0_4] : memref<1x640xf32, #tpu.memory_space<vmem>>, vector<1x640xf32>
    %4 = vector.broadcast %3 : vector<1x640xf32> to vector<2x640xf32>
    %5 = arith.addf %2, %4 : vector<2x640xf32>
    %c0_5 = arith.constant 0 : index
    %c0_6 = arith.constant 0 : index
    %6 = vector.load %arg4[%c0_5, %c0_6] : memref<2x640xf32, #tpu.memory_space<vmem>>, vector<2x640xf32>
    tpu.vector_store %arg4[%c0_5, %c0_6], %5 {strides = array<i32>} : memref<2x640xf32, #tpu.memory_space<vmem>>, vector<2x640xf32>,
    return
  }
  func.func @transform_0(%arg0: i32) -> (i32, i32) {
    %c0_i32 = arith.constant 0 : i32
    %c0_i32_0 = arith.constant 0 : i32
    return %arg0, %c0_i32 : i32, i32
  }
  func.func @transform_1(%arg0: i32) -> (i32, i32) {
    %c0_i32 = arith.constant 0 : i32
    %c0_i32_0 = arith.constant 0 : i32
    %c0_i32_1 = arith.constant 0 : i32
    return %c0_i32, %c0_i32_0 : i32, i32
  }
  func.func @transform_2(%arg0: i32) -> (i32, i32) {
    %c0_i32 = arith.constant 0 : i32
    %c0_i32_0 = arith.constant 0 : i32
    %c0_i32_1 = arith.constant 0 : i32
    return %c0_i32, %c0_i32_0 : i32, i32
  }
  func.func @transform_3(%arg0: i32) -> (i32, i32) {
    %c0_i32 = arith.constant 0 : i32
    %c0_i32_0 = arith.constant 0 : i32
    return %arg0, %c0_i32 : i32, i32
  }
}

</mosaic_0001>

<bundles_post_ra>
// kernel: tpu_custom_call.1
= control target key start
LH: loop header
LB: loop body
LE: loop exit
PB: predicated region body
PF: predicated region fallthrough
CT: control target
= control target key end

     0   :  { %8 = vsyncpa [#allocation3], 0  ;;  %s4660_s0 = inlined_call_operand.hbm [shape: f32[2,2560], index: 0, kind: input, shape index: {}]   ;;  %s4661_s1 = inlined_call_operand.hbm [shape: f32[2560,640], index: 1, kind: input, shape index: {}]   ;;  %s4662_s2 = inlined_call_operand.hbm [shape: f32[1,640], index: 2, kind: input, shape index: {}]   ;;  %s4663_s3 = inlined_call_operand.hbm [shape: f32[2,640], index: 3, kind: output, shape index: {}]  }
   0x1   :  { %9 = vsyncpa [#allocation6], 0 }
   0x2   :  { %10 = vsyncpa [#allocation4], 0  ;;  %s4412_s12 = smov [#allocation5]  }
   0x3   :  { %s26_s13 = sshll.u32 %s4412_s12, 4  ;;  %s27_s13 = int_to_ptr.vmem [resolvable:$true] %s26_s13 }
   0x4   :  { %s4334_s14 = scalar_lea.vmem %s27_s13, 204800  ;;  %p4339_p1 = scmp.lt.s32.totalorder %s27_s13, %s27_s13 }
   0x5   :  { %p4335_p0 = scmp.ne.s32.totalorder %s27_s13, %s4334_s14  ;;  %p4340_p2 = scmp.lt.s32.totalorder %s4334_s14, %s4334_s14 }
   0x7   :  { %p4341_p3 = por %p4340_p2, %p4339_p1 }
   0x9   :  { %p4342_p4 = pnand %p4341_p3, %p4335_p0 }
   0xb   :  { %4345 = shalt.err (!%p4342_p4)
}
   0xc   :  { %s4413_s15 = smov 640   ;;  %s4414_s16 = smov 40  }
   0xd   :  { %32 = dma.hbm_to_vmem [thread:$0]  %s4661_s1, 204800, %s27_s13, [#allocation6], %s4413_s15, %s4413_s15, %s4414_s16  }
   0xe   :  { %s4415_s19 = smov [#allocation2]   ;;  %s4416_s21 = smov [#allocation7]  }
   0xf   :  { %s17_s20 = sshll.u32 %s4415_s19, 4  ;;  %s39_s22 = sshll.u32 %s4416_s21, 4  ;;  %s18_s20 = int_to_ptr.vmem [resolvable:$true] %s17_s20  ;;  %s40_s22 = int_to_ptr.vmem [resolvable:$true] %s39_s22 }
  0x10   :  { %s4354_s23 = scalar_lea.vmem %s18_s20, 640  ;;  %p4359_p6 = scmp.lt.s32.totalorder %s18_s20, %s18_s20 }
  0x11   :  { %p4355_p5 = scmp.ne.s32.totalorder %s18_s20, %s4354_s23  ;;  %p4360_p7 = scmp.lt.s32.totalorder %s4354_s23, %s4354_s23 }
  0x13   :  { %p4361_p8 = por %p4360_p7, %p4359_p6 }
  0x15   :  { %p4362_p9 = pnand %p4361_p8, %p4355_p5 }
  0x17   :  { %4365 = shalt.err (!%p4362_p9)
}
  0x18   :  { %20 = dma.hbm_to_vmem [thread:$0]  %s4660_s0, 640, %s18_s20, [#allocation3]  }
  0x19   :  { %s4374_s26 = scalar_lea.vmem %s40_s22, 80  ;;  %s4378_s1 = scalar_lea.vmem %s40_s22, 96 }
  0x1a   :  { %p4375_p10 = scmp.ne.s32.totalorder %s40_s22, %s4374_s26  ;;  %p4379_p11 = scmp.lt.s32.totalorder %s40_s22, %s40_s22 }
  0x1b   :  { %p4380_p12 = scmp.lt.s32.totalorder %s4378_s1, %s4374_s26 }
  0x1d   :  { %p4381_p13 = por %p4380_p12, %p4379_p11 }
  0x1f   :  { %p4382_p0 = pnand %p4381_p13, %p4375_p10 }
  0x21   :  { %4385 = shalt.err (!%p4382_p0)
}
  0x22   :  { %42 = dma.hbm_to_vmem [thread:$0]  %s4662_s2, 80, %s40_s22, [#allocation6]  }
  0x23   :  { %4406 = dma.done.wait [#allocation3], 640  }
  0x24   :  { %4407 = vsyncadd [#allocation3], 4294966656 }
  0x25   :  { %4408 = dma.done.wait [#allocation6], 204880  }
  0x26   :  { %4409 = vsyncadd [#allocation6], 4294762416  ;;  %v133_v0 = vld [vmem:[#allocation5 + $0x260] sm:$0xff]  ;;  %v132_v2 = vld [vmem:[#allocation5 + $0x258] sm:$0xff]  ;;  %s4418_s0 = smov [#allocation8]  }
  0x27   :  { %v293_v1 = vld [vmem:[#allocation5 + $0x760] sm:$0xff]  ;;  %1794 = vmatprep.subr.mxu0 %v133_v0  ;;  %v292_v3 = vld [vmem:[#allocation5 + $0x758] sm:$0xff]  ;;  %v127_v6 = vld [vmem:[#allocation5 + $0x230] sm:$0xff]  ;;  %s3953_s2 = sshll.u32 %s4418_s0, 4  ;;  %s3954_s2 = int_to_ptr.vmem [resolvable:$true] %s3953_s2 }
  0x28   :  { %1865 = vmatprep.subr.mxu1 %v293_v1  ;;  %v128_v4 = vld [vmem:[#allocation5 + $0x238] sm:$0xff]  ;;  %1795 = vmatpush1.msra.mxu0 %v132_v2  ;;  %v287_v7 = vld [vmem:[#allocation5 + $0x730] sm:$0xff]  ;;  %v122_v10 = vld [vmem:[#allocation5 + $0x208] sm:$0xff]  ;;  %s4386_s29 = scalar_lea.vmem %s3954_s2, 160  ;;  %p4391_p2 = scmp.lt.s32.totalorder %s3954_s2, %s3954_s2 }
  0x29   :  { %v288_v5 = vld [vmem:[#allocation5 + $0x738] sm:$0xff]  ;;  %1866 = vmatpush1.msra.mxu1 %v292_v3  ;;  %v123_v8 = vld [vmem:[#allocation5 + $0x210] sm:$0xff]  ;;  %1796 = vmatprep.subr.mxu0 %v128_v4  ;;  %v282_v11 = vld [vmem:[#allocation5 + $0x708] sm:$0xff]  ;;  %p4387_p1 = scmp.ne.s32.totalorder %s3954_s2, %s4386_s29  ;;  %p4392_p3 = scmp.lt.s32.totalorder %s4386_s29, %s4386_s29 }
  0x2a   :  { %1867 = vmatprep.subr.mxu1 %v288_v5  ;;  %v283_v9 = vld [vmem:[#allocation5 + $0x710] sm:$0xff]  ;;  %1797 = vmatpush1.msra.mxu0 %v127_v6  ;;  %v118_v12 = vld [vmem:[#allocation5 + $0x1e8] sm:$0xff]  ;;  %v117_v14 = vld [vmem:[#allocation5 + $0x1e0] sm:$0xff] }
  0x2b   :  { %1868 = vmatpush1.msra.mxu1 %v287_v7  ;;  %v278_v13 = vld [vmem:[#allocation5 + $0x6e8] sm:$0xff]  ;;  %1798 = vmatprep.subr.mxu0 %v123_v8  ;;  %v277_v15 = vld [vmem:[#allocation5 + $0x6e0] sm:$0xff]  ;;  %v112_v18 = vld [vmem:[#allocation5 + $0x1b8] sm:$0xff]  ;;  %p4393_p4 = por %p4392_p3, %p4391_p2 }
  0x2c   :  { %1869 = vmatprep.subr.mxu1 %v283_v9  ;;  %1799 = vmatpush1.msra.mxu0 %v122_v10  ;;  %v113_v16 = vld [vmem:[#allocation5 + $0x1c0] sm:$0xff]  ;;  %v272_v19 = vld [vmem:[#allocation5 + $0x6b8] sm:$0xff]  ;;  %v107_v22 = vld [vmem:[#allocation5 + $0x190] sm:$0xff] }
  0x2d   :  { %1870 = vmatpush1.msra.mxu1 %v282_v11  ;;  %v273_v17 = vld [vmem:[#allocation5 + $0x6c0] sm:$0xff]  ;;  %1800 = vmatprep.subr.mxu0 %v118_v12  ;;  %v108_v20 = vld [vmem:[#allocation5 + $0x198] sm:$0xff]  ;;  %v267_v23 = vld [vmem:[#allocation5 + $0x690] sm:$0xff]  ;;  %p4394_p5 = pnand %p4393_p4, %p4387_p1 }
  0x2e   :  { %1871 = vmatprep.subr.mxu1 %v278_v13  ;;  %1801 = vmatpush1.msra.mxu0 %v117_v14  ;;  %v268_v21 = vld [vmem:[#allocation5 + $0x698] sm:$0xff]  ;;  %v103_v24 = vld [vmem:[#allocation5 + $0x170] sm:$0xff]  ;;  %v102_v26 = vld [vmem:[#allocation5 + $0x168] sm:$0xff] }
  0x2f   :  { %1872 = vmatpush1.msra.mxu1 %v277_v15  ;;  %1802 = vmatprep.subr.mxu0 %v113_v16  ;;  %v263_v25 = vld [vmem:[#allocation5 + $0x670] sm:$0xff]  ;;  %v262_v27 = vld [vmem:[#allocation5 + $0x668] sm:$0xff]  ;;  %v97_v30 = vld [vmem:[#allocation5 + $0x140] sm:$0xff] }
  0x30   :  { %1873 = vmatprep.subr.mxu1 %v273_v17  ;;  %1803 = vmatpush1.msra.mxu0 %v112_v18  ;;  %v98_v28 = vld [vmem:[#allocation5 + $0x148] sm:$0xff]  ;;  %v257_v31 = vld [vmem:[#allocation5 + $0x640] sm:$0xff]  ;;  %v92_v34 = vld [vmem:[#allocation5 + $0x118] sm:$0xff] }
  0x31   :  { %1874 = vmatpush1.msra.mxu1 %v272_v19  ;;  %1804 = vmatprep.subr.mxu0 %v108_v20  ;;  %v258_v29 = vld [vmem:[#allocation5 + $0x648] sm:$0xff]  ;;  %v93_v32 = vld [vmem:[#allocation5 + $0x120] sm:$0xff]  ;;  %v252_v35 = vld [vmem:[#allocation5 + $0x618] sm:$0xff] }
  0x32   :  { %1875 = vmatprep.subr.mxu1 %v268_v21  ;;  %1805 = vmatpush1.msra.mxu0 %v107_v22  ;;  %v253_v33 = vld [vmem:[#allocation5 + $0x620] sm:$0xff]  ;;  %v88_v36 = vld [vmem:[#allocation5 + $0xf8] sm:$0xff]  ;;  %v87_v38 = vld [vmem:[#allocation5 + $0xf0] sm:$0xff] }
  0x33   :  { %1876 = vmatpush1.msra.mxu1 %v267_v23  ;;  %1806 = vmatprep.subr.mxu0 %v103_v24  ;;  %v248_v37 = vld [vmem:[#allocation5 + $0x5f8] sm:$0xff]  ;;  %v247_v39 = vld [vmem:[#allocation5 + $0x5f0] sm:$0xff]  ;;  %v82_v42 = vld [vmem:[#allocation5 + $0xc8] sm:$0xff] }
  0x34   :  { %1877 = vmatprep.subr.mxu1 %v263_v25  ;;  %1807 = vmatpush1.msra.mxu0 %v102_v26  ;;  %v83_v40 = vld [vmem:[#allocation5 + $0xd0] sm:$0xff]  ;;  %v242_v43 = vld [vmem:[#allocation5 + $0x5c8] sm:$0xff]  ;;  %v77_v46 = vld [vmem:[#allocation5 + $0xa0] sm:$0xff] }
  0x35   :  { %1878 = vmatpush1.msra.mxu1 %v262_v27  ;;  %1808 = vmatprep.subr.mxu0 %v98_v28  ;;  %v243_v41 = vld [vmem:[#allocation5 + $0x5d0] sm:$0xff]  ;;  %v78_v44 = vld [vmem:[#allocation5 + $0xa8] sm:$0xff]  ;;  %v237_v47 = vld [vmem:[#allocation5 + $0x5a0] sm:$0xff] }
  0x36   :  { %1879 = vmatprep.subr.mxu1 %v258_v29  ;;  %1809 = vmatpush1.msra.mxu0 %v97_v30  ;;  %v238_v45 = vld [vmem:[#allocation5 + $0x5a8] sm:$0xff]  ;;  %v73_v48 = vld [vmem:[#allocation5 + $0x80] sm:$0xff]  ;;  %v72_v50 = vld [vmem:[#allocation5 + $0x78] sm:$0xff]  ;;  %v1659_v30 = vlaneseq }
  0x37   :  { %1880 = vmatpush1.msra.mxu1 %v257_v31  ;;  %1810 = vmatprep.subr.mxu0 %v93_v32  ;;  %v233_v49 = vld [vmem:[#allocation5 + $0x580] sm:$0xff]  ;;  %v232_v51 = vld [vmem:[#allocation5 + $0x578] sm:$0xff]  ;;  %v67_v54 = vld [vmem:[#allocation5 + $0x50] sm:$0xff]  ;;  %v4417_v31 = vmov 1983009808  }
  0x38   :  { %1881 = vmatprep.subr.mxu1 %v253_v33  ;;  %1811 = vmatpush1.msra.mxu0 %v92_v34  ;;  %v68_v52 = vld [vmem:[#allocation5 + $0x58] sm:$0xff]  ;;  %v227_v55 = vld [vmem:[#allocation5 + $0x550] sm:$0xff]  ;;  %v62_v58 = vld [vmem:[#allocation5 + $0x28] sm:$0xff]  ;;  %v1691_v32 = vunpack.c.l.s4 %v4417_v31 }
  0x39   :  { %1882 = vmatpush1.msra.mxu1 %v252_v35  ;;  %1812 = vmatprep.subr.mxu0 %v88_v36  ;;  %v228_v53 = vld [vmem:[#allocation5 + $0x558] sm:$0xff]  ;;  %v63_v56 = vld [vmem:[#allocation5 + $0x30] sm:$0xff]  ;;  %v222_v59 = vld [vmem:[#allocation5 + $0x528] sm:$0xff] }
  0x3a   :  { %1883 = vmatprep.subr.mxu1 %v248_v37  ;;  %1813 = vmatpush1.msra.mxu0 %v87_v38  ;;  %v223_v57 = vld [vmem:[#allocation5 + $0x530] sm:$0xff]  ;;  %v58_v60 = vld [vmem:[#allocation5 + $0x8] sm:$0xff]  ;;  %v57_v62 = vld [vmem:[#allocation5] sm:$0xff] }
  0x3b   :  { %1884 = vmatpush1.msra.mxu1 %v247_v39  ;;  %1814 = vmatprep.subr.mxu0 %v83_v40  ;;  %v218_v61 = vld [vmem:[#allocation5 + $0x508] sm:$0xff]  ;;  %v217_v63 = vld [vmem:[#allocation5 + $0x500] sm:$0xff]  ;;  %v212_v2 = vld [vmem:[#allocation5 + $0x4d8] sm:$0xff] }
  0x3c   :  { %1885 = vmatprep.subr.mxu1 %v243_v41  ;;  %1815 = vmatpush1.msra.mxu0 %v82_v42  ;;  %v213_v0 = vld [vmem:[#allocation5 + $0x4e0] sm:$0xff]  ;;  %v372_v3 = vld [vmem:[#allocation5 + $0x9d8] sm:$0xff]  ;;  %v207_v6 = vld [vmem:[#allocation5 + $0x4b0] sm:$0xff]  ;;  %v4448_v41 = vshrl.u32 %v1659_v30, 7  ;;  %v1692_v42 = vunpack.c.0.s8 %v1691_v32 }
  0x3d   :  { %1886 = vmatpush1.msra.mxu1 %v242_v43  ;;  %1816 = vmatprep.subr.mxu0 %v78_v44  ;;  %v373_v1 = vld [vmem:[#allocation5 + $0x9e0] sm:$0xff]  ;;  %v208_v4 = vld [vmem:[#allocation5 + $0x4b8] sm:$0xff]  ;;  %v367_v7 = vld [vmem:[#allocation5 + $0x9b0] sm:$0xff] }
  0x3e   :  { %1887 = vmatprep.subr.mxu1 %v238_v45  ;;  %1817 = vmatpush1.msra.mxu0 %v77_v46  ;;  %v368_v5 = vld [vmem:[#allocation5 + $0x9b8] sm:$0xff]  ;;  %v203_v8 = vld [vmem:[#allocation5 + $0x490] sm:$0xff]  ;;  %v202_v10 = vld [vmem:[#allocation5 + $0x488] sm:$0xff] }
  0x3f   :  { %1888 = vmatpush1.msra.mxu1 %v237_v47  ;;  %1818 = vmatprep.subr.mxu0 %v73_v48  ;;  %v363_v9 = vld [vmem:[#allocation5 + $0x990] sm:$0xff]  ;;  %v362_v11 = vld [vmem:[#allocation5 + $0x988] sm:$0xff]  ;;  %v197_v14 = vld [vmem:[#allocation5 + $0x460] sm:$0xff] }
  0x40   :  { %1889 = vmatprep.subr.mxu1 %v233_v49  ;;  %1819 = vmatpush1.msra.mxu0 %v72_v50  ;;  %v198_v12 = vld [vmem:[#allocation5 + $0x468] sm:$0xff]  ;;  %v357_v15 = vld [vmem:[#allocation5 + $0x960] sm:$0xff]  ;;  %v192_v18 = vld [vmem:[#allocation5 + $0x438] sm:$0xff] }
  0x41   :  { %1890 = vmatpush1.msra.mxu1 %v232_v51  ;;  %1820 = vmatprep.subr.mxu0 %v68_v52  ;;  %v358_v13 = vld [vmem:[#allocation5 + $0x968] sm:$0xff]  ;;  %v193_v16 = vld [vmem:[#allocation5 + $0x440] sm:$0xff]  ;;  %v352_v19 = vld [vmem:[#allocation5 + $0x938] sm:$0xff]  ;;  %v4451_v52 = vsub.s32 %v1692_v42, %v4448_v41 }
  0x42   :  { %1891 = vmatprep.subr.mxu1 %v228_v53  ;;  %1821 = vmatpush1.msra.mxu0 %v67_v54  ;;  %v353_v17 = vld [vmem:[#allocation5 + $0x940] sm:$0xff]  ;;  %v188_v20 = vld [vmem:[#allocation5 + $0x418] sm:$0xff]  ;;  %v187_v22 = vld [vmem:[#allocation5 + $0x410] sm:$0xff] }
  0x43   :  { %1892 = vmatpush1.msra.mxu1 %v227_v55  ;;  %1822 = vmatprep.subr.mxu0 %v63_v56  ;;  %v348_v21 = vld [vmem:[#allocation5 + $0x918] sm:$0xff]  ;;  %v347_v23 = vld [vmem:[#allocation5 + $0x910] sm:$0xff]  ;;  %v182_v26 = vld [vmem:[#allocation5 + $0x3e8] sm:$0xff] }
  0x44   :  { %1893 = vmatprep.subr.mxu1 %v223_v57  ;;  %1823 = vmatpush1.msra.mxu0 %v62_v58  ;;  %v183_v24 = vld [vmem:[#allocation5 + $0x3f0] sm:$0xff]  ;;  %v342_v27 = vld [vmem:[#allocation5 + $0x8e8] sm:$0xff]  ;;  %v177_v33 = vld [vmem:[#allocation5 + $0x3c0] sm:$0xff] }
  0x45   :  { %1894 = vmatpush1.msra.mxu1 %v222_v59  ;;  %1824 = vmatprep.subr.mxu0 %v58_v60  ;;  %v343_v25 = vld [vmem:[#allocation5 + $0x8f0] sm:$0xff]  ;;  %v178_v28 = vld [vmem:[#allocation5 + $0x3c8] sm:$0xff]  ;;  %v337_v34 = vld [vmem:[#allocation5 + $0x8c0] sm:$0xff] }
  0x46   :  { %1895 = vmatprep.subr.mxu1 %v218_v61  ;;  %1825 = vmatpush1.msra.mxu0 %v57_v62  ;;  %v338_v29 = vld [vmem:[#allocation5 + $0x8c8] sm:$0xff]  ;;  %v173_v35 = vld [vmem:[#allocation5 + $0x3a0] sm:$0xff]  ;;  %v172_v37 = vld [vmem:[#allocation5 + $0x398] sm:$0xff] }
  0x47   :  { %1896 = vmatpush1.msra.mxu1 %v217_v63  ;;  %1826 = vmatprep.subr.mxu0 %v213_v0  ;;  %v333_v36 = vld [vmem:[#allocation5 + $0x8a0] sm:$0xff]  ;;  %v332_v38 = vld [vmem:[#allocation5 + $0x898] sm:$0xff]  ;;  %v167_v43 = vld [vmem:[#allocation5 + $0x370] sm:$0xff] }
  0x48   :  { %1897 = vmatprep.subr.mxu1 %v373_v1  ;;  %1827 = vmatpush2.msra.mxu0 %v212_v2  ;;  %v168_v39 = vld [vmem:[#allocation5 + $0x378] sm:$0xff]  ;;  %v327_v44 = vld [vmem:[#allocation5 + $0x870] sm:$0xff]  ;;  %v162_v47 = vld [vmem:[#allocation5 + $0x348] sm:$0xff] }
  0x49   :  { %1898 = vmatpush2.msra.mxu1 %v372_v3  ;;  %1828 = vmatprep.subr.mxu0 %v208_v4  ;;  %v328_v40 = vld [vmem:[#allocation5 + $0x878] sm:$0xff]  ;;  %v163_v45 = vld [vmem:[#allocation5 + $0x350] sm:$0xff]  ;;  %v322_v48 = vld [vmem:[#allocation5 + $0x848] sm:$0xff] }
  0x4a   :  { %1899 = vmatprep.subr.mxu1 %v368_v5  ;;  %1829 = vmatpush2.msra.mxu0 %v207_v6  ;;  %v323_v46 = vld [vmem:[#allocation5 + $0x850] sm:$0xff]  ;;  %v52_v49 = vld [vmem:[#allocation2] sm:$0xff]  ;;  %v158_v50 = vld [vmem:[#allocation5 + $0x328] sm:$0xff] }
  0x4b   :  { %1900 = vmatpush2.msra.mxu1 %v367_v7  ;;  %1830 = vmatprep.subr.mxu0 %v203_v8  ;;  %v318_v51 = vld [vmem:[#allocation5 + $0x828] sm:$0xff]  ;;  %v157_v53 = vld [vmem:[#allocation5 + $0x320] sm:$0xff]  ;;  %v1689_v57 = vcombine.high %v52_v49, %v52_v49  ;;  %v152_v58 = vld [vmem:[#allocation5 + $0x2f8] sm:$0xff]  ;;  %v4454_v62 = vrot.slane %v52_v49, %v4451_v52 }
  0x4c   :  { %1901 = vmatprep.subr.mxu1 %v363_v9  ;;  %1831 = vmatpush2.msra.mxu0 %v202_v10  ;;  %v317_v54 = vld [vmem:[#allocation5 + $0x820] sm:$0xff]  ;;  %v312_v59 = vld [vmem:[#allocation5 + $0x7f8] sm:$0xff]  ;;  %v147_v63 = vld [vmem:[#allocation5 + $0x2d0] sm:$0xff] }
  0x4d   :  { %1902 = vmatpush2.msra.mxu1 %v362_v11  ;;  %1832 = vmatprep.subr.mxu0 %v198_v12  ;;  %v153_v55 = vld [vmem:[#allocation5 + $0x300] sm:$0xff]  ;;  %v148_v60 = vld [vmem:[#allocation5 + $0x2d8] sm:$0xff]  ;;  %v307_v0 = vld [vmem:[#allocation5 + $0x7d0] sm:$0xff]  ;;  %v4457_v3 = vrot.slane %v1689_v57, %v4451_v52  ;;  %v4461_v8 = vcombine.high %v4454_v62, %v4454_v62 }
  0x4e   :  { %1903 = vmatprep.subr.mxu1 %v358_v13  ;;  %1833 = vmatpush2.msra.mxu0 %v197_v14  ;;  %v313_v56 = vld [vmem:[#allocation5 + $0x800] sm:$0xff]  ;;  %v308_v61 = vld [vmem:[#allocation5 + $0x7d8] sm:$0xff]  ;;  %v143_v1 = vld [vmem:[#allocation5 + $0x2b0] sm:$0xff] }
  0x4f   :  { %1904 = vmatpush2.msra.mxu1 %v357_v15  ;;  %1834 = vmatprep.subr.mxu0 %v193_v16  ;;  %v303_v2 = vld [vmem:[#allocation5 + $0x7b0] sm:$0xff]  ;;  %v142_v4 = vld [vmem:[#allocation5 + $0x2a8] sm:$0xff]  ;;  %v137_v9 = vld [vmem:[#allocation5 + $0x280] sm:$0xff]  ;;  %v4465_v11 = vcombine.high %v4457_v3, %v4457_v3 }
  0x50   :  { %1905 = vmatprep.subr.mxu1 %v353_v17  ;;  %1835 = vmatpush2.msra.mxu0 %v192_v18  ;;  %v302_v5 = vld [vmem:[#allocation5 + $0x7a8] sm:$0xff]  ;;  %v297_v10 = vld [vmem:[#allocation5 + $0x780] sm:$0xff]  ;;  %v452_v14 = vld [vmem:[#allocation5 + $0xc58] sm:$0xff] }
  0x51   :  { %1906 = vmatpush2.msra.mxu1 %v352_v19  ;;  %1836 = vmatprep.subr.mxu0 %v188_v20  ;;  %v138_v6 = vld [vmem:[#allocation5 + $0x288] sm:$0xff]  ;;  %v453_v12 = vld [vmem:[#allocation5 + $0xc60] sm:$0xff]  ;;  %v612_v15 = vld [vmem:[#allocation5 + $0x1158] sm:$0xff] }
  0x52   :  { %1907 = vmatprep.subr.mxu1 %v348_v21  ;;  %1837 = vmatpush2.msra.mxu0 %v187_v22  ;;  %v298_v7 = vld [vmem:[#allocation5 + $0x788] sm:$0xff]  ;;  %v613_v13 = vld [vmem:[#allocation5 + $0x1160] sm:$0xff]  ;;  %v448_v16 = vld [vmem:[#allocation5 + $0xc38] sm:$0xff] }
  0x53   :  { %1908 = vmatpush2.msra.mxu1 %v347_v23  ;;  %1838 = vmatprep.subr.mxu0 %v183_v24  ;;  %v608_v17 = vld [vmem:[#allocation5 + $0x1138] sm:$0xff]  ;;  %v447_v18 = vld [vmem:[#allocation5 + $0xc30] sm:$0xff]  ;;  %v442_v22 = vld [vmem:[#allocation5 + $0xc08] sm:$0xff] }
  0x54   :  { %1909 = vmatprep.subr.mxu1 %v343_v25  ;;  %1839 = vmatpush2.msra.mxu0 %v182_v26  ;;  %v607_v19 = vld [vmem:[#allocation5 + $0x1130] sm:$0xff]  ;;  %v602_v23 = vld [vmem:[#allocation5 + $0x1108] sm:$0xff]  ;;  %v437_v26 = vld [vmem:[#allocation5 + $0xbe0] sm:$0xff] }
  0x55   :  { %1910 = vmatpush2.msra.mxu1 %v342_v27  ;;  %1840 = vmatprep.subr.mxu0 %v178_v28  ;;  %v443_v20 = vld [vmem:[#allocation5 + $0xc10] sm:$0xff]  ;;  %v438_v24 = vld [vmem:[#allocation5 + $0xbe8] sm:$0xff]  ;;  %v597_v27 = vld [vmem:[#allocation5 + $0x10e0] sm:$0xff] }
  0x56   :  { %1911 = vmatprep.subr.mxu1 %v338_v29  ;;  %1841 = vmatpush2.msra.mxu0 %v177_v33  ;;  %v603_v21 = vld [vmem:[#allocation5 + $0x1110] sm:$0xff]  ;;  %v598_v25 = vld [vmem:[#allocation5 + $0x10e8] sm:$0xff]  ;;  %v433_v28 = vld [vmem:[#allocation5 + $0xbc0] sm:$0xff] }
  0x57   :  { %1912 = vmatpush2.msra.mxu1 %v337_v34  ;;  %1842 = vmatprep.subr.mxu0 %v173_v35  ;;  %v593_v29 = vld [vmem:[#allocation5 + $0x10c0] sm:$0xff]  ;;  %v432_v30 = vld [vmem:[#allocation5 + $0xbb8] sm:$0xff]  ;;  %v427_v34 = vld [vmem:[#allocation5 + $0xb90] sm:$0xff] }
  0x58   :  { %1913 = vmatprep.subr.mxu1 %v333_v36  ;;  %1843 = vmatpush2.msra.mxu0 %v172_v37  ;;  %v592_v31 = vld [vmem:[#allocation5 + $0x10b8] sm:$0xff]  ;;  %v587_v35 = vld [vmem:[#allocation5 + $0x1090] sm:$0xff]  ;;  %v578_v42 = vld [vmem:[#allocation5 + $0x1048] sm:$0xff] }
  0x59   :  { %1914 = vmatpush2.msra.mxu1 %v332_v38  ;;  %1844 = vmatprep.subr.mxu0 %v168_v39  ;;  %v428_v32 = vld [vmem:[#allocation5 + $0xb98] sm:$0xff]  ;;  %v423_v36 = vld [vmem:[#allocation5 + $0xb70] sm:$0xff]  ;;  %v422_v38 = vld [vmem:[#allocation5 + $0xb68] sm:$0xff] }
  0x5a   :  { %1915 = vmatprep.subr.mxu1 %v328_v40  ;;  %1845 = vmatpush2.msra.mxu0 %v167_v43  ;;  %v588_v33 = vld [vmem:[#allocation5 + $0x1098] sm:$0xff]  ;;  %v583_v37 = vld [vmem:[#allocation5 + $0x1070] sm:$0xff]  ;;  %v582_v39 = vld [vmem:[#allocation5 + $0x1068] sm:$0xff] }
  0x5b   :  { %1916 = vmatpush2.msra.mxu1 %v327_v44  ;;  %1846 = vmatprep.subr.mxu0 %v163_v45  ;;  %v418_v40 = vld [vmem:[#allocation5 + $0xb48] sm:$0xff]  ;;  %v417_v43 = vld [vmem:[#allocation5 + $0xb40] sm:$0xff]  ;;  %v408_v49 = vld [vmem:[#allocation5 + $0xaf8] sm:$0xff] }
  0x5c   :  { %1917 = vmatprep.subr.mxu1 %v323_v46  ;;  %1847 = vmatpush2.msra.mxu0 %v162_v47  ;;  %v577_v44 = vld [vmem:[#allocation5 + $0x1040] sm:$0xff]  ;;  %v412_v47 = vld [vmem:[#allocation5 + $0xb18] sm:$0xff]  ;;  %v562_v57 = vld [vmem:[#allocation5 + $0xfc8] sm:$0xff] }
  0x5d   :  { %1918 = vmatpush2.msra.mxu1 %v322_v48  ;;  %1848 = vmatprep.subr.mxu0 %v158_v50  ;;  %v413_v45 = vld [vmem:[#allocation5 + $0xb20] sm:$0xff]  ;;  %v572_v48 = vld [vmem:[#allocation5 + $0x1018] sm:$0xff] }
  0x5e   :  { %1919 = vmatprep.subr.mxu1 %v318_v51  ;;  %1849 = vmatpush2.msra.mxu0 %v157_v53  ;;  %v573_v46 = vld [vmem:[#allocation5 + $0x1020] sm:$0xff]  ;;  %v568_v50 = vld [vmem:[#allocation5 + $0xff8] sm:$0xff]  ;;  %v407_v51 = vld [vmem:[#allocation5 + $0xaf0] sm:$0xff] }
  0x5f   :  { %1920 = vmatpush2.msra.mxu1 %v317_v54  ;;  %1850 = vmatprep.subr.mxu0 %v153_v55  ;;  %v567_v53 = vld [vmem:[#allocation5 + $0xff0] sm:$0xff] }
  0x60   :  { %1921 = vmatprep.subr.mxu1 %v313_v56  ;;  %1851 = vmatpush2.msra.mxu0 %v152_v58  ;;  %v403_v54 = vld [vmem:[#allocation5 + $0xad0] sm:$0xff]  ;;  %v402_v56 = vld [vmem:[#allocation5 + $0xac8] sm:$0xff] }
  0x61   :  { %1922 = vmatpush2.msra.mxu1 %v312_v59  ;;  %1852 = vmatprep.subr.mxu0 %v148_v60  ;;  %v563_v55 = vld [vmem:[#allocation5 + $0xfd0] sm:$0xff]  ;;  %v398_v58 = vld [vmem:[#allocation5 + $0xaa8] sm:$0xff]  ;;  %v397_v60 = vld [vmem:[#allocation5 + $0xaa0] sm:$0xff] }
  0x62   :  { %1923 = vmatprep.subr.mxu1 %v308_v61  ;;  %1853 = vmatpush2.msra.mxu0 %v147_v63  ;;  %v558_v59 = vld [vmem:[#allocation5 + $0xfa8] sm:$0xff]  ;;  %v557_v61 = vld [vmem:[#allocation5 + $0xfa0] sm:$0xff] }
  0x63   :  { %1924 = vmatpush2.msra.mxu1 %v307_v0  ;;  %1854 = vmatprep.subr.mxu0 %v143_v1  ;;  %v393_v63 = vld [vmem:[#allocation5 + $0xa80] sm:$0xff]  ;;  %v392_v1 = vld [vmem:[#allocation5 + $0xa78] sm:$0xff] }
  0x64   :  { %1925 = vmatprep.subr.mxu1 %v303_v2  ;;  %1855 = vmatpush2.msra.mxu0 %v142_v4  ;;  %v553_v0 = vld [vmem:[#allocation5 + $0xf80] sm:$0xff]  ;;  %v552_v2 = vld [vmem:[#allocation5 + $0xf78] sm:$0xff] }
  0x65   :  { %1926 = vmatpush2.msra.mxu1 %v302_v5  ;;  %1856 = vmatprep.subr.mxu0 %v138_v6  ;;  %v388_v4 = vld [vmem:[#allocation5 + $0xa58] sm:$0xff]  ;;  %v387_v6 = vld [vmem:[#allocation5 + $0xa50] sm:$0xff] }
  0x66   :  { %1927 = vmatprep.subr.mxu1 %v298_v7  ;;  %1857 = vmatpush2.msra.mxu0 %v137_v9  ;;  %v548_v5 = vld [vmem:[#allocation5 + $0xf58] sm:$0xff]  ;;  %v547_v7 = vld [vmem:[#allocation5 + $0xf50] sm:$0xff] }
  0x67   :  { %1858 = vmatprep.mubr.f32.mxu0 %v4461_v8  ;;  %1928 = vmatpush2.msra.mxu1 %v297_v10  ;;  %v383_v9 = vld [vmem:[#allocation5 + $0xa30] sm:$0xff] }
  0x68   :  { %1859 = vmatmul.mubr.f32.vlgmr.msra.gmra.mxu0 %v4454_v62  ;;  %1929 = vmatprep.mubr.f32.mxu1 %v4465_v11  ;;  %v543_v10 = vld [vmem:[#allocation5 + $0xf30] sm:$0xff] }
  0x69   :  { %1936 = vmatprep.subr.mxu0 %v453_v12  ;;  %2007 = vmatprep.subr.mxu1 %v613_v13  ;;  %v382_v12 = vld [vmem:[#allocation5 + $0xa28] sm:$0xff] }
  0x6a   :  { %1930 = vmatmul.mubr.f32.vlgmr.msra.gmra.mxu1 %v4457_v3  ;;  %1937 = vmatpush1.msra.mxu0 %v452_v14  ;;  %v542_v13 = vld [vmem:[#allocation5 + $0xf28] sm:$0xff] }
  0x6b   :  { %2008 = vmatpush1.msra.mxu1 %v612_v15  ;;  %1938 = vmatprep.subr.mxu0 %v448_v16  ;;  %v378_v14 = vld [vmem:[#allocation5 + $0xa08] sm:$0xff]  ;;  %v377_v16 = vld [vmem:[#allocation5 + $0xa00] sm:$0xff] }
  0x6c   :  { %2009 = vmatprep.subr.mxu1 %v608_v17  ;;  %1939 = vmatpush1.msra.mxu0 %v447_v18  ;;  %v538_v15 = vld [vmem:[#allocation5 + $0xf08] sm:$0xff]  ;;  %v537_v17 = vld [vmem:[#allocation5 + $0xf00] sm:$0xff] }
  0x6d   :  { %2010 = vmatpush1.msra.mxu1 %v607_v19  ;;  %1940 = vmatprep.subr.mxu0 %v443_v20  ;;  %v533_v18 = vld [vmem:[#allocation5 + $0xee0] sm:$0xff]  ;;  %v532_v20 = vld [vmem:[#allocation5 + $0xed8] sm:$0xff] }
  0x6e   :  { %2011 = vmatprep.subr.mxu1 %v603_v21  ;;  %1941 = vmatpush1.msra.mxu0 %v442_v22  ;;  %v693_v19 = vld [vmem:[#allocation5 + $0x13e0] sm:$0xff]  ;;  %v692_v21 = vld [vmem:[#allocation5 + $0x13d8] sm:$0xff] }
  0x6f   :  { %2012 = vmatpush1.msra.mxu1 %v602_v23  ;;  %1942 = vmatprep.subr.mxu0 %v438_v24  ;;  %v528_v22 = vld [vmem:[#allocation5 + $0xeb8] sm:$0xff]  ;;  %v527_v24 = vld [vmem:[#allocation5 + $0xeb0] sm:$0xff] }
  0x70   :  { %2013 = vmatprep.subr.mxu1 %v598_v25  ;;  %1943 = vmatpush1.msra.mxu0 %v437_v26  ;;  %v688_v23 = vld [vmem:[#allocation5 + $0x13b8] sm:$0xff]  ;;  %v687_v25 = vld [vmem:[#allocation5 + $0x13b0] sm:$0xff] }
  0x71   :  { %2014 = vmatpush1.msra.mxu1 %v597_v27  ;;  %1944 = vmatprep.subr.mxu0 %v433_v28  ;;  %v523_v26 = vld [vmem:[#allocation5 + $0xe90] sm:$0xff]  ;;  %v522_v28 = vld [vmem:[#allocation5 + $0xe88] sm:$0xff] }
  0x72   :  { %2015 = vmatprep.subr.mxu1 %v593_v29  ;;  %1945 = vmatpush1.msra.mxu0 %v432_v30  ;;  %v683_v27 = vld [vmem:[#allocation5 + $0x1390] sm:$0xff]  ;;  %v682_v29 = vld [vmem:[#allocation5 + $0x1388] sm:$0xff] }
  0x73   :  { %2016 = vmatpush1.msra.mxu1 %v592_v31  ;;  %1946 = vmatprep.subr.mxu0 %v428_v32  ;;  %v518_v30 = vld [vmem:[#allocation5 + $0xe68] sm:$0xff]  ;;  %v517_v32 = vld [vmem:[#allocation5 + $0xe60] sm:$0xff] }
  0x74   :  { %2017 = vmatprep.subr.mxu1 %v588_v33  ;;  %1947 = vmatpush1.msra.mxu0 %v427_v34  ;;  %v678_v31 = vld [vmem:[#allocation5 + $0x1368] sm:$0xff]  ;;  %v677_v33 = vld [vmem:[#allocation5 + $0x1360] sm:$0xff] }
  0x75   :  { %2018 = vmatpush1.msra.mxu1 %v587_v35  ;;  %1948 = vmatprep.subr.mxu0 %v423_v36  ;;  %v513_v34 = vld [vmem:[#allocation5 + $0xe40] sm:$0xff]  ;;  %v512_v36 = vld [vmem:[#allocation5 + $0xe38] sm:$0xff] }
  0x76   :  { %2019 = vmatprep.subr.mxu1 %v583_v37  ;;  %1949 = vmatpush1.msra.mxu0 %v422_v38  ;;  %v673_v35 = vld [vmem:[#allocation5 + $0x1340] sm:$0xff]  ;;  %v672_v37 = vld [vmem:[#allocation5 + $0x1338] sm:$0xff] }
  0x77   :  { %2020 = vmatpush1.msra.mxu1 %v582_v39  ;;  %1950 = vmatprep.subr.mxu0 %v418_v40  ;;  %v508_v38 = vld [vmem:[#allocation5 + $0xe18] sm:$0xff]  ;;  %v507_v40 = vld [vmem:[#allocation5 + $0xe10] sm:$0xff] }
  0x78   :  { %2021 = vmatprep.subr.mxu1 %v578_v42  ;;  %1951 = vmatpush1.msra.mxu0 %v417_v43  ;;  %v668_v39 = vld [vmem:[#allocation5 + $0x1318] sm:$0xff]  ;;  %v667_v42 = vld [vmem:[#allocation5 + $0x1310] sm:$0xff] }
  0x79   :  { %2022 = vmatpush1.msra.mxu1 %v577_v44  ;;  %1952 = vmatprep.subr.mxu0 %v413_v45  ;;  %v503_v43 = vld [vmem:[#allocation5 + $0xdf0] sm:$0xff]  ;;  %v502_v45 = vld [vmem:[#allocation5 + $0xde8] sm:$0xff] }
  0x7a   :  { %2023 = vmatprep.subr.mxu1 %v573_v46  ;;  %1953 = vmatpush1.msra.mxu0 %v412_v47  ;;  %v663_v44 = vld [vmem:[#allocation5 + $0x12f0] sm:$0xff]  ;;  %v662_v46 = vld [vmem:[#allocation5 + $0x12e8] sm:$0xff] }
  0x7b   :  { %2024 = vmatpush1.msra.mxu1 %v572_v48  ;;  %1954 = vmatprep.subr.mxu0 %v408_v49  ;;  %v498_v47 = vld [vmem:[#allocation5 + $0xdc8] sm:$0xff]  ;;  %v497_v49 = vld [vmem:[#allocation5 + $0xdc0] sm:$0xff] }
  0x7c   :  { %2025 = vmatprep.subr.mxu1 %v568_v50  ;;  %1955 = vmatpush1.msra.mxu0 %v407_v51  ;;  %v658_v48 = vld [vmem:[#allocation5 + $0x12c8] sm:$0xff]  ;;  %v657_v50 = vld [vmem:[#allocation5 + $0x12c0] sm:$0xff] }
  0x7d   :  { %2026 = vmatpush1.msra.mxu1 %v567_v53  ;;  %1956 = vmatprep.subr.mxu0 %v403_v54  ;;  %v493_v51 = vld [vmem:[#allocation5 + $0xda0] sm:$0xff]  ;;  %v492_v54 = vld [vmem:[#allocation5 + $0xd98] sm:$0xff] }
  0x7e   :  { %2027 = vmatprep.subr.mxu1 %v563_v55  ;;  %1957 = vmatpush1.msra.mxu0 %v402_v56  ;;  %v653_v53 = vld [vmem:[#allocation5 + $0x12a0] sm:$0xff]  ;;  %v652_v55 = vld [vmem:[#allocation5 + $0x1298] sm:$0xff] }
  0x7f   :  { %2028 = vmatpush1.msra.mxu1 %v562_v57  ;;  %1958 = vmatprep.subr.mxu0 %v398_v58  ;;  %v488_v56 = vld [vmem:[#allocation5 + $0xd78] sm:$0xff]  ;;  %v487_v58 = vld [vmem:[#allocation5 + $0xd70] sm:$0xff] }
  0x80   :  { %2029 = vmatprep.subr.mxu1 %v558_v59  ;;  %1959 = vmatpush1.msra.mxu0 %v397_v60  ;;  %v648_v57 = vld [vmem:[#allocation5 + $0x1278] sm:$0xff]  ;;  %v647_v59 = vld [vmem:[#allocation5 + $0x1270] sm:$0xff] }
  0x81   :  { %2030 = vmatpush1.msra.mxu1 %v557_v61  ;;  %1960 = vmatprep.subr.mxu0 %v393_v63  ;;  %v483_v60 = vld [vmem:[#allocation5 + $0xd50] sm:$0xff]  ;;  %v482_v63 = vld [vmem:[#allocation5 + $0xd48] sm:$0xff] }
  0x82   :  { %2031 = vmatprep.subr.mxu1 %v553_v0  ;;  %1961 = vmatpush1.msra.mxu0 %v392_v1  ;;  %v643_v61 = vld [vmem:[#allocation5 + $0x1250] sm:$0xff]  ;;  %v642_v0 = vld [vmem:[#allocation5 + $0x1248] sm:$0xff]  ;;  %v53_v1 = vld [vmem:[#allocation2 + $0x8] sm:$0xff] }
  0x83   :  { %2032 = vmatpush1.msra.mxu1 %v552_v2  ;;  %1962 = vmatprep.subr.mxu0 %v388_v4  ;;  %v478_v2 = vld [vmem:[#allocation5 + $0xd28] sm:$0xff] }
  0x84   :  { %2033 = vmatprep.subr.mxu1 %v548_v5  ;;  %1963 = vmatpush1.msra.mxu0 %v387_v6  ;;  %v638_v4 = vld [vmem:[#allocation5 + $0x1228] sm:$0xff]  ;;  %v477_v5 = vld [vmem:[#allocation5 + $0xd20] sm:$0xff] }
  0x85   :  { %2034 = vmatpush1.msra.mxu1 %v547_v7  ;;  %1964 = vmatprep.subr.mxu0 %v383_v9  ;;  %v637_v6 = vld [vmem:[#allocation5 + $0x1220] sm:$0xff] }
  0x86   :  { %2035 = vmatprep.subr.mxu1 %v543_v10  ;;  %1965 = vmatpush1.msra.mxu0 %v382_v12  ;;  %v473_v7 = vld [vmem:[#allocation5 + $0xd00] sm:$0xff]  ;;  %v1706_v10 = vcombine.high %v53_v1, %v53_v1  ;;  %v472_v12 = vld [vmem:[#allocation5 + $0xcf8] sm:$0xff] }
  0x87   :  { %2036 = vmatpush1.msra.mxu1 %v542_v13  ;;  %1966 = vmatprep.subr.mxu0 %v378_v14  ;;  %v633_v9 = vld [vmem:[#allocation5 + $0x1200] sm:$0xff]  ;;  %v632_v13 = vld [vmem:[#allocation5 + $0x11f8] sm:$0xff] }
  0x88   :  { %2037 = vmatprep.subr.mxu1 %v538_v15  ;;  %1967 = vmatpush1.msra.mxu0 %v377_v16  ;;  %v468_v14 = vld [vmem:[#allocation5 + $0xcd8] sm:$0xff]  ;;  %v4472_v16 = vrot.slane %v53_v1, %v4451_v52  ;;  %v733_v1 = vld [vmem:[#allocation5 + $0x1520] sm:$0xff] }
  0x89   :  { %2038 = vmatpush1.msra.mxu1 %v537_v17  ;;  %1968 = vmatprep.subr.mxu0 %v533_v18  ;;  %v628_v15 = vld [vmem:[#allocation5 + $0x11d8] sm:$0xff]  ;;  %v467_v17 = vld [vmem:[#allocation5 + $0xcd0] sm:$0xff] }
  0x8a   :  { %2039 = vmatprep.subr.mxu1 %v693_v19  ;;  %1969 = vmatpush2.msra.mxu0 %v532_v20  ;;  %v627_v18 = vld [vmem:[#allocation5 + $0x11d0] sm:$0xff] }
  0x8b   :  { %2040 = vmatpush2.msra.mxu1 %v692_v21  ;;  %1970 = vmatprep.subr.mxu0 %v528_v22  ;;  %v463_v19 = vld [vmem:[#allocation5 + $0xcb0] sm:$0xff]  ;;  %v4475_v21 = vrot.slane %v1706_v10, %v4451_v52  ;;  %v462_v22 = vld [vmem:[#allocation5 + $0xca8] sm:$0xff] }
  0x8c   :  { %2041 = vmatprep.subr.mxu1 %v688_v23  ;;  %1971 = vmatpush2.msra.mxu0 %v527_v24  ;;  %v623_v20 = vld [vmem:[#allocation5 + $0x11b0] sm:$0xff]  ;;  %v622_v23 = vld [vmem:[#allocation5 + $0x11a8] sm:$0xff] }
  0x8d   :  { %2042 = vmatpush2.msra.mxu1 %v687_v25  ;;  %1972 = vmatprep.subr.mxu0 %v523_v26  ;;  %v458_v24 = vld [vmem:[#allocation5 + $0xc88] sm:$0xff]  ;;  %v4479_v26 = vcombine.high %v4472_v16, %v4472_v16  ;;  %v887_v10 = vld [vmem:[#allocation5 + $0x19f0] sm:$0xff] }
  0x8e   :  { %2043 = vmatprep.subr.mxu1 %v683_v27  ;;  %1973 = vmatpush2.msra.mxu0 %v522_v28  ;;  %v618_v25 = vld [vmem:[#allocation5 + $0x1188] sm:$0xff]  ;;  %v457_v27 = vld [vmem:[#allocation5 + $0xc80] sm:$0xff] }
  0x8f   :  { %2044 = vmatpush2.msra.mxu1 %v682_v29  ;;  %1974 = vmatprep.subr.mxu0 %v518_v30  ;;  %v617_v28 = vld [vmem:[#allocation5 + $0x1180] sm:$0xff]  ;;  %v4483_v29 = vcombine.high %v4475_v21, %v4475_v21 }
  0x90   :  { %2045 = vmatprep.subr.mxu1 %v678_v31  ;;  %1975 = vmatpush2.msra.mxu0 %v517_v32  ;;  %v773_v30 = vld [vmem:[#allocation5 + $0x1660] sm:$0xff]  ;;  %v772_v32 = vld [vmem:[#allocation5 + $0x1658] sm:$0xff] }
  0x91   :  { %2046 = vmatpush2.msra.mxu1 %v677_v33  ;;  %1976 = vmatprep.subr.mxu0 %v513_v34  ;;  %v933_v31 = vld [vmem:[#allocation5 + $0x1b60] sm:$0xff]  ;;  %v932_v33 = vld [vmem:[#allocation5 + $0x1b58] sm:$0xff] }
  0x92   :  { %2047 = vmatprep.subr.mxu1 %v673_v35  ;;  %1977 = vmatpush2.msra.mxu0 %v512_v36  ;;  %v768_v34 = vld [vmem:[#allocation5 + $0x1638] sm:$0xff]  ;;  %v767_v36 = vld [vmem:[#allocation5 + $0x1630] sm:$0xff] }
  0x93   :  { %2048 = vmatpush2.msra.mxu1 %v672_v37  ;;  %1978 = vmatprep.subr.mxu0 %v508_v38  ;;  %v928_v35 = vld [vmem:[#allocation5 + $0x1b38] sm:$0xff]  ;;  %v927_v37 = vld [vmem:[#allocation5 + $0x1b30] sm:$0xff] }
  0x94   :  { %2049 = vmatprep.subr.mxu1 %v668_v39  ;;  %1979 = vmatpush2.msra.mxu0 %v507_v40  ;;  %v763_v38 = vld [vmem:[#allocation5 + $0x1610] sm:$0xff]  ;;  %v762_v40 = vld [vmem:[#allocation5 + $0x1608] sm:$0xff] }
  0x95   :  { %2050 = vmatpush2.msra.mxu1 %v667_v42  ;;  %1980 = vmatprep.subr.mxu0 %v503_v43  ;;  %v923_v39 = vld [vmem:[#allocation5 + $0x1b10] sm:$0xff]  ;;  %v922_v42 = vld [vmem:[#allocation5 + $0x1b08] sm:$0xff] }
  0x96   :  { %2051 = vmatprep.subr.mxu1 %v663_v44  ;;  %1981 = vmatpush2.msra.mxu0 %v502_v45  ;;  %v758_v43 = vld [vmem:[#allocation5 + $0x15e8] sm:$0xff]  ;;  %v757_v45 = vld [vmem:[#allocation5 + $0x15e0] sm:$0xff] }
  0x97   :  { %2052 = vmatpush2.msra.mxu1 %v662_v46  ;;  %1982 = vmatprep.subr.mxu0 %v498_v47  ;;  %v918_v44 = vld [vmem:[#allocation5 + $0x1ae8] sm:$0xff]  ;;  %v917_v46 = vld [vmem:[#allocation5 + $0x1ae0] sm:$0xff] }
  0x98   :  { %2053 = vmatprep.subr.mxu1 %v658_v48  ;;  %1983 = vmatpush2.msra.mxu0 %v497_v49  ;;  %v753_v47 = vld [vmem:[#allocation5 + $0x15c0] sm:$0xff]  ;;  %v752_v49 = vld [vmem:[#allocation5 + $0x15b8] sm:$0xff] }
  0x99   :  { %2054 = vmatpush2.msra.mxu1 %v657_v50  ;;  %1984 = vmatprep.subr.mxu0 %v493_v51  ;;  %v913_v48 = vld [vmem:[#allocation5 + $0x1ac0] sm:$0xff]  ;;  %v912_v50 = vld [vmem:[#allocation5 + $0x1ab8] sm:$0xff] }
  0x9a   :  { %2055 = vmatprep.subr.mxu1 %v653_v53  ;;  %1985 = vmatpush2.msra.mxu0 %v492_v54  ;;  %v748_v51 = vld [vmem:[#allocation5 + $0x1598] sm:$0xff]  ;;  %v747_v54 = vld [vmem:[#allocation5 + $0x1590] sm:$0xff] }
  0x9b   :  { %2056 = vmatpush2.msra.mxu1 %v652_v55  ;;  %1986 = vmatprep.subr.mxu0 %v488_v56  ;;  %v908_v53 = vld [vmem:[#allocation5 + $0x1a98] sm:$0xff]  ;;  %v907_v55 = vld [vmem:[#allocation5 + $0x1a90] sm:$0xff] }
  0x9c   :  { %2057 = vmatprep.subr.mxu1 %v648_v57  ;;  %1987 = vmatpush2.msra.mxu0 %v487_v58  ;;  %v743_v56 = vld [vmem:[#allocation5 + $0x1570] sm:$0xff]  ;;  %v742_v58 = vld [vmem:[#allocation5 + $0x1568] sm:$0xff] }
  0x9d   :  { %2058 = vmatpush2.msra.mxu1 %v647_v59  ;;  %1988 = vmatprep.subr.mxu0 %v483_v60  ;;  %v903_v57 = vld [vmem:[#allocation5 + $0x1a70] sm:$0xff]  ;;  %v902_v59 = vld [vmem:[#allocation5 + $0x1a68] sm:$0xff] }
  0x9e   :  { %2059 = vmatprep.subr.mxu1 %v643_v61  ;;  %1989 = vmatpush2.msra.mxu0 %v482_v63  ;;  %v738_v60 = vld [vmem:[#allocation5 + $0x1548] sm:$0xff]  ;;  %v737_v63 = vld [vmem:[#allocation5 + $0x1540] sm:$0xff] }
  0x9f   :  { %2060 = vmatpush2.msra.mxu1 %v642_v0  ;;  %1990 = vmatprep.subr.mxu0 %v478_v2  ;;  %v898_v61 = vld [vmem:[#allocation5 + $0x1a48] sm:$0xff]  ;;  %v897_v0 = vld [vmem:[#allocation5 + $0x1a40] sm:$0xff] }
  0xa0   :  { %2061 = vmatprep.subr.mxu1 %v638_v4  ;;  %1991 = vmatpush2.msra.mxu0 %v477_v5  ;;  %v893_v2 = vld [vmem:[#allocation5 + $0x1a20] sm:$0xff]  ;;  %v732_v4 = vld [vmem:[#allocation5 + $0x1518] sm:$0xff] }
  0xa1   :  { %2062 = vmatpush2.msra.mxu1 %v637_v6  ;;  %1992 = vmatprep.subr.mxu0 %v473_v7  ;;  %v892_v5 = vld [vmem:[#allocation5 + $0x1a18] sm:$0xff] }
  0xa2   :  { %2063 = vmatprep.subr.mxu1 %v633_v9  ;;  %1993 = vmatpush2.msra.mxu0 %v472_v12  ;;  %v728_v6 = vld [vmem:[#allocation5 + $0x14f8] sm:$0xff]  ;;  %v727_v9 = vld [vmem:[#allocation5 + $0x14f0] sm:$0xff] }
  0xa3   :  { %2064 = vmatpush2.msra.mxu1 %v632_v13  ;;  %1994 = vmatprep.subr.mxu0 %v468_v14  ;;  %v888_v7 = vld [vmem:[#allocation5 + $0x19f8] sm:$0xff]  ;;  %v723_v12 = vld [vmem:[#allocation5 + $0x14d0] sm:$0xff]  ;;  %v722_v14 = vld [vmem:[#allocation5 + $0x14c8] sm:$0xff] }
  0xa4   :  { %2065 = vmatprep.subr.mxu1 %v628_v15  ;;  %1995 = vmatpush2.msra.mxu0 %v467_v17  ;;  %v883_v13 = vld [vmem:[#allocation5 + $0x19d0] sm:$0xff]  ;;  %v882_v15 = vld [vmem:[#allocation5 + $0x19c8] sm:$0xff] }
  0xa5   :  { %2066 = vmatpush2.msra.mxu1 %v627_v18  ;;  %1996 = vmatprep.subr.mxu0 %v463_v19  ;;  %v718_v17 = vld [vmem:[#allocation5 + $0x14a8] sm:$0xff]  ;;  %v717_v19 = vld [vmem:[#allocation5 + $0x14a0] sm:$0xff] }
  0xa6   :  { %2067 = vmatprep.subr.mxu1 %v623_v20  ;;  %1997 = vmatpush2.msra.mxu0 %v462_v22  ;;  %v878_v18 = vld [vmem:[#allocation5 + $0x19a8] sm:$0xff]  ;;  %v877_v20 = vld [vmem:[#allocation5 + $0x19a0] sm:$0xff] }
  0xa7   :  { %2068 = vmatpush2.msra.mxu1 %v622_v23  ;;  %1998 = vmatprep.subr.mxu0 %v458_v24  ;;  %v713_v22 = vld [vmem:[#allocation5 + $0x1480] sm:$0xff]  ;;  %v712_v24 = vld [vmem:[#allocation5 + $0x1478] sm:$0xff] }
  0xa8   :  { %2069 = vmatprep.subr.mxu1 %v618_v25  ;;  %1999 = vmatpush2.msra.mxu0 %v457_v27  ;;  %v873_v23 = vld [vmem:[#allocation5 + $0x1980] sm:$0xff]  ;;  %v872_v25 = vld [vmem:[#allocation5 + $0x1978] sm:$0xff] }
  0xa9   :  { %2000 = vmatprep.mubr.f32.mxu0 %v4479_v26  ;;  %2070 = vmatpush2.msra.mxu1 %v617_v28  ;;  %v708_v27 = vld [vmem:[#allocation5 + $0x1458] sm:$0xff] }
  0xaa   :  { %2001 = vmatmul.mubr.f32.vlgmr.msra.gmra.mxu0 %v4472_v16  ;;  %2071 = vmatprep.mubr.f32.mxu1 %v4483_v29  ;;  %v868_v28 = vld [vmem:[#allocation5 + $0x1958] sm:$0xff] }
  0xab   :  { %2078 = vmatprep.subr.mxu0 %v773_v30  ;;  %2149 = vmatprep.subr.mxu1 %v933_v31  ;;  %v707_v30 = vld [vmem:[#allocation5 + $0x1450] sm:$0xff] }
  0xac   :  { %2072 = vmatmul.mubr.f32.vlgmr.msra.gmra.mxu1 %v4475_v21  ;;  %2079 = vmatpush1.msra.mxu0 %v772_v32  ;;  %v867_v31 = vld [vmem:[#allocation5 + $0x1950] sm:$0xff] }
  0xad   :  { %2150 = vmatpush1.msra.mxu1 %v932_v33  ;;  %2080 = vmatprep.subr.mxu0 %v768_v34  ;;  %v703_v32 = vld [vmem:[#allocation5 + $0x1430] sm:$0xff]  ;;  %v702_v34 = vld [vmem:[#allocation5 + $0x1428] sm:$0xff] }
  0xae   :  { %2151 = vmatprep.subr.mxu1 %v928_v35  ;;  %2081 = vmatpush1.msra.mxu0 %v767_v36  ;;  %v863_v33 = vld [vmem:[#allocation5 + $0x1930] sm:$0xff]  ;;  %v862_v35 = vld [vmem:[#allocation5 + $0x1928] sm:$0xff] }
  0xaf   :  { %2152 = vmatpush1.msra.mxu1 %v927_v37  ;;  %2082 = vmatprep.subr.mxu0 %v763_v38  ;;  %v698_v36 = vld [vmem:[#allocation5 + $0x1408] sm:$0xff]  ;;  %v697_v38 = vld [vmem:[#allocation5 + $0x1400] sm:$0xff] }
  0xb0   :  { %2153 = vmatprep.subr.mxu1 %v923_v39  ;;  %2083 = vmatpush1.msra.mxu0 %v762_v40  ;;  %v858_v37 = vld [vmem:[#allocation5 + $0x1908] sm:$0xff]  ;;  %v857_v39 = vld [vmem:[#allocation5 + $0x1900] sm:$0xff] }
  0xb1   :  { %2154 = vmatpush1.msra.mxu1 %v922_v42  ;;  %2084 = vmatprep.subr.mxu0 %v758_v43  ;;  %v853_v40 = vld [vmem:[#allocation5 + $0x18e0] sm:$0xff]  ;;  %v852_v43 = vld [vmem:[#allocation5 + $0x18d8] sm:$0xff] }
  0xb2   :  { %2155 = vmatprep.subr.mxu1 %v918_v44  ;;  %2085 = vmatpush1.msra.mxu0 %v757_v45  ;;  %v1013_v42 = vld [vmem:[#allocation5 + $0x1de0] sm:$0xff]  ;;  %v1012_v44 = vld [vmem:[#allocation5 + $0x1dd8] sm:$0xff] }
  0xb3   :  { %2156 = vmatpush1.msra.mxu1 %v917_v46  ;;  %2086 = vmatprep.subr.mxu0 %v753_v47  ;;  %v848_v45 = vld [vmem:[#allocation5 + $0x18b8] sm:$0xff]  ;;  %v847_v47 = vld [vmem:[#allocation5 + $0x18b0] sm:$0xff] }
  0xb4   :  { %2157 = vmatprep.subr.mxu1 %v913_v48  ;;  %2087 = vmatpush1.msra.mxu0 %v752_v49  ;;  %v1008_v46 = vld [vmem:[#allocation5 + $0x1db8] sm:$0xff]  ;;  %v1007_v48 = vld [vmem:[#allocation5 + $0x1db0] sm:$0xff] }
  0xb5   :  { %2158 = vmatpush1.msra.mxu1 %v912_v50  ;;  %2088 = vmatprep.subr.mxu0 %v748_v51  ;;  %v843_v49 = vld [vmem:[#allocation5 + $0x1890] sm:$0xff]  ;;  %v842_v51 = vld [vmem:[#allocation5 + $0x1888] sm:$0xff] }
  0xb6   :  { %2159 = vmatprep.subr.mxu1 %v908_v53  ;;  %2089 = vmatpush1.msra.mxu0 %v747_v54  ;;  %v1003_v50 = vld [vmem:[#allocation5 + $0x1d90] sm:$0xff]  ;;  %v1002_v53 = vld [vmem:[#allocation5 + $0x1d88] sm:$0xff] }
  0xb7   :  { %2160 = vmatpush1.msra.mxu1 %v907_v55  ;;  %2090 = vmatprep.subr.mxu0 %v743_v56  ;;  %v838_v54 = vld [vmem:[#allocation5 + $0x1868] sm:$0xff]  ;;  %v837_v56 = vld [vmem:[#allocation5 + $0x1860] sm:$0xff] }
  0xb8   :  { %2161 = vmatprep.subr.mxu1 %v903_v57  ;;  %2091 = vmatpush1.msra.mxu0 %v742_v58  ;;  %v998_v55 = vld [vmem:[#allocation5 + $0x1d68] sm:$0xff]  ;;  %v997_v57 = vld [vmem:[#allocation5 + $0x1d60] sm:$0xff] }
  0xb9   :  { %2162 = vmatpush1.msra.mxu1 %v902_v59  ;;  %2092 = vmatprep.subr.mxu0 %v738_v60  ;;  %v833_v58 = vld [vmem:[#allocation5 + $0x1840] sm:$0xff]  ;;  %v832_v60 = vld [vmem:[#allocation5 + $0x1838] sm:$0xff] }
  0xba   :  { %2163 = vmatprep.subr.mxu1 %v898_v61  ;;  %2093 = vmatpush1.msra.mxu0 %v737_v63  ;;  %v993_v59 = vld [vmem:[#allocation5 + $0x1d40] sm:$0xff]  ;;  %v992_v61 = vld [vmem:[#allocation5 + $0x1d38] sm:$0xff] }
  0xbb   :  { %2164 = vmatpush1.msra.mxu1 %v897_v0  ;;  %2094 = vmatprep.subr.mxu0 %v733_v1  ;;  %v828_v63 = vld [vmem:[#allocation5 + $0x1818] sm:$0xff]  ;;  %v827_v1 = vld [vmem:[#allocation5 + $0x1810] sm:$0xff] }
  0xbc   :  { %2165 = vmatprep.subr.mxu1 %v893_v2  ;;  %2095 = vmatpush1.msra.mxu0 %v732_v4  ;;  %v988_v0 = vld [vmem:[#allocation5 + $0x1d18] sm:$0xff]  ;;  %v987_v2 = vld [vmem:[#allocation5 + $0x1d10] sm:$0xff] }
  0xbd   :  { %2166 = vmatpush1.msra.mxu1 %v892_v5  ;;  %2096 = vmatprep.subr.mxu0 %v728_v6  ;;  %v823_v4 = vld [vmem:[#allocation5 + $0x17f0] sm:$0xff]  ;;  %v822_v6 = vld [vmem:[#allocation5 + $0x17e8] sm:$0xff] }
  0xbe   :  { %2167 = vmatprep.subr.mxu1 %v888_v7  ;;  %2097 = vmatpush1.msra.mxu0 %v727_v9  ;;  %v983_v5 = vld [vmem:[#allocation5 + $0x1cf0] sm:$0xff]  ;;  %v982_v7 = vld [vmem:[#allocation5 + $0x1ce8] sm:$0xff] }
  0xbf   :  { %2168 = vmatpush1.msra.mxu1 %v887_v10  ;;  %2098 = vmatprep.subr.mxu0 %v723_v12  ;;  %v818_v9 = vld [vmem:[#allocation5 + $0x17c8] sm:$0xff]  ;;  %v817_v12 = vld [vmem:[#allocation5 + $0x17c0] sm:$0xff] }
  0xc0   :  { %2169 = vmatprep.subr.mxu1 %v883_v13  ;;  %2099 = vmatpush1.msra.mxu0 %v722_v14  ;;  %v978_v10 = vld [vmem:[#allocation5 + $0x1cc8] sm:$0xff]  ;;  %v977_v13 = vld [vmem:[#allocation5 + $0x1cc0] sm:$0xff] }
  0xc1   :  { %2170 = vmatpush1.msra.mxu1 %v882_v15  ;;  %2100 = vmatprep.subr.mxu0 %v718_v17  ;;  %v813_v14 = vld [vmem:[#allocation5 + $0x17a0] sm:$0xff]  ;;  %v812_v17 = vld [vmem:[#allocation5 + $0x1798] sm:$0xff] }
  0xc2   :  { %2171 = vmatprep.subr.mxu1 %v878_v18  ;;  %2101 = vmatpush1.msra.mxu0 %v717_v19  ;;  %v973_v15 = vld [vmem:[#allocation5 + $0x1ca0] sm:$0xff]  ;;  %v972_v18 = vld [vmem:[#allocation5 + $0x1c98] sm:$0xff] }
  0xc3   :  { %2172 = vmatpush1.msra.mxu1 %v877_v20  ;;  %2102 = vmatprep.subr.mxu0 %v713_v22  ;;  %v808_v19 = vld [vmem:[#allocation5 + $0x1778] sm:$0xff]  ;;  %v807_v22 = vld [vmem:[#allocation5 + $0x1770] sm:$0xff] }
  0xc4   :  { %2173 = vmatprep.subr.mxu1 %v873_v23  ;;  %2103 = vmatpush1.msra.mxu0 %v712_v24  ;;  %v968_v20 = vld [vmem:[#allocation5 + $0x1c78] sm:$0xff]  ;;  %v967_v23 = vld [vmem:[#allocation5 + $0x1c70] sm:$0xff] }
  0xc5   :  { %2174 = vmatpush1.msra.mxu1 %v872_v25  ;;  %2104 = vmatprep.subr.mxu0 %v708_v27  ;;  %v803_v24 = vld [vmem:[#allocation5 + $0x1750] sm:$0xff]  ;;  %v802_v27 = vld [vmem:[#allocation5 + $0x1748] sm:$0xff] }
  0xc6   :  { %2175 = vmatprep.subr.mxu1 %v868_v28  ;;  %2105 = vmatpush1.msra.mxu0 %v707_v30  ;;  %v963_v25 = vld [vmem:[#allocation5 + $0x1c50] sm:$0xff]  ;;  %v962_v28 = vld [vmem:[#allocation5 + $0x1c48] sm:$0xff] }
  0xc7   :  { %2176 = vmatpush1.msra.mxu1 %v867_v31  ;;  %2106 = vmatprep.subr.mxu0 %v703_v32  ;;  %v54_v30 = vld [vmem:[#allocation2 + $0x10] sm:$0xff] }
  0xc8   :  { %2177 = vmatprep.subr.mxu1 %v863_v33  ;;  %2107 = vmatpush1.msra.mxu0 %v702_v34  ;;  %v798_v31 = vld [vmem:[#allocation5 + $0x1728] sm:$0xff]  ;;  %v797_v33 = vld [vmem:[#allocation5 + $0x1720] sm:$0xff] }
  0xc9   :  { %2178 = vmatpush1.msra.mxu1 %v862_v35  ;;  %2108 = vmatprep.subr.mxu0 %v698_v36  ;;  %v958_v32 = vld [vmem:[#allocation5 + $0x1c28] sm:$0xff]  ;;  %v957_v34 = vld [vmem:[#allocation5 + $0x1c20] sm:$0xff] }
  0xca   :  { %2179 = vmatprep.subr.mxu1 %v858_v37  ;;  %2109 = vmatpush1.msra.mxu0 %v697_v38  ;;  %v793_v35 = vld [vmem:[#allocation5 + $0x1700] sm:$0xff]  ;;  %v1723_v37 = vcombine.high %v54_v30, %v54_v30  ;;  %v792_v38 = vld [vmem:[#allocation5 + $0x16f8] sm:$0xff] }
  0xcb   :  { %2180 = vmatpush1.msra.mxu1 %v857_v39  ;;  %2110 = vmatprep.subr.mxu0 %v853_v40  ;;  %v953_v36 = vld [vmem:[#allocation5 + $0x1c00] sm:$0xff]  ;;  %v952_v39 = vld [vmem:[#allocation5 + $0x1bf8] sm:$0xff] }
  0xcc   :  { %2181 = vmatprep.subr.mxu1 %v1013_v42  ;;  %2111 = vmatpush2.msra.mxu0 %v852_v43  ;;  %v788_v40 = vld [vmem:[#allocation5 + $0x16d8] sm:$0xff]  ;;  %v4490_v43 = vrot.slane %v54_v30, %v4451_v52  ;;  %v1058_v30 = vld [vmem:[#allocation5 + $0x1f48] sm:$0xff] }
  0xcd   :  { %2182 = vmatpush2.msra.mxu1 %v1012_v44  ;;  %2112 = vmatprep.subr.mxu0 %v848_v45  ;;  %v948_v42 = vld [vmem:[#allocation5 + $0x1bd8] sm:$0xff]  ;;  %v787_v44 = vld [vmem:[#allocation5 + $0x16d0] sm:$0xff] }
  0xce   :  { %2183 = vmatprep.subr.mxu1 %v1008_v46  ;;  %2113 = vmatpush2.msra.mxu0 %v847_v47  ;;  %v947_v45 = vld [vmem:[#allocation5 + $0x1bd0] sm:$0xff] }
  0xcf   :  { %2184 = vmatpush2.msra.mxu1 %v1007_v48  ;;  %2114 = vmatprep.subr.mxu0 %v843_v49  ;;  %v783_v46 = vld [vmem:[#allocation5 + $0x16b0] sm:$0xff]  ;;  %v4493_v48 = vrot.slane %v1723_v37, %v4451_v52  ;;  %v782_v49 = vld [vmem:[#allocation5 + $0x16a8] sm:$0xff]  ;;  %v1212_v37 = vld [vmem:[#allocation5 + $0x2418] sm:$0xff] }
  0xd0   :  { %2185 = vmatprep.subr.mxu1 %v1003_v50  ;;  %2115 = vmatpush2.msra.mxu0 %v842_v51  ;;  %v943_v47 = vld [vmem:[#allocation5 + $0x1bb0] sm:$0xff]  ;;  %v942_v50 = vld [vmem:[#allocation5 + $0x1ba8] sm:$0xff] }
  0xd1   :  { %2186 = vmatpush2.msra.mxu1 %v1002_v53  ;;  %2116 = vmatprep.subr.mxu0 %v838_v54  ;;  %v778_v51 = vld [vmem:[#allocation5 + $0x1688] sm:$0xff]  ;;  %v4497_v54 = vcombine.high %v4490_v43, %v4490_v43 }
  0xd2   :  { %2187 = vmatprep.subr.mxu1 %v998_v55  ;;  %2117 = vmatpush2.msra.mxu0 %v837_v56  ;;  %v938_v53 = vld [vmem:[#allocation5 + $0x1b88] sm:$0xff]  ;;  %v777_v55 = vld [vmem:[#allocation5 + $0x1680] sm:$0xff] }
  0xd3   :  { %2188 = vmatpush2.msra.mxu1 %v997_v57  ;;  %2118 = vmatprep.subr.mxu0 %v833_v58  ;;  %v937_v56 = vld [vmem:[#allocation5 + $0x1b80] sm:$0xff]  ;;  %v4501_v57 = vcombine.high %v4493_v48, %v4493_v48 }
  0xd4   :  { %2189 = vmatprep.subr.mxu1 %v993_v59  ;;  %2119 = vmatpush2.msra.mxu0 %v832_v60  ;;  %v1093_v58 = vld [vmem:[#allocation5 + $0x2060] sm:$0xff]  ;;  %v1092_v60 = vld [vmem:[#allocation5 + $0x2058] sm:$0xff] }
  0xd5   :  { %2190 = vmatpush2.msra.mxu1 %v992_v61  ;;  %2120 = vmatprep.subr.mxu0 %v828_v63  ;;  %v1253_v59 = vld [vmem:[#allocation5 + $0x2560] sm:$0xff]  ;;  %v1252_v61 = vld [vmem:[#allocation5 + $0x2558] sm:$0xff] }
  0xd6   :  { %2191 = vmatprep.subr.mxu1 %v988_v0  ;;  %2121 = vmatpush2.msra.mxu0 %v827_v1  ;;  %v1088_v63 = vld [vmem:[#allocation5 + $0x2038] sm:$0xff]  ;;  %v1087_v1 = vld [vmem:[#allocation5 + $0x2030] sm:$0xff] }
  0xd7   :  { %2192 = vmatpush2.msra.mxu1 %v987_v2  ;;  %2122 = vmatprep.subr.mxu0 %v823_v4  ;;  %v1248_v0 = vld [vmem:[#allocation5 + $0x2538] sm:$0xff]  ;;  %v1247_v2 = vld [vmem:[#allocation5 + $0x2530] sm:$0xff] }
  0xd8   :  { %2193 = vmatprep.subr.mxu1 %v983_v5  ;;  %2123 = vmatpush2.msra.mxu0 %v822_v6  ;;  %v1083_v4 = vld [vmem:[#allocation5 + $0x2010] sm:$0xff]  ;;  %v1082_v6 = vld [vmem:[#allocation5 + $0x2008] sm:$0xff] }
  0xd9   :  { %2194 = vmatpush2.msra.mxu1 %v982_v7  ;;  %2124 = vmatprep.subr.mxu0 %v818_v9  ;;  %v1243_v5 = vld [vmem:[#allocation5 + $0x2510] sm:$0xff]  ;;  %v1242_v7 = vld [vmem:[#allocation5 + $0x2508] sm:$0xff] }
  0xda   :  { %2195 = vmatprep.subr.mxu1 %v978_v10  ;;  %2125 = vmatpush2.msra.mxu0 %v817_v12  ;;  %v1078_v9 = vld [vmem:[#allocation5 + $0x1fe8] sm:$0xff]  ;;  %v1077_v12 = vld [vmem:[#allocation5 + $0x1fe0] sm:$0xff] }
  0xdb   :  { %2196 = vmatpush2.msra.mxu1 %v977_v13  ;;  %2126 = vmatprep.subr.mxu0 %v813_v14  ;;  %v1238_v10 = vld [vmem:[#allocation5 + $0x24e8] sm:$0xff]  ;;  %v1237_v13 = vld [vmem:[#allocation5 + $0x24e0] sm:$0xff] }
  0xdc   :  { %2197 = vmatprep.subr.mxu1 %v973_v15  ;;  %2127 = vmatpush2.msra.mxu0 %v812_v17  ;;  %v1073_v14 = vld [vmem:[#allocation5 + $0x1fc0] sm:$0xff]  ;;  %v1072_v17 = vld [vmem:[#allocation5 + $0x1fb8] sm:$0xff] }
  0xdd   :  { %2198 = vmatpush2.msra.mxu1 %v972_v18  ;;  %2128 = vmatprep.subr.mxu0 %v808_v19  ;;  %v1233_v15 = vld [vmem:[#allocation5 + $0x24c0] sm:$0xff]  ;;  %v1232_v18 = vld [vmem:[#allocation5 + $0x24b8] sm:$0xff] }
  0xde   :  { %2199 = vmatprep.subr.mxu1 %v968_v20  ;;  %2129 = vmatpush2.msra.mxu0 %v807_v22  ;;  %v1068_v19 = vld [vmem:[#allocation5 + $0x1f98] sm:$0xff]  ;;  %v1067_v22 = vld [vmem:[#allocation5 + $0x1f90] sm:$0xff] }
  0xdf   :  { %2200 = vmatpush2.msra.mxu1 %v967_v23  ;;  %2130 = vmatprep.subr.mxu0 %v803_v24  ;;  %v1228_v20 = vld [vmem:[#allocation5 + $0x2498] sm:$0xff]  ;;  %v1227_v23 = vld [vmem:[#allocation5 + $0x2490] sm:$0xff] }
  0xe0   :  { %2201 = vmatprep.subr.mxu1 %v963_v25  ;;  %2131 = vmatpush2.msra.mxu0 %v802_v27  ;;  %v1063_v24 = vld [vmem:[#allocation5 + $0x1f70] sm:$0xff]  ;;  %v1062_v27 = vld [vmem:[#allocation5 + $0x1f68] sm:$0xff] }
  0xe1   :  { %2202 = vmatpush2.msra.mxu1 %v962_v28  ;;  %2132 = vmatprep.subr.mxu0 %v798_v31  ;;  %v1223_v25 = vld [vmem:[#allocation5 + $0x2470] sm:$0xff]  ;;  %v1222_v28 = vld [vmem:[#allocation5 + $0x2468] sm:$0xff] }
  0xe2   :  { %2203 = vmatprep.subr.mxu1 %v958_v32  ;;  %2133 = vmatpush2.msra.mxu0 %v797_v33  ;;  %v1218_v31 = vld [vmem:[#allocation5 + $0x2448] sm:$0xff]  ;;  %v1057_v32 = vld [vmem:[#allocation5 + $0x1f40] sm:$0xff] }
  0xe3   :  { %2204 = vmatpush2.msra.mxu1 %v957_v34  ;;  %2134 = vmatprep.subr.mxu0 %v793_v35  ;;  %v1217_v33 = vld [vmem:[#allocation5 + $0x2440] sm:$0xff] }
  0xe4   :  { %2205 = vmatprep.subr.mxu1 %v953_v36  ;;  %2135 = vmatpush2.msra.mxu0 %v792_v38  ;;  %v1053_v34 = vld [vmem:[#allocation5 + $0x1f20] sm:$0xff]  ;;  %v1052_v36 = vld [vmem:[#allocation5 + $0x1f18] sm:$0xff] }
  0xe5   :  { %2206 = vmatpush2.msra.mxu1 %v952_v39  ;;  %2136 = vmatprep.subr.mxu0 %v788_v40  ;;  %v1213_v35 = vld [vmem:[#allocation5 + $0x2420] sm:$0xff]  ;;  %v1048_v38 = vld [vmem:[#allocation5 + $0x1ef8] sm:$0xff]  ;;  %v1047_v40 = vld [vmem:[#allocation5 + $0x1ef0] sm:$0xff] }
  0xe6   :  { %2207 = vmatprep.subr.mxu1 %v948_v42  ;;  %2137 = vmatpush2.msra.mxu0 %v787_v44  ;;  %v1208_v39 = vld [vmem:[#allocation5 + $0x23f8] sm:$0xff]  ;;  %v1207_v42 = vld [vmem:[#allocation5 + $0x23f0] sm:$0xff] }
  0xe7   :  { %2208 = vmatpush2.msra.mxu1 %v947_v45  ;;  %2138 = vmatprep.subr.mxu0 %v783_v46  ;;  %v1043_v44 = vld [vmem:[#allocation5 + $0x1ed0] sm:$0xff]  ;;  %v1042_v46 = vld [vmem:[#allocation5 + $0x1ec8] sm:$0xff] }
  0xe8   :  { %2209 = vmatprep.subr.mxu1 %v943_v47  ;;  %2139 = vmatpush2.msra.mxu0 %v782_v49  ;;  %v1203_v45 = vld [vmem:[#allocation5 + $0x23d0] sm:$0xff]  ;;  %v1202_v47 = vld [vmem:[#allocation5 + $0x23c8] sm:$0xff] }
  0xe9   :  { %2210 = vmatpush2.msra.mxu1 %v942_v50  ;;  %2140 = vmatprep.subr.mxu0 %v778_v51  ;;  %v1038_v49 = vld [vmem:[#allocation5 + $0x1ea8] sm:$0xff]  ;;  %v1037_v51 = vld [vmem:[#allocation5 + $0x1ea0] sm:$0xff] }
  0xea   :  { %2211 = vmatprep.subr.mxu1 %v938_v53  ;;  %2141 = vmatpush2.msra.mxu0 %v777_v55  ;;  %v1198_v50 = vld [vmem:[#allocation5 + $0x23a8] sm:$0xff]  ;;  %v1197_v53 = vld [vmem:[#allocation5 + $0x23a0] sm:$0xff] }
  0xeb   :  { %2142 = vmatprep.mubr.f32.mxu0 %v4497_v54  ;;  %2212 = vmatpush2.msra.mxu1 %v937_v56  ;;  %v1033_v55 = vld [vmem:[#allocation5 + $0x1e80] sm:$0xff] }
  0xec   :  { %2143 = vmatmul.mubr.f32.vlgmr.msra.gmra.mxu0 %v4490_v43  ;;  %2213 = vmatprep.mubr.f32.mxu1 %v4501_v57  ;;  %v1193_v56 = vld [vmem:[#allocation5 + $0x2380] sm:$0xff] }
  0xed   :  { %2220 = vmatprep.subr.mxu0 %v1093_v58  ;;  %2291 = vmatprep.subr.mxu1 %v1253_v59  ;;  %v1032_v58 = vld [vmem:[#allocation5 + $0x1e78] sm:$0xff] }
  0xee   :  { %2214 = vmatmul.mubr.f32.vlgmr.msra.gmra.mxu1 %v4493_v48  ;;  %2221 = vmatpush1.msra.mxu0 %v1092_v60  ;;  %v1192_v59 = vld [vmem:[#allocation5 + $0x2378] sm:$0xff] }
  0xef   :  { %2292 = vmatpush1.msra.mxu1 %v1252_v61  ;;  %2222 = vmatprep.subr.mxu0 %v1088_v63  ;;  %v1028_v60 = vld [vmem:[#allocation5 + $0x1e58] sm:$0xff]  ;;  %v1027_v63 = vld [vmem:[#allocation5 + $0x1e50] sm:$0xff] }
  0xf0   :  { %2293 = vmatprep.subr.mxu1 %v1248_v0  ;;  %2223 = vmatpush1.msra.mxu0 %v1087_v1  ;;  %v1188_v61 = vld [vmem:[#allocation5 + $0x2358] sm:$0xff]  ;;  %v1187_v0 = vld [vmem:[#allocation5 + $0x2350] sm:$0xff] }
  0xf1   :  { %2294 = vmatpush1.msra.mxu1 %v1247_v2  ;;  %2224 = vmatprep.subr.mxu0 %v1083_v4  ;;  %v1023_v1 = vld [vmem:[#allocation5 + $0x1e30] sm:$0xff]  ;;  %v1022_v4 = vld [vmem:[#allocation5 + $0x1e28] sm:$0xff] }
  0xf2   :  { %2295 = vmatprep.subr.mxu1 %v1243_v5  ;;  %2225 = vmatpush1.msra.mxu0 %v1082_v6  ;;  %v1183_v2 = vld [vmem:[#allocation5 + $0x2330] sm:$0xff]  ;;  %v1182_v5 = vld [vmem:[#allocation5 + $0x2328] sm:$0xff] }
  0xf3   :  { %2296 = vmatpush1.msra.mxu1 %v1242_v7  ;;  %2226 = vmatprep.subr.mxu0 %v1078_v9  ;;  %v1018_v6 = vld [vmem:[#allocation5 + $0x1e08] sm:$0xff]  ;;  %v1017_v9 = vld [vmem:[#allocation5 + $0x1e00] sm:$0xff] }
  0xf4   :  { %2297 = vmatprep.subr.mxu1 %v1238_v10  ;;  %2227 = vmatpush1.msra.mxu0 %v1077_v12  ;;  %v1178_v7 = vld [vmem:[#allocation5 + $0x2308] sm:$0xff]  ;;  %v1177_v10 = vld [vmem:[#allocation5 + $0x2300] sm:$0xff] }
  0xf5   :  { %2298 = vmatpush1.msra.mxu1 %v1237_v13  ;;  %2228 = vmatprep.subr.mxu0 %v1073_v14  ;;  %v1173_v12 = vld [vmem:[#allocation5 + $0x22e0] sm:$0xff]  ;;  %v1172_v14 = vld [vmem:[#allocation5 + $0x22d8] sm:$0xff] }
  0xf6   :  { %2299 = vmatprep.subr.mxu1 %v1233_v15  ;;  %2229 = vmatpush1.msra.mxu0 %v1072_v17  ;;  %v1333_v13 = vld [vmem:[#allocation5 + $0x27e0] sm:$0xff]  ;;  %v1332_v15 = vld [vmem:[#allocation5 + $0x27d8] sm:$0xff] }
  0xf7   :  { %2300 = vmatpush1.msra.mxu1 %v1232_v18  ;;  %2230 = vmatprep.subr.mxu0 %v1068_v19  ;;  %v1168_v17 = vld [vmem:[#allocation5 + $0x22b8] sm:$0xff]  ;;  %v1167_v19 = vld [vmem:[#allocation5 + $0x22b0] sm:$0xff] }
  0xf8   :  { %2301 = vmatprep.subr.mxu1 %v1228_v20  ;;  %2231 = vmatpush1.msra.mxu0 %v1067_v22  ;;  %v1328_v18 = vld [vmem:[#allocation5 + $0x27b8] sm:$0xff]  ;;  %v1327_v20 = vld [vmem:[#allocation5 + $0x27b0] sm:$0xff] }
  0xf9   :  { %2302 = vmatpush1.msra.mxu1 %v1227_v23  ;;  %2232 = vmatprep.subr.mxu0 %v1063_v24  ;;  %v1163_v22 = vld [vmem:[#allocation5 + $0x2290] sm:$0xff]  ;;  %v1162_v24 = vld [vmem:[#allocation5 + $0x2288] sm:$0xff] }
  0xfa   :  { %2303 = vmatprep.subr.mxu1 %v1223_v25  ;;  %2233 = vmatpush1.msra.mxu0 %v1062_v27  ;;  %v1323_v23 = vld [vmem:[#allocation5 + $0x2790] sm:$0xff]  ;;  %v1322_v25 = vld [vmem:[#allocation5 + $0x2788] sm:$0xff] }
  0xfb   :  { %2304 = vmatpush1.msra.mxu1 %v1222_v28  ;;  %2234 = vmatprep.subr.mxu0 %v1058_v30  ;;  %v1158_v27 = vld [vmem:[#allocation5 + $0x2268] sm:$0xff]  ;;  %v1157_v30 = vld [vmem:[#allocation5 + $0x2260] sm:$0xff] }
  0xfc   :  { %2305 = vmatprep.subr.mxu1 %v1218_v31  ;;  %2235 = vmatpush1.msra.mxu0 %v1057_v32  ;;  %v1318_v28 = vld [vmem:[#allocation5 + $0x2768] sm:$0xff]  ;;  %v1317_v31 = vld [vmem:[#allocation5 + $0x2760] sm:$0xff] }
  0xfd   :  { %2306 = vmatpush1.msra.mxu1 %v1217_v33  ;;  %2236 = vmatprep.subr.mxu0 %v1053_v34  ;;  %v1153_v32 = vld [vmem:[#allocation5 + $0x2240] sm:$0xff]  ;;  %v1152_v34 = vld [vmem:[#allocation5 + $0x2238] sm:$0xff] }
  0xfe   :  { %2307 = vmatprep.subr.mxu1 %v1213_v35  ;;  %2237 = vmatpush1.msra.mxu0 %v1052_v36  ;;  %v1313_v33 = vld [vmem:[#allocation5 + $0x2740] sm:$0xff]  ;;  %v1312_v35 = vld [vmem:[#allocation5 + $0x2738] sm:$0xff] }
  0xff   :  { %2308 = vmatpush1.msra.mxu1 %v1212_v37  ;;  %2238 = vmatprep.subr.mxu0 %v1048_v38  ;;  %v1148_v36 = vld [vmem:[#allocation5 + $0x2218] sm:$0xff]  ;;  %v1147_v38 = vld [vmem:[#allocation5 + $0x2210] sm:$0xff] }
 0x100   :  { %2309 = vmatprep.subr.mxu1 %v1208_v39  ;;  %2239 = vmatpush1.msra.mxu0 %v1047_v40  ;;  %v1308_v37 = vld [vmem:[#allocation5 + $0x2718] sm:$0xff]  ;;  %v1307_v39 = vld [vmem:[#allocation5 + $0x2710] sm:$0xff] }
 0x101   :  { %2310 = vmatpush1.msra.mxu1 %v1207_v42  ;;  %2240 = vmatprep.subr.mxu0 %v1043_v44  ;;  %v1143_v40 = vld [vmem:[#allocation5 + $0x21f0] sm:$0xff]  ;;  %v1142_v44 = vld [vmem:[#allocation5 + $0x21e8] sm:$0xff] }
 0x102   :  { %2311 = vmatprep.subr.mxu1 %v1203_v45  ;;  %2241 = vmatpush1.msra.mxu0 %v1042_v46  ;;  %v1303_v42 = vld [vmem:[#allocation5 + $0x26f0] sm:$0xff]  ;;  %v1302_v45 = vld [vmem:[#allocation5 + $0x26e8] sm:$0xff] }
 0x103   :  { %2312 = vmatpush1.msra.mxu1 %v1202_v47  ;;  %2242 = vmatprep.subr.mxu0 %v1038_v49  ;;  %v1138_v46 = vld [vmem:[#allocation5 + $0x21c8] sm:$0xff]  ;;  %v1137_v49 = vld [vmem:[#allocation5 + $0x21c0] sm:$0xff] }
 0x104   :  { %2313 = vmatprep.subr.mxu1 %v1198_v50  ;;  %2243 = vmatpush1.msra.mxu0 %v1037_v51  ;;  %v1298_v47 = vld [vmem:[#allocation5 + $0x26c8] sm:$0xff]  ;;  %v1297_v50 = vld [vmem:[#allocation5 + $0x26c0] sm:$0xff] }
 0x105   :  { %2314 = vmatpush1.msra.mxu1 %v1197_v53  ;;  %2244 = vmatprep.subr.mxu0 %v1033_v55  ;;  %v1133_v51 = vld [vmem:[#allocation5 + $0x21a0] sm:$0xff]  ;;  %v1132_v55 = vld [vmem:[#allocation5 + $0x2198] sm:$0xff] }
 0x106   :  { %2315 = vmatprep.subr.mxu1 %v1193_v56  ;;  %2245 = vmatpush1.msra.mxu0 %v1032_v58  ;;  %v1293_v53 = vld [vmem:[#allocation5 + $0x26a0] sm:$0xff]  ;;  %v1292_v56 = vld [vmem:[#allocation5 + $0x2698] sm:$0xff] }
 0x107   :  { %2316 = vmatpush1.msra.mxu1 %v1192_v59  ;;  %2246 = vmatprep.subr.mxu0 %v1028_v60  ;;  %v1128_v58 = vld [vmem:[#allocation5 + $0x2178] sm:$0xff]  ;;  %v1127_v60 = vld [vmem:[#allocation5 + $0x2170] sm:$0xff] }
 0x108   :  { %2317 = vmatprep.subr.mxu1 %v1188_v61  ;;  %2247 = vmatpush1.msra.mxu0 %v1027_v63  ;;  %v1288_v59 = vld [vmem:[#allocation5 + $0x2678] sm:$0xff]  ;;  %v1287_v61 = vld [vmem:[#allocation5 + $0x2670] sm:$0xff] }
 0x109   :  { %2318 = vmatpush1.msra.mxu1 %v1187_v0  ;;  %2248 = vmatprep.subr.mxu0 %v1023_v1  ;;  %v1123_v63 = vld [vmem:[#allocation5 + $0x2150] sm:$0xff]  ;;  %v1122_v1 = vld [vmem:[#allocation5 + $0x2148] sm:$0xff] }
 0x10a   :  { %2319 = vmatprep.subr.mxu1 %v1183_v2  ;;  %2249 = vmatpush1.msra.mxu0 %v1022_v4  ;;  %v1283_v0 = vld [vmem:[#allocation5 + $0x2650] sm:$0xff]  ;;  %v1282_v2 = vld [vmem:[#allocation5 + $0x2648] sm:$0xff] }
 0x10b   :  { %2320 = vmatpush1.msra.mxu1 %v1182_v5  ;;  %2250 = vmatprep.subr.mxu0 %v1018_v6  ;;  %v55_v4 = vld [vmem:[#allocation2 + $0x18] sm:$0xff]  ;;  %v1118_v5 = vld [vmem:[#allocation5 + $0x2128] sm:$0xff] }
 0x10c   :  { %2321 = vmatprep.subr.mxu1 %v1178_v7  ;;  %2251 = vmatpush1.msra.mxu0 %v1017_v9  ;;  %v1278_v6 = vld [vmem:[#allocation5 + $0x2628] sm:$0xff]  ;;  %v1117_v7 = vld [vmem:[#allocation5 + $0x2120] sm:$0xff] }
 0x10d   :  { %2322 = vmatpush1.msra.mxu1 %v1177_v10  ;;  %2252 = vmatprep.subr.mxu0 %v1173_v12  ;;  %v1277_v9 = vld [vmem:[#allocation5 + $0x2620] sm:$0xff] }
 0x10e   :  { %2323 = vmatprep.subr.mxu1 %v1333_v13  ;;  %2253 = vmatpush2.msra.mxu0 %v1172_v14  ;;  %v1113_v10 = vld [vmem:[#allocation5 + $0x2100] sm:$0xff]  ;;  %v1740_v13 = vcombine.high %v55_v4, %v55_v4  ;;  %v1112_v14 = vld [vmem:[#allocation5 + $0x20f8] sm:$0xff] }
 0x10f   :  { %2324 = vmatpush2.msra.mxu1 %v1332_v15  ;;  %2254 = vmatprep.subr.mxu0 %v1168_v17  ;;  %v1273_v12 = vld [vmem:[#allocation5 + $0x2600] sm:$0xff]  ;;  %v1272_v15 = vld [vmem:[#allocation5 + $0x25f8] sm:$0xff] }
 0x110   :  { %2325 = vmatprep.subr.mxu1 %v1328_v18  ;;  %2255 = vmatpush2.msra.mxu0 %v1167_v19  ;;  %v1108_v17 = vld [vmem:[#allocation5 + $0x20d8] sm:$0xff]  ;;  %v4508_v19 = vrot.slane %v55_v4, %v4451_v52  ;;  %v1383_v4 = vld [vmem:[#allocation5 + $0x2970] sm:$0xff] }
 0x111   :  { %2326 = vmatpush2.msra.mxu1 %v1327_v20  ;;  %2256 = vmatprep.subr.mxu0 %v1163_v22  ;;  %v1268_v18 = vld [vmem:[#allocation5 + $0x25d8] sm:$0xff]  ;;  %v1107_v20 = vld [vmem:[#allocation5 + $0x20d0] sm:$0xff] }
 0x112   :  { %2327 = vmatprep.subr.mxu1 %v1323_v23  ;;  %2257 = vmatpush2.msra.mxu0 %v1162_v24  ;;  %v1267_v22 = vld [vmem:[#allocation5 + $0x25d0] sm:$0xff] }
 0x113   :  { %2328 = vmatpush2.msra.mxu1 %v1322_v25  ;;  %2258 = vmatprep.subr.mxu0 %v1158_v27  ;;  %v1103_v23 = vld [vmem:[#allocation5 + $0x20b0] sm:$0xff]  ;;  %v4511_v25 = vrot.slane %v1740_v13, %v4451_v52  ;;  %v1102_v27 = vld [vmem:[#allocation5 + $0x20a8] sm:$0xff]  ;;  %v1537_v13 = vld [vmem:[#allocation5 + $0x2e40] sm:$0xff] }
 0x114   :  { %2329 = vmatprep.subr.mxu1 %v1318_v28  ;;  %2259 = vmatpush2.msra.mxu0 %v1157_v30  ;;  %v1263_v24 = vld [vmem:[#allocation5 + $0x25b0] sm:$0xff]  ;;  %v1262_v28 = vld [vmem:[#allocation5 + $0x25a8] sm:$0xff] }
 0x115   :  { %2330 = vmatpush2.msra.mxu1 %v1317_v31  ;;  %2260 = vmatprep.subr.mxu0 %v1153_v32  ;;  %v1098_v30 = vld [vmem:[#allocation5 + $0x2088] sm:$0xff]  ;;  %v4515_v32 = vcombine.high %v4508_v19, %v4508_v19 }
 0x116   :  { %2331 = vmatprep.subr.mxu1 %v1313_v33  ;;  %2261 = vmatpush2.msra.mxu0 %v1152_v34  ;;  %v1258_v31 = vld [vmem:[#allocation5 + $0x2588] sm:$0xff]  ;;  %v1097_v33 = vld [vmem:[#allocation5 + $0x2080] sm:$0xff] }
 0x117   :  { %2332 = vmatpush2.msra.mxu1 %v1312_v35  ;;  %2262 = vmatprep.subr.mxu0 %v1148_v36  ;;  %v1257_v34 = vld [vmem:[#allocation5 + $0x2580] sm:$0xff]  ;;  %v4519_v35 = vcombine.high %v4511_v25, %v4511_v25 }
 0x118   :  { %2333 = vmatprep.subr.mxu1 %v1308_v37  ;;  %2263 = vmatpush2.msra.mxu0 %v1147_v38  ;;  %v1413_v36 = vld [vmem:[#allocation5 + $0x2a60] sm:$0xff]  ;;  %v1412_v38 = vld [vmem:[#allocation5 + $0x2a58] sm:$0xff] }
 0x119   :  { %2334 = vmatpush2.msra.mxu1 %v1307_v39  ;;  %2264 = vmatprep.subr.mxu0 %v1143_v40  ;;  %v1573_v37 = vld [vmem:[#allocation5 + $0x2f60] sm:$0xff]  ;;  %v1572_v39 = vld [vmem:[#allocation5 + $0x2f58] sm:$0xff] }
 0x11a   :  { %2335 = vmatprep.subr.mxu1 %v1303_v42  ;;  %2265 = vmatpush2.msra.mxu0 %v1142_v44  ;;  %v1408_v40 = vld [vmem:[#allocation5 + $0x2a38] sm:$0xff]  ;;  %v1407_v44 = vld [vmem:[#allocation5 + $0x2a30] sm:$0xff] }
 0x11b   :  { %2336 = vmatpush2.msra.mxu1 %v1302_v45  ;;  %2266 = vmatprep.subr.mxu0 %v1138_v46  ;;  %v1568_v42 = vld [vmem:[#allocation5 + $0x2f38] sm:$0xff]  ;;  %v1567_v45 = vld [vmem:[#allocation5 + $0x2f30] sm:$0xff] }
 0x11c   :  { %2337 = vmatprep.subr.mxu1 %v1298_v47  ;;  %2267 = vmatpush2.msra.mxu0 %v1137_v49  ;;  %v1403_v46 = vld [vmem:[#allocation5 + $0x2a10] sm:$0xff]  ;;  %v1402_v49 = vld [vmem:[#allocation5 + $0x2a08] sm:$0xff] }
 0x11d   :  { %2338 = vmatpush2.msra.mxu1 %v1297_v50  ;;  %2268 = vmatprep.subr.mxu0 %v1133_v51  ;;  %v1563_v47 = vld [vmem:[#allocation5 + $0x2f10] sm:$0xff]  ;;  %v1562_v50 = vld [vmem:[#allocation5 + $0x2f08] sm:$0xff] }
 0x11e   :  { %2339 = vmatprep.subr.mxu1 %v1293_v53  ;;  %2269 = vmatpush2.msra.mxu0 %v1132_v55  ;;  %v1398_v51 = vld [vmem:[#allocation5 + $0x29e8] sm:$0xff]  ;;  %v1397_v55 = vld [vmem:[#allocation5 + $0x29e0] sm:$0xff] }
 0x11f   :  { %2340 = vmatpush2.msra.mxu1 %v1292_v56  ;;  %2270 = vmatprep.subr.mxu0 %v1128_v58  ;;  %v1558_v53 = vld [vmem:[#allocation5 + $0x2ee8] sm:$0xff]  ;;  %v1557_v56 = vld [vmem:[#allocation5 + $0x2ee0] sm:$0xff] }
 0x120   :  { %2341 = vmatprep.subr.mxu1 %v1288_v59  ;;  %2271 = vmatpush2.msra.mxu0 %v1127_v60  ;;  %v1393_v58 = vld [vmem:[#allocation5 + $0x29c0] sm:$0xff]  ;;  %v1392_v60 = vld [vmem:[#allocation5 + $0x29b8] sm:$0xff] }
 0x121   :  { %2342 = vmatpush2.msra.mxu1 %v1287_v61  ;;  %2272 = vmatprep.subr.mxu0 %v1123_v63  ;;  %v1553_v59 = vld [vmem:[#allocation5 + $0x2ec0] sm:$0xff]  ;;  %v1552_v61 = vld [vmem:[#allocation5 + $0x2eb8] sm:$0xff] }
 0x122   :  { %2343 = vmatprep.subr.mxu1 %v1283_v0  ;;  %2273 = vmatpush2.msra.mxu0 %v1122_v1  ;;  %v1388_v63 = vld [vmem:[#allocation5 + $0x2998] sm:$0xff]  ;;  %v1387_v1 = vld [vmem:[#allocation5 + $0x2990] sm:$0xff] }
 0x123   :  { %2344 = vmatpush2.msra.mxu1 %v1282_v2  ;;  %2274 = vmatprep.subr.mxu0 %v1118_v5  ;;  %v1548_v0 = vld [vmem:[#allocation5 + $0x2e98] sm:$0xff]  ;;  %v1547_v2 = vld [vmem:[#allocation5 + $0x2e90] sm:$0xff] }
 0x124   :  { %2345 = vmatprep.subr.mxu1 %v1278_v6  ;;  %2275 = vmatpush2.msra.mxu0 %v1117_v7  ;;  %v1543_v5 = vld [vmem:[#allocation5 + $0x2e70] sm:$0xff]  ;;  %v1382_v6 = vld [vmem:[#allocation5 + $0x2968] sm:$0xff] }
 0x125   :  { %2346 = vmatpush2.msra.mxu1 %v1277_v9  ;;  %2276 = vmatprep.subr.mxu0 %v1113_v10  ;;  %v1542_v7 = vld [vmem:[#allocation5 + $0x2e68] sm:$0xff] }
 0x126   :  { %2347 = vmatprep.subr.mxu1 %v1273_v12  ;;  %2277 = vmatpush2.msra.mxu0 %v1112_v14  ;;  %v1378_v9 = vld [vmem:[#allocation5 + $0x2948] sm:$0xff]  ;;  %v1377_v12 = vld [vmem:[#allocation5 + $0x2940] sm:$0xff] }
 0x127   :  { %2348 = vmatpush2.msra.mxu1 %v1272_v15  ;;  %2278 = vmatprep.subr.mxu0 %v1108_v17  ;;  %v1538_v10 = vld [vmem:[#allocation5 + $0x2e48] sm:$0xff]  ;;  %v1373_v14 = vld [vmem:[#allocation5 + $0x2920] sm:$0xff]  ;;  %v1372_v17 = vld [vmem:[#allocation5 + $0x2918] sm:$0xff] }
 0x128   :  { %2349 = vmatprep.subr.mxu1 %v1268_v18  ;;  %2279 = vmatpush2.msra.mxu0 %v1107_v20  ;;  %v1533_v15 = vld [vmem:[#allocation5 + $0x2e20] sm:$0xff]  ;;  %v1532_v18 = vld [vmem:[#allocation5 + $0x2e18] sm:$0xff] }
 0x129   :  { %2350 = vmatpush2.msra.mxu1 %v1267_v22  ;;  %2280 = vmatprep.subr.mxu0 %v1103_v23  ;;  %v1368_v20 = vld [vmem:[#allocation5 + $0x28f8] sm:$0xff]  ;;  %v1367_v23 = vld [vmem:[#allocation5 + $0x28f0] sm:$0xff] }
 0x12a   :  { %2351 = vmatprep.subr.mxu1 %v1263_v24  ;;  %2281 = vmatpush2.msra.mxu0 %v1102_v27  ;;  %v1528_v22 = vld [vmem:[#allocation5 + $0x2df8] sm:$0xff]  ;;  %v1527_v24 = vld [vmem:[#allocation5 + $0x2df0] sm:$0xff] }
 0x12b   :  { %2352 = vmatpush2.msra.mxu1 %v1262_v28  ;;  %2282 = vmatprep.subr.mxu0 %v1098_v30  ;;  %v1363_v27 = vld [vmem:[#allocation5 + $0x28d0] sm:$0xff]  ;;  %v1362_v30 = vld [vmem:[#allocation5 + $0x28c8] sm:$0xff] }
 0x12c   :  { %2353 = vmatprep.subr.mxu1 %v1258_v31  ;;  %2283 = vmatpush2.msra.mxu0 %v1097_v33  ;;  %v1523_v28 = vld [vmem:[#allocation5 + $0x2dd0] sm:$0xff]  ;;  %v1522_v31 = vld [vmem:[#allocation5 + $0x2dc8] sm:$0xff] }
 0x12d   :  { %2284 = vmatprep.mubr.f32.mxu0 %v4515_v32  ;;  %2354 = vmatpush2.msra.mxu1 %v1257_v34  ;;  %v1358_v33 = vld [vmem:[#allocation5 + $0x28a8] sm:$0xff] }
 0x12e   :  { %2285 = vmatmul.mubr.f32.vlgmr.msra.gmra.mxu0 %v4508_v19  ;;  %2355 = vmatprep.mubr.f32.mxu1 %v4519_v35  ;;  %v1518_v34 = vld [vmem:[#allocation5 + $0x2da8] sm:$0xff] }
 0x12f   :  { %2362 = vmatprep.subr.mxu0 %v1413_v36  ;;  %2433 = vmatprep.subr.mxu1 %v1573_v37  ;;  %v1357_v36 = vld [vmem:[#allocation5 + $0x28a0] sm:$0xff] }
 0x130   :  { %2356 = vmatmul.mubr.f32.vlgmr.msra.gmra.mxu1 %v4511_v25  ;;  %2363 = vmatpush1.msra.mxu0 %v1412_v38  ;;  %v1517_v37 = vld [vmem:[#allocation5 + $0x2da0] sm:$0xff] }
 0x131   :  { %2434 = vmatpush1.msra.mxu1 %v1572_v39  ;;  %2364 = vmatprep.subr.mxu0 %v1408_v40  ;;  %v1353_v38 = vld [vmem:[#allocation5 + $0x2880] sm:$0xff]  ;;  %v1352_v40 = vld [vmem:[#allocation5 + $0x2878] sm:$0xff] }
 0x132   :  { %2435 = vmatprep.subr.mxu1 %v1568_v42  ;;  %2365 = vmatpush1.msra.mxu0 %v1407_v44  ;;  %v1513_v39 = vld [vmem:[#allocation5 + $0x2d80] sm:$0xff]  ;;  %v1512_v42 = vld [vmem:[#allocation5 + $0x2d78] sm:$0xff] }
 0x133   :  { %2436 = vmatpush1.msra.mxu1 %v1567_v45  ;;  %2366 = vmatprep.subr.mxu0 %v1403_v46  ;;  %v1348_v44 = vld [vmem:[#allocation5 + $0x2858] sm:$0xff]  ;;  %v1347_v46 = vld [vmem:[#allocation5 + $0x2850] sm:$0xff] }
 0x134   :  { %2437 = vmatprep.subr.mxu1 %v1563_v47  ;;  %2367 = vmatpush1.msra.mxu0 %v1402_v49  ;;  %v1508_v45 = vld [vmem:[#allocation5 + $0x2d58] sm:$0xff]  ;;  %v1507_v47 = vld [vmem:[#allocation5 + $0x2d50] sm:$0xff] }
 0x135   :  { %2438 = vmatpush1.msra.mxu1 %v1562_v50  ;;  %2368 = vmatprep.subr.mxu0 %v1398_v51  ;;  %v1343_v49 = vld [vmem:[#allocation5 + $0x2830] sm:$0xff]  ;;  %v1342_v51 = vld [vmem:[#allocation5 + $0x2828] sm:$0xff] }
 0x136   :  { %2439 = vmatprep.subr.mxu1 %v1558_v53  ;;  %2369 = vmatpush1.msra.mxu0 %v1397_v55  ;;  %v1503_v50 = vld [vmem:[#allocation5 + $0x2d30] sm:$0xff]  ;;  %v1502_v53 = vld [vmem:[#allocation5 + $0x2d28] sm:$0xff] }
 0x137   :  { %2440 = vmatpush1.msra.mxu1 %v1557_v56  ;;  %2370 = vmatprep.subr.mxu0 %v1393_v58  ;;  %v1338_v55 = vld [vmem:[#allocation5 + $0x2808] sm:$0xff]  ;;  %v1337_v58 = vld [vmem:[#allocation5 + $0x2800] sm:$0xff] }
 0x138   :  { %2441 = vmatprep.subr.mxu1 %v1553_v59  ;;  %2371 = vmatpush1.msra.mxu0 %v1392_v60  ;;  %v1498_v56 = vld [vmem:[#allocation5 + $0x2d08] sm:$0xff]  ;;  %v1497_v59 = vld [vmem:[#allocation5 + $0x2d00] sm:$0xff] }
 0x139   :  { %2442 = vmatpush1.msra.mxu1 %v1552_v61  ;;  %2372 = vmatprep.subr.mxu0 %v1388_v63  ;;  %v1493_v60 = vld [vmem:[#allocation5 + $0x2ce0] sm:$0xff]  ;;  %v1492_v63 = vld [vmem:[#allocation5 + $0x2cd8] sm:$0xff] }
 0x13a   :  { %2443 = vmatprep.subr.mxu1 %v1548_v0  ;;  %2373 = vmatpush1.msra.mxu0 %v1387_v1  ;;  %v1653_v61 = vld [vmem:[#allocation5 + $0x31e0] sm:$0xff]  ;;  %v1652_v0 = vld [vmem:[#allocation5 + $0x31d8] sm:$0xff] }
 0x13b   :  { %2444 = vmatpush1.msra.mxu1 %v1547_v2  ;;  %2374 = vmatprep.subr.mxu0 %v1383_v4  ;;  %v1488_v1 = vld [vmem:[#allocation5 + $0x2cb8] sm:$0xff]  ;;  %v1487_v4 = vld [vmem:[#allocation5 + $0x2cb0] sm:$0xff] }
 0x13c   :  { %2445 = vmatprep.subr.mxu1 %v1543_v5  ;;  %2375 = vmatpush1.msra.mxu0 %v1382_v6  ;;  %v1648_v2 = vld [vmem:[#allocation5 + $0x31b8] sm:$0xff]  ;;  %v1647_v5 = vld [vmem:[#allocation5 + $0x31b0] sm:$0xff] }
 0x13d   :  { %2446 = vmatpush1.msra.mxu1 %v1542_v7  ;;  %2376 = vmatprep.subr.mxu0 %v1378_v9  ;;  %v1483_v6 = vld [vmem:[#allocation5 + $0x2c90] sm:$0xff]  ;;  %v1482_v9 = vld [vmem:[#allocation5 + $0x2c88] sm:$0xff] }
 0x13e   :  { %2447 = vmatprep.subr.mxu1 %v1538_v10  ;;  %2377 = vmatpush1.msra.mxu0 %v1377_v12  ;;  %v1643_v7 = vld [vmem:[#allocation5 + $0x3190] sm:$0xff]  ;;  %v1642_v10 = vld [vmem:[#allocation5 + $0x3188] sm:$0xff] }
 0x13f   :  { %2448 = vmatpush1.msra.mxu1 %v1537_v13  ;;  %2378 = vmatprep.subr.mxu0 %v1373_v14  ;;  %v1478_v12 = vld [vmem:[#allocation5 + $0x2c68] sm:$0xff]  ;;  %v1477_v14 = vld [vmem:[#allocation5 + $0x2c60] sm:$0xff] }
 0x140   :  { %2449 = vmatprep.subr.mxu1 %v1533_v15  ;;  %2379 = vmatpush1.msra.mxu0 %v1372_v17  ;;  %v1638_v13 = vld [vmem:[#allocation5 + $0x3168] sm:$0xff]  ;;  %v1637_v15 = vld [vmem:[#allocation5 + $0x3160] sm:$0xff] }
 0x141   :  { %2450 = vmatpush1.msra.mxu1 %v1532_v18  ;;  %2380 = vmatprep.subr.mxu0 %v1368_v20  ;;  %v1473_v17 = vld [vmem:[#allocation5 + $0x2c40] sm:$0xff]  ;;  %v1472_v20 = vld [vmem:[#allocation5 + $0x2c38] sm:$0xff] }
 0x142   :  { %2451 = vmatprep.subr.mxu1 %v1528_v22  ;;  %2381 = vmatpush1.msra.mxu0 %v1367_v23  ;;  %v1633_v18 = vld [vmem:[#allocation5 + $0x3140] sm:$0xff]  ;;  %v1632_v22 = vld [vmem:[#allocation5 + $0x3138] sm:$0xff] }
 0x143   :  { %2452 = vmatpush1.msra.mxu1 %v1527_v24  ;;  %2382 = vmatprep.subr.mxu0 %v1363_v27  ;;  %v1468_v23 = vld [vmem:[#allocation5 + $0x2c18] sm:$0xff]  ;;  %v1467_v27 = vld [vmem:[#allocation5 + $0x2c10] sm:$0xff] }
 0x144   :  { %2453 = vmatprep.subr.mxu1 %v1523_v28  ;;  %2383 = vmatpush1.msra.mxu0 %v1362_v30  ;;  %v1628_v24 = vld [vmem:[#allocation5 + $0x3118] sm:$0xff]  ;;  %v1627_v28 = vld [vmem:[#allocation5 + $0x3110] sm:$0xff] }
 0x145   :  { %2454 = vmatpush1.msra.mxu1 %v1522_v31  ;;  %2384 = vmatprep.subr.mxu0 %v1358_v33  ;;  %v1463_v30 = vld [vmem:[#allocation5 + $0x2bf0] sm:$0xff]  ;;  %v1462_v33 = vld [vmem:[#allocation5 + $0x2be8] sm:$0xff] }
 0x146   :  { %2455 = vmatprep.subr.mxu1 %v1518_v34  ;;  %2385 = vmatpush1.msra.mxu0 %v1357_v36  ;;  %v1623_v31 = vld [vmem:[#allocation5 + $0x30f0] sm:$0xff]  ;;  %v1622_v34 = vld [vmem:[#allocation5 + $0x30e8] sm:$0xff] }
 0x147   :  { %2456 = vmatpush1.msra.mxu1 %v1517_v37  ;;  %2386 = vmatprep.subr.mxu0 %v1353_v38  ;;  %v1458_v36 = vld [vmem:[#allocation5 + $0x2bc8] sm:$0xff]  ;;  %v1457_v38 = vld [vmem:[#allocation5 + $0x2bc0] sm:$0xff] }
 0x148   :  { %2457 = vmatprep.subr.mxu1 %v1513_v39  ;;  %2387 = vmatpush1.msra.mxu0 %v1352_v40  ;;  %v1618_v37 = vld [vmem:[#allocation5 + $0x30c8] sm:$0xff]  ;;  %v1617_v39 = vld [vmem:[#allocation5 + $0x30c0] sm:$0xff] }
 0x149   :  { %2458 = vmatpush1.msra.mxu1 %v1512_v42  ;;  %2388 = vmatprep.subr.mxu0 %v1348_v44  ;;  %v1453_v40 = vld [vmem:[#allocation5 + $0x2ba0] sm:$0xff]  ;;  %v1452_v44 = vld [vmem:[#allocation5 + $0x2b98] sm:$0xff] }
 0x14a   :  { %2459 = vmatprep.subr.mxu1 %v1508_v45  ;;  %2389 = vmatpush1.msra.mxu0 %v1347_v46  ;;  %v1613_v42 = vld [vmem:[#allocation5 + $0x30a0] sm:$0xff]  ;;  %v1612_v45 = vld [vmem:[#allocation5 + $0x3098] sm:$0xff] }
 0x14b   :  { %2460 = vmatpush1.msra.mxu1 %v1507_v47  ;;  %2390 = vmatprep.subr.mxu0 %v1343_v49  ;;  %v1448_v46 = vld [vmem:[#allocation5 + $0x2b78] sm:$0xff]  ;;  %v1447_v49 = vld [vmem:[#allocation5 + $0x2b70] sm:$0xff] }
 0x14c   :  { %2461 = vmatprep.subr.mxu1 %v1503_v50  ;;  %2391 = vmatpush1.msra.mxu0 %v1342_v51  ;;  %v1608_v47 = vld [vmem:[#allocation5 + $0x3078] sm:$0xff]  ;;  %v1607_v50 = vld [vmem:[#allocation5 + $0x3070] sm:$0xff] }
 0x14d   :  { %2462 = vmatpush1.msra.mxu1 %v1502_v53  ;;  %2392 = vmatprep.subr.mxu0 %v1338_v55  ;;  %v1443_v51 = vld [vmem:[#allocation5 + $0x2b50] sm:$0xff]  ;;  %v1442_v55 = vld [vmem:[#allocation5 + $0x2b48] sm:$0xff] }
 0x14e   :  { %2463 = vmatprep.subr.mxu1 %v1498_v56  ;;  %2393 = vmatpush1.msra.mxu0 %v1337_v58  ;;  %v1603_v53 = vld [vmem:[#allocation5 + $0x3050] sm:$0xff]  ;;  %v1602_v56 = vld [vmem:[#allocation5 + $0x3048] sm:$0xff]  ;;  %v56_v58 = vld [vmem:[#allocation2 + $0x20] sm:$0xff] }
 0x14f   :  { %2464 = vmatpush1.msra.mxu1 %v1497_v59  ;;  %2394 = vmatprep.subr.mxu0 %v1493_v60  ;;  %v1438_v59 = vld [vmem:[#allocation5 + $0x2b28] sm:$0xff] }
 0x150   :  { %2465 = vmatprep.subr.mxu1 %v1653_v61  ;;  %2395 = vmatpush2.msra.mxu0 %v1492_v63  ;;  %v1598_v60 = vld [vmem:[#allocation5 + $0x3028] sm:$0xff]  ;;  %v1437_v61 = vld [vmem:[#allocation5 + $0x2b20] sm:$0xff] }
 0x151   :  { %2466 = vmatpush2.msra.mxu1 %v1652_v0  ;;  %2396 = vmatprep.subr.mxu0 %v1488_v1  ;;  %v1597_v63 = vld [vmem:[#allocation5 + $0x3020] sm:$0xff] }
 0x152   :  { %2467 = vmatprep.subr.mxu1 %v1648_v2  ;;  %2397 = vmatpush2.msra.mxu0 %v1487_v4  ;;  %v1433_v0 = vld [vmem:[#allocation5 + $0x2b00] sm:$0xff]  ;;  %v1757_v2 = vcombine.high %v56_v58, %v56_v58  ;;  %v1432_v4 = vld [vmem:[#allocation5 + $0x2af8] sm:$0xff] }
 0x153   :  { %2468 = vmatpush2.msra.mxu1 %v1647_v5  ;;  %2398 = vmatprep.subr.mxu0 %v1483_v6  ;;  %v1593_v1 = vld [vmem:[#allocation5 + $0x3000] sm:$0xff]  ;;  %v1592_v5 = vld [vmem:[#allocation5 + $0x2ff8] sm:$0xff] }
 0x154   :  { %2469 = vmatprep.subr.mxu1 %v1643_v7  ;;  %2399 = vmatpush2.msra.mxu0 %v1482_v9  ;;  %v1428_v6 = vld [vmem:[#allocation5 + $0x2ad8] sm:$0xff]  ;;  %v4526_v9 = vrot.slane %v56_v58, %v4451_v52  ;;  %v110_v58 = vld [vmem:[#allocation5 + $0x1a8] sm:$0xff] }
 0x155   :  { %2470 = vmatpush2.msra.mxu1 %v1642_v10  ;;  %2400 = vmatprep.subr.mxu0 %v1478_v12  ;;  %v1588_v7 = vld [vmem:[#allocation5 + $0x2fd8] sm:$0xff]  ;;  %v1427_v10 = vld [vmem:[#allocation5 + $0x2ad0] sm:$0xff] }
 0x156   :  { %2471 = vmatprep.subr.mxu1 %v1638_v13  ;;  %2401 = vmatpush2.msra.mxu0 %v1477_v14  ;;  %v1587_v12 = vld [vmem:[#allocation5 + $0x2fd0] sm:$0xff] }
 0x157   :  { %2472 = vmatpush2.msra.mxu1 %v1637_v15  ;;  %2402 = vmatprep.subr.mxu0 %v1473_v17  ;;  %v1423_v13 = vld [vmem:[#allocation5 + $0x2ab0] sm:$0xff]  ;;  %v4529_v15 = vrot.slane %v1757_v2, %v4451_v52  ;;  %v1422_v17 = vld [vmem:[#allocation5 + $0x2aa8] sm:$0xff]  ;;  %v264_v2 = vld [vmem:[#allocation5 + $0x678] sm:$0xff] }
 0x158   :  { %2473 = vmatprep.subr.mxu1 %v1633_v18  ;;  %2403 = vmatpush2.msra.mxu0 %v1472_v20  ;;  %v1583_v14 = vld [vmem:[#allocation5 + $0x2fb0] sm:$0xff]  ;;  %v1582_v18 = vld [vmem:[#allocation5 + $0x2fa8] sm:$0xff] }
 0x159   :  { %2474 = vmatpush2.msra.mxu1 %v1632_v22  ;;  %2404 = vmatprep.subr.mxu0 %v1468_v23  ;;  %v1418_v20 = vld [vmem:[#allocation5 + $0x2a88] sm:$0xff]  ;;  %v4533_v23 = vcombine.high %v4526_v9, %v4526_v9 }
 0x15a   :  { %2475 = vmatprep.subr.mxu1 %v1628_v24  ;;  %2405 = vmatpush2.msra.mxu0 %v1467_v27  ;;  %v1578_v22 = vld [vmem:[#allocation5 + $0x2f88] sm:$0xff]  ;;  %v1417_v24 = vld [vmem:[#allocation5 + $0x2a80] sm:$0xff] }
 0x15b   :  { %2476 = vmatpush2.msra.mxu1 %v1627_v28  ;;  %2406 = vmatprep.subr.mxu0 %v1463_v30  ;;  %v1577_v27 = vld [vmem:[#allocation5 + $0x2f80] sm:$0xff]  ;;  %v4537_v28 = vcombine.high %v4529_v15, %v4529_v15  ;;  %v135_v30 = vld [vmem:[#allocation5 + $0x270] sm:$0xff] }
 0x15c   :  { %2477 = vmatprep.subr.mxu1 %v1623_v31  ;;  %2407 = vmatpush2.msra.mxu0 %v1462_v33  ;;  %v295_v31 = vld [vmem:[#allocation5 + $0x770] sm:$0xff]  ;;  %v134_v33 = vld [vmem:[#allocation5 + $0x268] sm:$0xff] }
 0x15d   :  { %2478 = vmatpush2.msra.mxu1 %v1622_v34  ;;  %2408 = vmatprep.subr.mxu0 %v1458_v36  ;;  %v294_v34 = vld [vmem:[#allocation5 + $0x768] sm:$0xff] }
 0x15e   :  { %2479 = vmatprep.subr.mxu1 %v1618_v37  ;;  %2409 = vmatpush2.msra.mxu0 %v1457_v38  ;;  %v130_v36 = vld [vmem:[#allocation5 + $0x248] sm:$0xff]  ;;  %v129_v38 = vld [vmem:[#allocation5 + $0x240] sm:$0xff] }
 0x15f   :  { %2480 = vmatpush2.msra.mxu1 %v1617_v39  ;;  %2410 = vmatprep.subr.mxu0 %v1453_v40  ;;  %v290_v37 = vld [vmem:[#allocation5 + $0x748] sm:$0xff]  ;;  %v289_v39 = vld [vmem:[#allocation5 + $0x740] sm:$0xff] }
 0x160   :  { %2481 = vmatprep.subr.mxu1 %v1613_v42  ;;  %2411 = vmatpush2.msra.mxu0 %v1452_v44  ;;  %v125_v40 = vld [vmem:[#allocation5 + $0x220] sm:$0xff]  ;;  %v124_v44 = vld [vmem:[#allocation5 + $0x218] sm:$0xff] }
 0x161   :  { %2482 = vmatpush2.msra.mxu1 %v1612_v45  ;;  %2412 = vmatprep.subr.mxu0 %v1448_v46  ;;  %v285_v42 = vld [vmem:[#allocation5 + $0x720] sm:$0xff]  ;;  %v284_v45 = vld [vmem:[#allocation5 + $0x718] sm:$0xff] }
 0x162   :  { %2483 = vmatprep.subr.mxu1 %v1608_v47  ;;  %2413 = vmatpush2.msra.mxu0 %v1447_v49  ;;  %v120_v46 = vld [vmem:[#allocation5 + $0x1f8] sm:$0xff]  ;;  %v119_v49 = vld [vmem:[#allocation5 + $0x1f0] sm:$0xff] }
 0x163   :  { %2484 = vmatpush2.msra.mxu1 %v1607_v50  ;;  %2414 = vmatprep.subr.mxu0 %v1443_v51  ;;  %v280_v47 = vld [vmem:[#allocation5 + $0x6f8] sm:$0xff]  ;;  %v279_v50 = vld [vmem:[#allocation5 + $0x6f0] sm:$0xff] }
 0x164   :  { %2485 = vmatprep.subr.mxu1 %v1603_v53  ;;  %2415 = vmatpush2.msra.mxu0 %v1442_v55  ;;  %v115_v51 = vld [vmem:[#allocation5 + $0x1d0] sm:$0xff]  ;;  %v114_v55 = vld [vmem:[#allocation5 + $0x1c8] sm:$0xff] }
 0x165   :  { %2486 = vmatpush2.msra.mxu1 %v1602_v56  ;;  %2416 = vmatprep.subr.mxu0 %v1438_v59  ;;  %v275_v53 = vld [vmem:[#allocation5 + $0x6d0] sm:$0xff]  ;;  %v274_v56 = vld [vmem:[#allocation5 + $0x6c8] sm:$0xff] }
 0x166   :  { %2487 = vmatprep.subr.mxu1 %v1598_v60  ;;  %2417 = vmatpush2.msra.mxu0 %v1437_v61  ;;  %v270_v59 = vld [vmem:[#allocation5 + $0x6a8] sm:$0xff]  ;;  %v109_v60 = vld [vmem:[#allocation5 + $0x1a0] sm:$0xff] }
 0x167   :  { %2488 = vmatpush2.msra.mxu1 %v1597_v63  ;;  %2418 = vmatprep.subr.mxu0 %v1433_v0  ;;  %v269_v61 = vld [vmem:[#allocation5 + $0x6a0] sm:$0xff] }
 0x168   :  { %2489 = vmatprep.subr.mxu1 %v1593_v1  ;;  %2419 = vmatpush2.msra.mxu0 %v1432_v4  ;;  %v105_v63 = vld [vmem:[#allocation5 + $0x180] sm:$0xff]  ;;  %v104_v1 = vld [vmem:[#allocation5 + $0x178] sm:$0xff] }
 0x169   :  { %2490 = vmatpush2.msra.mxu1 %v1592_v5  ;;  %2420 = vmatprep.subr.mxu0 %v1428_v6  ;;  %v265_v0 = vld [vmem:[#allocation5 + $0x680] sm:$0xff]  ;;  %v100_v4 = vld [vmem:[#allocation5 + $0x158] sm:$0xff]  ;;  %v99_v6 = vld [vmem:[#allocation5 + $0x150] sm:$0xff] }
 0x16a   :  { %2491 = vmatprep.subr.mxu1 %v1588_v7  ;;  %2421 = vmatpush2.msra.mxu0 %v1427_v10  ;;  %v260_v5 = vld [vmem:[#allocation5 + $0x658] sm:$0xff]  ;;  %v259_v7 = vld [vmem:[#allocation5 + $0x650] sm:$0xff] }
 0x16b   :  { %2492 = vmatpush2.msra.mxu1 %v1587_v12  ;;  %2422 = vmatprep.subr.mxu0 %v1423_v13  ;;  %v95_v10 = vld [vmem:[#allocation5 + $0x130] sm:$0xff]  ;;  %v94_v13 = vld [vmem:[#allocation5 + $0x128] sm:$0xff] }
 0x16c   :  { %2493 = vmatprep.subr.mxu1 %v1583_v14  ;;  %2423 = vmatpush2.msra.mxu0 %v1422_v17  ;;  %v255_v12 = vld [vmem:[#allocation5 + $0x630] sm:$0xff]  ;;  %v254_v14 = vld [vmem:[#allocation5 + $0x628] sm:$0xff] }
 0x16d   :  { %2494 = vmatpush2.msra.mxu1 %v1582_v18  ;;  %2424 = vmatprep.subr.mxu0 %v1418_v20  ;;  %v90_v17 = vld [vmem:[#allocation5 + $0x108] sm:$0xff]  ;;  %v89_v20 = vld [vmem:[#allocation5 + $0x100] sm:$0xff] }
 0x16e   :  { %2495 = vmatprep.subr.mxu1 %v1578_v22  ;;  %2425 = vmatpush2.msra.mxu0 %v1417_v24  ;;  %v250_v18 = vld [vmem:[#allocation5 + $0x608] sm:$0xff]  ;;  %v249_v22 = vld [vmem:[#allocation5 + $0x600] sm:$0xff] }
 0x16f   :  { %2426 = vmatprep.mubr.f32.mxu0 %v4533_v23  ;;  %2496 = vmatpush2.msra.mxu1 %v1577_v27  ;;  %v85_v24 = vld [vmem:[#allocation5 + $0xe0] sm:$0xff] }
 0x170   :  { %2427 = vmatmul.mubr.f32.vlgmr.msra.gmra.mxu0 %v4526_v9  ;;  %2497 = vmatprep.mubr.f32.mxu1 %v4537_v28  ;;  %v245_v27 = vld [vmem:[#allocation5 + $0x5e0] sm:$0xff] }
 0x171   :  { %2504 = vmatprep.subr.mxu0 %v135_v30  ;;  %2575 = vmatprep.subr.mxu1 %v295_v31  ;;  %v84_v30 = vld [vmem:[#allocation5 + $0xd8] sm:$0xff] }
 0x172   :  { %2498 = vmatmul.mubr.f32.vlgmr.msra.gmra.mxu1 %v4529_v15  ;;  %2505 = vmatpush1.msra.mxu0 %v134_v33  ;;  %v244_v31 = vld [vmem:[#allocation5 + $0x5d8] sm:$0xff] }
 0x173   :  { %2576 = vmatpush1.msra.mxu1 %v294_v34  ;;  %2506 = vmatprep.subr.mxu0 %v130_v36  ;;  %v80_v33 = vld [vmem:[#allocation5 + $0xb8] sm:$0xff]  ;;  %v79_v36 = vld [vmem:[#allocation5 + $0xb0] sm:$0xff] }
 0x174   :  { %2577 = vmatprep.subr.mxu1 %v290_v37  ;;  %2507 = vmatpush1.msra.mxu0 %v129_v38  ;;  %v240_v34 = vld [vmem:[#allocation5 + $0x5b8] sm:$0xff]  ;;  %v239_v37 = vld [vmem:[#allocation5 + $0x5b0] sm:$0xff] }
 0x175   :  { %2578 = vmatpush1.msra.mxu1 %v289_v39  ;;  %2508 = vmatprep.subr.mxu0 %v125_v40  ;;  %v75_v38 = vld [vmem:[#allocation5 + $0x90] sm:$0xff]  ;;  %v74_v40 = vld [vmem:[#allocation5 + $0x88] sm:$0xff] }
 0x176   :  { %2579 = vmatprep.subr.mxu1 %v285_v42  ;;  %2509 = vmatpush1.msra.mxu0 %v124_v44  ;;  %v235_v39 = vld [vmem:[#allocation5 + $0x590] sm:$0xff]  ;;  %v234_v42 = vld [vmem:[#allocation5 + $0x588] sm:$0xff] }
 0x177   :  { %2580 = vmatpush1.msra.mxu1 %v284_v45  ;;  %2510 = vmatprep.subr.mxu0 %v120_v46  ;;  %v70_v44 = vld [vmem:[#allocation5 + $0x68] sm:$0xff]  ;;  %v69_v46 = vld [vmem:[#allocation5 + $0x60] sm:$0xff] }
 0x178   :  { %2581 = vmatprep.subr.mxu1 %v280_v47  ;;  %2511 = vmatpush1.msra.mxu0 %v119_v49  ;;  %v230_v45 = vld [vmem:[#allocation5 + $0x568] sm:$0xff]  ;;  %v229_v47 = vld [vmem:[#allocation5 + $0x560] sm:$0xff] }
 0x179   :  { %2582 = vmatpush1.msra.mxu1 %v279_v50  ;;  %2512 = vmatprep.subr.mxu0 %v115_v51  ;;  %v65_v49 = vld [vmem:[#allocation5 + $0x40] sm:$0xff]  ;;  %v64_v51 = vld [vmem:[#allocation5 + $0x38] sm:$0xff] }
 0x17a   :  { %2583 = vmatprep.subr.mxu1 %v275_v53  ;;  %2513 = vmatpush1.msra.mxu0 %v114_v55  ;;  %v225_v50 = vld [vmem:[#allocation5 + $0x540] sm:$0xff]  ;;  %v224_v53 = vld [vmem:[#allocation5 + $0x538] sm:$0xff] }
 0x17b   :  { %2584 = vmatpush1.msra.mxu1 %v274_v56  ;;  %2514 = vmatprep.subr.mxu0 %v110_v58  ;;  %v60_v55 = vld [vmem:[#allocation5 + $0x18] sm:$0xff]  ;;  %v59_v58 = vld [vmem:[#allocation5 + $0x10] sm:$0xff] }
 0x17c   :  { %2585 = vmatprep.subr.mxu1 %v270_v59  ;;  %2515 = vmatpush1.msra.mxu0 %v109_v60  ;;  %v220_v56 = vld [vmem:[#allocation5 + $0x518] sm:$0xff]  ;;  %v219_v59 = vld [vmem:[#allocation5 + $0x510] sm:$0xff] }
 0x17d   :  { %2586 = vmatpush1.msra.mxu1 %v269_v61  ;;  %2516 = vmatprep.subr.mxu0 %v105_v63  ;;  %v215_v60 = vld [vmem:[#allocation5 + $0x4f0] sm:$0xff]  ;;  %v214_v63 = vld [vmem:[#allocation5 + $0x4e8] sm:$0xff] }
 0x17e   :  { %2587 = vmatprep.subr.mxu1 %v265_v0  ;;  %2517 = vmatpush1.msra.mxu0 %v104_v1  ;;  %v375_v61 = vld [vmem:[#allocation5 + $0x9f0] sm:$0xff]  ;;  %v374_v0 = vld [vmem:[#allocation5 + $0x9e8] sm:$0xff] }
 0x17f   :  { %2588 = vmatpush1.msra.mxu1 %v264_v2  ;;  %2518 = vmatprep.subr.mxu0 %v100_v4  ;;  %v210_v1 = vld [vmem:[#allocation5 + $0x4c8] sm:$0xff]  ;;  %v209_v4 = vld [vmem:[#allocation5 + $0x4c0] sm:$0xff] }
 0x180   :  { %2589 = vmatprep.subr.mxu1 %v260_v5  ;;  %2519 = vmatpush1.msra.mxu0 %v99_v6  ;;  %v370_v2 = vld [vmem:[#allocation5 + $0x9c8] sm:$0xff]  ;;  %v369_v5 = vld [vmem:[#allocation5 + $0x9c0] sm:$0xff] }
 0x181   :  { %2590 = vmatpush1.msra.mxu1 %v259_v7  ;;  %2520 = vmatprep.subr.mxu0 %v95_v10  ;;  %v205_v6 = vld [vmem:[#allocation5 + $0x4a0] sm:$0xff]  ;;  %v204_v10 = vld [vmem:[#allocation5 + $0x498] sm:$0xff] }
 0x182   :  { %2591 = vmatprep.subr.mxu1 %v255_v12  ;;  %2521 = vmatpush1.msra.mxu0 %v94_v13  ;;  %v365_v7 = vld [vmem:[#allocation5 + $0x9a0] sm:$0xff]  ;;  %v364_v12 = vld [vmem:[#allocation5 + $0x998] sm:$0xff] }
 0x183   :  { %2592 = vmatpush1.msra.mxu1 %v254_v14  ;;  %2522 = vmatprep.subr.mxu0 %v90_v17  ;;  %v200_v13 = vld [vmem:[#allocation5 + $0x478] sm:$0xff]  ;;  %v199_v17 = vld [vmem:[#allocation5 + $0x470] sm:$0xff] }
 0x184   :  { %2593 = vmatprep.subr.mxu1 %v250_v18  ;;  %2523 = vmatpush1.msra.mxu0 %v89_v20  ;;  %v360_v14 = vld [vmem:[#allocation5 + $0x978] sm:$0xff]  ;;  %v359_v18 = vld [vmem:[#allocation5 + $0x970] sm:$0xff] }
 0x185   :  { %2594 = vmatpush1.msra.mxu1 %v249_v22  ;;  %2524 = vmatprep.subr.mxu0 %v85_v24  ;;  %v195_v20 = vld [vmem:[#allocation5 + $0x450] sm:$0xff]  ;;  %v194_v24 = vld [vmem:[#allocation5 + $0x448] sm:$0xff] }
 0x186   :  { %2595 = vmatprep.subr.mxu1 %v245_v27  ;;  %2525 = vmatpush1.msra.mxu0 %v84_v30  ;;  %v355_v22 = vld [vmem:[#allocation5 + $0x950] sm:$0xff]  ;;  %v354_v27 = vld [vmem:[#allocation5 + $0x948] sm:$0xff] }
 0x187   :  { %2596 = vmatpush1.msra.mxu1 %v244_v31  ;;  %2526 = vmatprep.subr.mxu0 %v80_v33  ;;  %v190_v30 = vld [vmem:[#allocation5 + $0x428] sm:$0xff]  ;;  %v189_v33 = vld [vmem:[#allocation5 + $0x420] sm:$0xff] }
 0x188   :  { %2597 = vmatprep.subr.mxu1 %v240_v34  ;;  %2527 = vmatpush1.msra.mxu0 %v79_v36  ;;  %v350_v31 = vld [vmem:[#allocation5 + $0x928] sm:$0xff]  ;;  %v349_v34 = vld [vmem:[#allocation5 + $0x920] sm:$0xff] }
 0x189   :  { %2598 = vmatpush1.msra.mxu1 %v239_v37  ;;  %2528 = vmatprep.subr.mxu0 %v75_v38  ;;  %v185_v36 = vld [vmem:[#allocation5 + $0x400] sm:$0xff]  ;;  %v184_v38 = vld [vmem:[#allocation5 + $0x3f8] sm:$0xff] }
 0x18a   :  { %2599 = vmatprep.subr.mxu1 %v235_v39  ;;  %2529 = vmatpush1.msra.mxu0 %v74_v40  ;;  %v345_v37 = vld [vmem:[#allocation5 + $0x900] sm:$0xff]  ;;  %v344_v39 = vld [vmem:[#allocation5 + $0x8f8] sm:$0xff] }
 0x18b   :  { %2600 = vmatpush1.msra.mxu1 %v234_v42  ;;  %2530 = vmatprep.subr.mxu0 %v70_v44  ;;  %v180_v40 = vld [vmem:[#allocation5 + $0x3d8] sm:$0xff]  ;;  %v179_v44 = vld [vmem:[#allocation5 + $0x3d0] sm:$0xff] }
 0x18c   :  { %2601 = vmatprep.subr.mxu1 %v230_v45  ;;  %2531 = vmatpush1.msra.mxu0 %v69_v46  ;;  %v340_v42 = vld [vmem:[#allocation5 + $0x8d8] sm:$0xff]  ;;  %v339_v45 = vld [vmem:[#allocation5 + $0x8d0] sm:$0xff] }
 0x18d   :  { %2602 = vmatpush1.msra.mxu1 %v229_v47  ;;  %2532 = vmatprep.subr.mxu0 %v65_v49  ;;  %v175_v46 = vld [vmem:[#allocation5 + $0x3b0] sm:$0xff]  ;;  %v174_v49 = vld [vmem:[#allocation5 + $0x3a8] sm:$0xff] }
 0x18e   :  { %2603 = vmatprep.subr.mxu1 %v225_v50  ;;  %2533 = vmatpush1.msra.mxu0 %v64_v51  ;;  %v335_v47 = vld [vmem:[#allocation5 + $0x8b0] sm:$0xff]  ;;  %v334_v50 = vld [vmem:[#allocation5 + $0x8a8] sm:$0xff] }
 0x18f   :  { %2604 = vmatpush1.msra.mxu1 %v224_v53  ;;  %2534 = vmatprep.subr.mxu0 %v60_v55  ;;  %v170_v51 = vld [vmem:[#allocation5 + $0x388] sm:$0xff]  ;;  %v169_v55 = vld [vmem:[#allocation5 + $0x380] sm:$0xff] }
 0x190   :  { %2605 = vmatprep.subr.mxu1 %v220_v56  ;;  %2535 = vmatpush1.msra.mxu0 %v59_v58  ;;  %v330_v53 = vld [vmem:[#allocation5 + $0x888] sm:$0xff]  ;;  %v329_v56 = vld [vmem:[#allocation5 + $0x880] sm:$0xff] }
 0x191   :  { %2606 = vmatpush1.msra.mxu1 %v219_v59  ;;  %2536 = vmatprep.subr.mxu0 %v215_v60  ;;  %v165_v58 = vld [vmem:[#allocation5 + $0x360] sm:$0xff]  ;;  %v164_v60 = vld [vmem:[#allocation5 + $0x358] sm:$0xff] }
 0x192   :  { %2607 = vmatprep.subr.mxu1 %v375_v61  ;;  %2537 = vmatpush2.msra.mxu0 %v214_v63  ;;  %v325_v59 = vld [vmem:[#allocation5 + $0x860] sm:$0xff]  ;;  %v324_v61 = vld [vmem:[#allocation5 + $0x858] sm:$0xff] }
 0x193   :  { %2608 = vmatpush2.msra.mxu1 %v374_v0  ;;  %2538 = vmatprep.subr.mxu0 %v210_v1  ;;  %v160_v63 = vld [vmem:[#allocation5 + $0x338] sm:$0xff]  ;;  %v159_v1 = vld [vmem:[#allocation5 + $0x330] sm:$0xff] }
 0x194   :  { %2609 = vmatprep.subr.mxu1 %v370_v2  ;;  %2539 = vmatpush2.msra.mxu0 %v209_v4  ;;  %v320_v0 = vld [vmem:[#allocation5 + $0x838] sm:$0xff]  ;;  %v319_v2 = vld [vmem:[#allocation5 + $0x830] sm:$0xff] }
 0x195   :  { %2610 = vmatpush2.msra.mxu1 %v369_v5  ;;  %2540 = vmatprep.subr.mxu0 %v205_v6  ;;  %v155_v4 = vld [vmem:[#allocation5 + $0x310] sm:$0xff]  ;;  %v154_v6 = vld [vmem:[#allocation5 + $0x308] sm:$0xff] }
 0x196   :  { %2611 = vmatprep.subr.mxu1 %v365_v7  ;;  %2541 = vmatpush2.msra.mxu0 %v204_v10  ;;  %v315_v5 = vld [vmem:[#allocation5 + $0x810] sm:$0xff]  ;;  %v314_v7 = vld [vmem:[#allocation5 + $0x808] sm:$0xff] }
 0x197   :  { %2612 = vmatpush2.msra.mxu1 %v364_v12  ;;  %2542 = vmatprep.subr.mxu0 %v200_v13  ;;  %v150_v10 = vld [vmem:[#allocation5 + $0x2e8] sm:$0xff]  ;;  %v149_v13 = vld [vmem:[#allocation5 + $0x2e0] sm:$0xff] }
 0x198   :  { %2613 = vmatprep.subr.mxu1 %v360_v14  ;;  %2543 = vmatpush2.msra.mxu0 %v199_v17  ;;  %v310_v12 = vld [vmem:[#allocation5 + $0x7e8] sm:$0xff]  ;;  %v309_v14 = vld [vmem:[#allocation5 + $0x7e0] sm:$0xff] }
 0x199   :  { %2614 = vmatpush2.msra.mxu1 %v359_v18  ;;  %2544 = vmatprep.subr.mxu0 %v195_v20  ;;  %v145_v17 = vld [vmem:[#allocation5 + $0x2c0] sm:$0xff]  ;;  %v144_v20 = vld [vmem:[#allocation5 + $0x2b8] sm:$0xff] }
 0x19a   :  { %2615 = vmatprep.subr.mxu1 %v355_v22  ;;  %2545 = vmatpush2.msra.mxu0 %v194_v24  ;;  %v305_v18 = vld [vmem:[#allocation5 + $0x7c0] sm:$0xff]  ;;  %v304_v22 = vld [vmem:[#allocation5 + $0x7b8] sm:$0xff] }
 0x19b   :  { %2616 = vmatpush2.msra.mxu1 %v354_v27  ;;  %2546 = vmatprep.subr.mxu0 %v190_v30  ;;  %v140_v24 = vld [vmem:[#allocation5 + $0x298] sm:$0xff]  ;;  %v139_v30 = vld [vmem:[#allocation5 + $0x290] sm:$0xff] }
 0x19c   :  { %2617 = vmatprep.subr.mxu1 %v350_v31  ;;  %2547 = vmatpush2.msra.mxu0 %v189_v33  ;;  %v300_v27 = vld [vmem:[#allocation5 + $0x798] sm:$0xff]  ;;  %v299_v31 = vld [vmem:[#allocation5 + $0x790] sm:$0xff] }
 0x19d   :  { %2618 = vmatpush2.msra.mxu1 %v349_v34  ;;  %2548 = vmatprep.subr.mxu0 %v185_v36  ;;  %v455_v33 = vld [vmem:[#allocation5 + $0xc70] sm:$0xff]  ;;  %v454_v36 = vld [vmem:[#allocation5 + $0xc68] sm:$0xff] }
 0x19e   :  { %2619 = vmatprep.subr.mxu1 %v345_v37  ;;  %2549 = vmatpush2.msra.mxu0 %v184_v38  ;;  %v615_v34 = vld [vmem:[#allocation5 + $0x1170] sm:$0xff]  ;;  %v614_v37 = vld [vmem:[#allocation5 + $0x1168] sm:$0xff] }
 0x19f   :  { %2620 = vmatpush2.msra.mxu1 %v344_v39  ;;  %2550 = vmatprep.subr.mxu0 %v180_v40  ;;  %v450_v38 = vld [vmem:[#allocation5 + $0xc48] sm:$0xff]  ;;  %v449_v40 = vld [vmem:[#allocation5 + $0xc40] sm:$0xff] }
 0x1a0   :  { %2621 = vmatprep.subr.mxu1 %v340_v42  ;;  %2551 = vmatpush2.msra.mxu0 %v179_v44  ;;  %v610_v39 = vld [vmem:[#allocation5 + $0x1148] sm:$0xff]  ;;  %v609_v42 = vld [vmem:[#allocation5 + $0x1140] sm:$0xff] }
 0x1a1   :  { %2622 = vmatpush2.msra.mxu1 %v339_v45  ;;  %2552 = vmatprep.subr.mxu0 %v175_v46  ;;  %v445_v44 = vld [vmem:[#allocation5 + $0xc20] sm:$0xff]  ;;  %v444_v46 = vld [vmem:[#allocation5 + $0xc18] sm:$0xff] }
 0x1a2   :  { %2623 = vmatprep.subr.mxu1 %v335_v47  ;;  %2553 = vmatpush2.msra.mxu0 %v174_v49  ;;  %v605_v45 = vld [vmem:[#allocation5 + $0x1120] sm:$0xff]  ;;  %v604_v47 = vld [vmem:[#allocation5 + $0x1118] sm:$0xff] }
 0x1a3   :  { %2624 = vmatpush2.msra.mxu1 %v334_v50  ;;  %2554 = vmatprep.subr.mxu0 %v170_v51  ;;  %v440_v49 = vld [vmem:[#allocation5 + $0xbf8] sm:$0xff]  ;;  %v439_v51 = vld [vmem:[#allocation5 + $0xbf0] sm:$0xff] }
 0x1a4   :  { %2625 = vmatprep.subr.mxu1 %v330_v53  ;;  %2555 = vmatpush2.msra.mxu0 %v169_v55  ;;  %v600_v50 = vld [vmem:[#allocation5 + $0x10f8] sm:$0xff]  ;;  %v599_v53 = vld [vmem:[#allocation5 + $0x10f0] sm:$0xff] }
 0x1a5   :  { %2626 = vmatpush2.msra.mxu1 %v329_v56  ;;  %2556 = vmatprep.subr.mxu0 %v165_v58  ;;  %v435_v55 = vld [vmem:[#allocation5 + $0xbd0] sm:$0xff]  ;;  %v434_v58 = vld [vmem:[#allocation5 + $0xbc8] sm:$0xff] }
 0x1a6   :  { %2627 = vmatprep.subr.mxu1 %v325_v59  ;;  %2557 = vmatpush2.msra.mxu0 %v164_v60  ;;  %v595_v56 = vld [vmem:[#allocation5 + $0x10d0] sm:$0xff]  ;;  %v594_v59 = vld [vmem:[#allocation5 + $0x10c8] sm:$0xff] }
 0x1a7   :  { %2628 = vmatpush2.msra.mxu1 %v324_v61  ;;  %2558 = vmatprep.subr.mxu0 %v160_v63  ;;  %v430_v60 = vld [vmem:[#allocation5 + $0xba8] sm:$0xff]  ;;  %v429_v63 = vld [vmem:[#allocation5 + $0xba0] sm:$0xff] }
 0x1a8   :  { %2629 = vmatprep.subr.mxu1 %v320_v0  ;;  %2559 = vmatpush2.msra.mxu0 %v159_v1  ;;  %v590_v61 = vld [vmem:[#allocation5 + $0x10a8] sm:$0xff]  ;;  %v589_v0 = vld [vmem:[#allocation5 + $0x10a0] sm:$0xff] }
 0x1a9   :  { %2630 = vmatpush2.msra.mxu1 %v319_v2  ;;  %2560 = vmatprep.subr.mxu0 %v155_v4  ;;  %v425_v1 = vld [vmem:[#allocation5 + $0xb80] sm:$0xff]  ;;  %v424_v4 = vld [vmem:[#allocation5 + $0xb78] sm:$0xff] }
 0x1aa   :  { %2631 = vmatprep.subr.mxu1 %v315_v5  ;;  %2561 = vmatpush2.msra.mxu0 %v154_v6  ;;  %v585_v2 = vld [vmem:[#allocation5 + $0x1080] sm:$0xff]  ;;  %v584_v5 = vld [vmem:[#allocation5 + $0x1078] sm:$0xff] }
 0x1ab   :  { %2632 = vmatpush2.msra.mxu1 %v314_v7  ;;  %2562 = vmatprep.subr.mxu0 %v150_v10  ;;  %v420_v6 = vld [vmem:[#allocation5 + $0xb58] sm:$0xff]  ;;  %v419_v10 = vld [vmem:[#allocation5 + $0xb50] sm:$0xff] }
 0x1ac   :  { %2633 = vmatprep.subr.mxu1 %v310_v12  ;;  %2563 = vmatpush2.msra.mxu0 %v149_v13  ;;  %v580_v7 = vld [vmem:[#allocation5 + $0x1058] sm:$0xff]  ;;  %v579_v12 = vld [vmem:[#allocation5 + $0x1050] sm:$0xff] }
 0x1ad   :  { %2634 = vmatpush2.msra.mxu1 %v309_v14  ;;  %2564 = vmatprep.subr.mxu0 %v145_v17  ;;  %v415_v13 = vld [vmem:[#allocation5 + $0xb30] sm:$0xff]  ;;  %v414_v17 = vld [vmem:[#allocation5 + $0xb28] sm:$0xff] }
 0x1ae   :  { %2635 = vmatprep.subr.mxu1 %v305_v18  ;;  %2565 = vmatpush2.msra.mxu0 %v144_v20  ;;  %v575_v14 = vld [vmem:[#allocation5 + $0x1030] sm:$0xff]  ;;  %v574_v18 = vld [vmem:[#allocation5 + $0x1028] sm:$0xff] }
 0x1af   :  { %2636 = vmatpush2.msra.mxu1 %v304_v22  ;;  %2566 = vmatprep.subr.mxu0 %v140_v24  ;;  %v410_v20 = vld [vmem:[#allocation5 + $0xb08] sm:$0xff]  ;;  %v409_v24 = vld [vmem:[#allocation5 + $0xb00] sm:$0xff] }
 0x1b0   :  { %2637 = vmatprep.subr.mxu1 %v300_v27  ;;  %2567 = vmatpush2.msra.mxu0 %v139_v30  ;;  %v570_v22 = vld [vmem:[#allocation5 + $0x1008] sm:$0xff]  ;;  %v569_v27 = vld [vmem:[#allocation5 + $0x1000] sm:$0xff] }
 0x1b1   :  { %2568 = vmatprep.mubr.f32.mxu0 %v4461_v8  ;;  %2638 = vmatpush2.msra.mxu1 %v299_v31  ;;  %v405_v30 = vld [vmem:[#allocation5 + $0xae0] sm:$0xff] }
 0x1b2   :  { %2569 = vmatmul.mubr.f32.vlgmr.msra.gmra.mxu0 %v4454_v62  ;;  %2639 = vmatprep.mubr.f32.mxu1 %v4465_v11  ;;  %v565_v31 = vld [vmem:[#allocation5 + $0xfe0] sm:$0xff] }
 0x1b3   :  { %2646 = vmatprep.subr.mxu0 %v455_v33  ;;  %2717 = vmatprep.subr.mxu1 %v615_v34  ;;  %v404_v33 = vld [vmem:[#allocation5 + $0xad8] sm:$0xff] }
 0x1b4   :  { %2640 = vmatmul.mubr.f32.vlgmr.msra.gmra.mxu1 %v4457_v3  ;;  %2647 = vmatpush1.msra.mxu0 %v454_v36  ;;  %v564_v34 = vld [vmem:[#allocation5 + $0xfd8] sm:$0xff] }
 0x1b5   :  { %2718 = vmatpush1.msra.mxu1 %v614_v37  ;;  %2648 = vmatprep.subr.mxu0 %v450_v38  ;;  %v400_v36 = vld [vmem:[#allocation5 + $0xab8] sm:$0xff]  ;;  %v399_v38 = vld [vmem:[#allocation5 + $0xab0] sm:$0xff] }
 0x1b6   :  { %2719 = vmatprep.subr.mxu1 %v610_v39  ;;  %2649 = vmatpush1.msra.mxu0 %v449_v40  ;;  %v560_v37 = vld [vmem:[#allocation5 + $0xfb8] sm:$0xff]  ;;  %v559_v39 = vld [vmem:[#allocation5 + $0xfb0] sm:$0xff] }
 0x1b7   :  { %2720 = vmatpush1.msra.mxu1 %v609_v42  ;;  %2650 = vmatprep.subr.mxu0 %v445_v44  ;;  %v395_v40 = vld [vmem:[#allocation5 + $0xa90] sm:$0xff]  ;;  %v394_v44 = vld [vmem:[#allocation5 + $0xa88] sm:$0xff] }
 0x1b8   :  { %2721 = vmatprep.subr.mxu1 %v605_v45  ;;  %2651 = vmatpush1.msra.mxu0 %v444_v46  ;;  %v555_v42 = vld [vmem:[#allocation5 + $0xf90] sm:$0xff]  ;;  %v554_v45 = vld [vmem:[#allocation5 + $0xf88] sm:$0xff] }
 0x1b9   :  { %2722 = vmatpush1.msra.mxu1 %v604_v47  ;;  %2652 = vmatprep.subr.mxu0 %v440_v49  ;;  %v390_v46 = vld [vmem:[#allocation5 + $0xa68] sm:$0xff]  ;;  %v389_v49 = vld [vmem:[#allocation5 + $0xa60] sm:$0xff] }
 0x1ba   :  { %2723 = vmatprep.subr.mxu1 %v600_v50  ;;  %2653 = vmatpush1.msra.mxu0 %v439_v51  ;;  %v550_v47 = vld [vmem:[#allocation5 + $0xf68] sm:$0xff]  ;;  %v549_v50 = vld [vmem:[#allocation5 + $0xf60] sm:$0xff] }
 0x1bb   :  { %2724 = vmatpush1.msra.mxu1 %v599_v53  ;;  %2654 = vmatprep.subr.mxu0 %v435_v55  ;;  %v385_v51 = vld [vmem:[#allocation5 + $0xa40] sm:$0xff]  ;;  %v384_v55 = vld [vmem:[#allocation5 + $0xa38] sm:$0xff] }
 0x1bc   :  { %2725 = vmatprep.subr.mxu1 %v595_v56  ;;  %2655 = vmatpush1.msra.mxu0 %v434_v58  ;;  %v545_v53 = vld [vmem:[#allocation5 + $0xf40] sm:$0xff]  ;;  %v544_v56 = vld [vmem:[#allocation5 + $0xf38] sm:$0xff] }
 0x1bd   :  { %2726 = vmatpush1.msra.mxu1 %v594_v59  ;;  %2656 = vmatprep.subr.mxu0 %v430_v60  ;;  %v380_v58 = vld [vmem:[#allocation5 + $0xa18] sm:$0xff]  ;;  %v379_v60 = vld [vmem:[#allocation5 + $0xa10] sm:$0xff] }
 0x1be   :  { %2727 = vmatprep.subr.mxu1 %v590_v61  ;;  %2657 = vmatpush1.msra.mxu0 %v429_v63  ;;  %v540_v59 = vld [vmem:[#allocation5 + $0xf18] sm:$0xff]  ;;  %v539_v61 = vld [vmem:[#allocation5 + $0xf10] sm:$0xff] }
 0x1bf   :  { %2728 = vmatpush1.msra.mxu1 %v589_v0  ;;  %2658 = vmatprep.subr.mxu0 %v425_v1  ;;  %v535_v63 = vld [vmem:[#allocation5 + $0xef0] sm:$0xff]  ;;  %v534_v1 = vld [vmem:[#allocation5 + $0xee8] sm:$0xff] }
 0x1c0   :  { %2729 = vmatprep.subr.mxu1 %v585_v2  ;;  %2659 = vmatpush1.msra.mxu0 %v424_v4  ;;  %v695_v0 = vld [vmem:[#allocation5 + $0x13f0] sm:$0xff]  ;;  %v694_v2 = vld [vmem:[#allocation5 + $0x13e8] sm:$0xff] }
 0x1c1   :  { %2730 = vmatpush1.msra.mxu1 %v584_v5  ;;  %2660 = vmatprep.subr.mxu0 %v420_v6  ;;  %v530_v4 = vld [vmem:[#allocation5 + $0xec8] sm:$0xff]  ;;  %v529_v6 = vld [vmem:[#allocation5 + $0xec0] sm:$0xff] }
 0x1c2   :  { %2731 = vmatprep.subr.mxu1 %v580_v7  ;;  %2661 = vmatpush1.msra.mxu0 %v419_v10  ;;  %v690_v5 = vld [vmem:[#allocation5 + $0x13c8] sm:$0xff]  ;;  %v689_v7 = vld [vmem:[#allocation5 + $0x13c0] sm:$0xff] }
 0x1c3   :  { %2732 = vmatpush1.msra.mxu1 %v579_v12  ;;  %2662 = vmatprep.subr.mxu0 %v415_v13  ;;  %v525_v10 = vld [vmem:[#allocation5 + $0xea0] sm:$0xff]  ;;  %v524_v13 = vld [vmem:[#allocation5 + $0xe98] sm:$0xff] }
 0x1c4   :  { %2733 = vmatprep.subr.mxu1 %v575_v14  ;;  %2663 = vmatpush1.msra.mxu0 %v414_v17  ;;  %v685_v12 = vld [vmem:[#allocation5 + $0x13a0] sm:$0xff]  ;;  %v684_v14 = vld [vmem:[#allocation5 + $0x1398] sm:$0xff] }
 0x1c5   :  { %2734 = vmatpush1.msra.mxu1 %v574_v18  ;;  %2664 = vmatprep.subr.mxu0 %v410_v20  ;;  %v520_v17 = vld [vmem:[#allocation5 + $0xe78] sm:$0xff]  ;;  %v519_v20 = vld [vmem:[#allocation5 + $0xe70] sm:$0xff] }
 0x1c6   :  { %2735 = vmatprep.subr.mxu1 %v570_v22  ;;  %2665 = vmatpush1.msra.mxu0 %v409_v24  ;;  %v680_v18 = vld [vmem:[#allocation5 + $0x1378] sm:$0xff]  ;;  %v679_v22 = vld [vmem:[#allocation5 + $0x1370] sm:$0xff] }
 0x1c7   :  { %2736 = vmatpush1.msra.mxu1 %v569_v27  ;;  %2666 = vmatprep.subr.mxu0 %v405_v30  ;;  %v515_v24 = vld [vmem:[#allocation5 + $0xe50] sm:$0xff]  ;;  %v514_v30 = vld [vmem:[#allocation5 + $0xe48] sm:$0xff] }
 0x1c8   :  { %2737 = vmatprep.subr.mxu1 %v565_v31  ;;  %2667 = vmatpush1.msra.mxu0 %v404_v33  ;;  %v675_v27 = vld [vmem:[#allocation5 + $0x1350] sm:$0xff]  ;;  %v674_v31 = vld [vmem:[#allocation5 + $0x1348] sm:$0xff] }
 0x1c9   :  { %2738 = vmatpush1.msra.mxu1 %v564_v34  ;;  %2668 = vmatprep.subr.mxu0 %v400_v36  ;;  %v510_v33 = vld [vmem:[#allocation5 + $0xe28] sm:$0xff]  ;;  %v509_v36 = vld [vmem:[#allocation5 + $0xe20] sm:$0xff] }
 0x1ca   :  { %2739 = vmatprep.subr.mxu1 %v560_v37  ;;  %2669 = vmatpush1.msra.mxu0 %v399_v38  ;;  %v670_v34 = vld [vmem:[#allocation5 + $0x1328] sm:$0xff]  ;;  %v669_v37 = vld [vmem:[#allocation5 + $0x1320] sm:$0xff] }
 0x1cb   :  { %2740 = vmatpush1.msra.mxu1 %v559_v39  ;;  %2670 = vmatprep.subr.mxu0 %v395_v40  ;;  %v505_v38 = vld [vmem:[#allocation5 + $0xe00] sm:$0xff]  ;;  %v504_v40 = vld [vmem:[#allocation5 + $0xdf8] sm:$0xff] }
 0x1cc   :  { %2741 = vmatprep.subr.mxu1 %v555_v42  ;;  %2671 = vmatpush1.msra.mxu0 %v394_v44  ;;  %v665_v39 = vld [vmem:[#allocation5 + $0x1300] sm:$0xff]  ;;  %v664_v42 = vld [vmem:[#allocation5 + $0x12f8] sm:$0xff] }
 0x1cd   :  { %2742 = vmatpush1.msra.mxu1 %v554_v45  ;;  %2672 = vmatprep.subr.mxu0 %v390_v46  ;;  %v500_v44 = vld [vmem:[#allocation5 + $0xdd8] sm:$0xff]  ;;  %v499_v46 = vld [vmem:[#allocation5 + $0xdd0] sm:$0xff] }
 0x1ce   :  { %2743 = vmatprep.subr.mxu1 %v550_v47  ;;  %2673 = vmatpush1.msra.mxu0 %v389_v49  ;;  %v660_v45 = vld [vmem:[#allocation5 + $0x12d8] sm:$0xff]  ;;  %v659_v47 = vld [vmem:[#allocation5 + $0x12d0] sm:$0xff] }
 0x1cf   :  { %2744 = vmatpush1.msra.mxu1 %v549_v50  ;;  %2674 = vmatprep.subr.mxu0 %v385_v51  ;;  %v495_v49 = vld [vmem:[#allocation5 + $0xdb0] sm:$0xff]  ;;  %v494_v51 = vld [vmem:[#allocation5 + $0xda8] sm:$0xff] }
 0x1d0   :  { %2745 = vmatprep.subr.mxu1 %v545_v53  ;;  %2675 = vmatpush1.msra.mxu0 %v384_v55  ;;  %v655_v50 = vld [vmem:[#allocation5 + $0x12b0] sm:$0xff]  ;;  %v654_v53 = vld [vmem:[#allocation5 + $0x12a8] sm:$0xff] }
 0x1d1   :  { %2746 = vmatpush1.msra.mxu1 %v544_v56  ;;  %2676 = vmatprep.subr.mxu0 %v380_v58  ;;  %v490_v55 = vld [vmem:[#allocation5 + $0xd88] sm:$0xff]  ;;  %v489_v58 = vld [vmem:[#allocation5 + $0xd80] sm:$0xff] }
 0x1d2   :  { %2747 = vmatprep.subr.mxu1 %v540_v59  ;;  %2677 = vmatpush1.msra.mxu0 %v379_v60  ;;  %v650_v56 = vld [vmem:[#allocation5 + $0x1288] sm:$0xff]  ;;  %v649_v59 = vld [vmem:[#allocation5 + $0x1280] sm:$0xff] }
 0x1d3   :  { %2748 = vmatpush1.msra.mxu1 %v539_v61  ;;  %2678 = vmatprep.subr.mxu0 %v535_v63  ;;  %v485_v60 = vld [vmem:[#allocation5 + $0xd60] sm:$0xff]  ;;  %v484_v63 = vld [vmem:[#allocation5 + $0xd58] sm:$0xff] }
 0x1d4   :  { %2749 = vmatprep.subr.mxu1 %v695_v0  ;;  %2679 = vmatpush2.msra.mxu0 %v534_v1  ;;  %v645_v61 = vld [vmem:[#allocation5 + $0x1260] sm:$0xff]  ;;  %v644_v0 = vld [vmem:[#allocation5 + $0x1258] sm:$0xff] }
 0x1d5   :  { %2750 = vmatpush2.msra.mxu1 %v694_v2  ;;  %2680 = vmatprep.subr.mxu0 %v530_v4  ;;  %v480_v1 = vld [vmem:[#allocation5 + $0xd38] sm:$0xff]  ;;  %v479_v4 = vld [vmem:[#allocation5 + $0xd30] sm:$0xff] }
 0x1d6   :  { %2751 = vmatprep.subr.mxu1 %v690_v5  ;;  %2681 = vmatpush2.msra.mxu0 %v529_v6  ;;  %v640_v2 = vld [vmem:[#allocation5 + $0x1238] sm:$0xff]  ;;  %v639_v5 = vld [vmem:[#allocation5 + $0x1230] sm:$0xff] }
 0x1d7   :  { %2752 = vmatpush2.msra.mxu1 %v689_v7  ;;  %2682 = vmatprep.subr.mxu0 %v525_v10  ;;  %v475_v6 = vld [vmem:[#allocation5 + $0xd10] sm:$0xff]  ;;  %v474_v10 = vld [vmem:[#allocation5 + $0xd08] sm:$0xff] }
 0x1d8   :  { %2753 = vmatprep.subr.mxu1 %v685_v12  ;;  %2683 = vmatpush2.msra.mxu0 %v524_v13  ;;  %v635_v7 = vld [vmem:[#allocation5 + $0x1210] sm:$0xff]  ;;  %v634_v12 = vld [vmem:[#allocation5 + $0x1208] sm:$0xff] }
 0x1d9   :  { %2754 = vmatpush2.msra.mxu1 %v684_v14  ;;  %2684 = vmatprep.subr.mxu0 %v520_v17  ;;  %v470_v13 = vld [vmem:[#allocation5 + $0xce8] sm:$0xff]  ;;  %v469_v17 = vld [vmem:[#allocation5 + $0xce0] sm:$0xff] }
 0x1da   :  { %2755 = vmatprep.subr.mxu1 %v680_v18  ;;  %2685 = vmatpush2.msra.mxu0 %v519_v20  ;;  %v630_v14 = vld [vmem:[#allocation5 + $0x11e8] sm:$0xff]  ;;  %v629_v18 = vld [vmem:[#allocation5 + $0x11e0] sm:$0xff] }
 0x1db   :  { %2756 = vmatpush2.msra.mxu1 %v679_v22  ;;  %2686 = vmatprep.subr.mxu0 %v515_v24  ;;  %v465_v20 = vld [vmem:[#allocation5 + $0xcc0] sm:$0xff]  ;;  %v464_v24 = vld [vmem:[#allocation5 + $0xcb8] sm:$0xff] }
 0x1dc   :  { %2757 = vmatprep.subr.mxu1 %v675_v27  ;;  %2687 = vmatpush2.msra.mxu0 %v514_v30  ;;  %v625_v22 = vld [vmem:[#allocation5 + $0x11c0] sm:$0xff]  ;;  %v624_v27 = vld [vmem:[#allocation5 + $0x11b8] sm:$0xff] }
 0x1dd   :  { %2758 = vmatpush2.msra.mxu1 %v674_v31  ;;  %2688 = vmatprep.subr.mxu0 %v510_v33  ;;  %v460_v30 = vld [vmem:[#allocation5 + $0xc98] sm:$0xff]  ;;  %v459_v33 = vld [vmem:[#allocation5 + $0xc90] sm:$0xff] }
 0x1de   :  { %2759 = vmatprep.subr.mxu1 %v670_v34  ;;  %2689 = vmatpush2.msra.mxu0 %v509_v36  ;;  %v620_v31 = vld [vmem:[#allocation5 + $0x1198] sm:$0xff]  ;;  %v619_v34 = vld [vmem:[#allocation5 + $0x1190] sm:$0xff] }
 0x1df   :  { %2760 = vmatpush2.msra.mxu1 %v669_v37  ;;  %2690 = vmatprep.subr.mxu0 %v505_v38  ;;  %v775_v36 = vld [vmem:[#allocation5 + $0x1670] sm:$0xff]  ;;  %v774_v38 = vld [vmem:[#allocation5 + $0x1668] sm:$0xff] }
 0x1e0   :  { %2761 = vmatprep.subr.mxu1 %v665_v39  ;;  %2691 = vmatpush2.msra.mxu0 %v504_v40  ;;  %v935_v37 = vld [vmem:[#allocation5 + $0x1b70] sm:$0xff]  ;;  %v934_v39 = vld [vmem:[#allocation5 + $0x1b68] sm:$0xff] }
 0x1e1   :  { %2762 = vmatpush2.msra.mxu1 %v664_v42  ;;  %2692 = vmatprep.subr.mxu0 %v500_v44  ;;  %v770_v40 = vld [vmem:[#allocation5 + $0x1648] sm:$0xff]  ;;  %v769_v44 = vld [vmem:[#allocation5 + $0x1640] sm:$0xff] }
 0x1e2   :  { %2763 = vmatprep.subr.mxu1 %v660_v45  ;;  %2693 = vmatpush2.msra.mxu0 %v499_v46  ;;  %v930_v42 = vld [vmem:[#allocation5 + $0x1b48] sm:$0xff]  ;;  %v929_v45 = vld [vmem:[#allocation5 + $0x1b40] sm:$0xff] }
 0x1e3   :  { %2764 = vmatpush2.msra.mxu1 %v659_v47  ;;  %2694 = vmatprep.subr.mxu0 %v495_v49  ;;  %v765_v46 = vld [vmem:[#allocation5 + $0x1620] sm:$0xff]  ;;  %v764_v49 = vld [vmem:[#allocation5 + $0x1618] sm:$0xff] }
 0x1e4   :  { %2765 = vmatprep.subr.mxu1 %v655_v50  ;;  %2695 = vmatpush2.msra.mxu0 %v494_v51  ;;  %v925_v47 = vld [vmem:[#allocation5 + $0x1b20] sm:$0xff]  ;;  %v924_v50 = vld [vmem:[#allocation5 + $0x1b18] sm:$0xff] }
 0x1e5   :  { %2766 = vmatpush2.msra.mxu1 %v654_v53  ;;  %2696 = vmatprep.subr.mxu0 %v490_v55  ;;  %v760_v51 = vld [vmem:[#allocation5 + $0x15f8] sm:$0xff]  ;;  %v759_v55 = vld [vmem:[#allocation5 + $0x15f0] sm:$0xff] }
 0x1e6   :  { %2767 = vmatprep.subr.mxu1 %v650_v56  ;;  %2697 = vmatpush2.msra.mxu0 %v489_v58  ;;  %v920_v53 = vld [vmem:[#allocation5 + $0x1af8] sm:$0xff]  ;;  %v919_v56 = vld [vmem:[#allocation5 + $0x1af0] sm:$0xff] }
 0x1e7   :  { %2768 = vmatpush2.msra.mxu1 %v649_v59  ;;  %2698 = vmatprep.subr.mxu0 %v485_v60  ;;  %v755_v58 = vld [vmem:[#allocation5 + $0x15d0] sm:$0xff]  ;;  %v754_v60 = vld [vmem:[#allocation5 + $0x15c8] sm:$0xff] }
 0x1e8   :  { %2769 = vmatprep.subr.mxu1 %v645_v61  ;;  %2699 = vmatpush2.msra.mxu0 %v484_v63  ;;  %v915_v59 = vld [vmem:[#allocation5 + $0x1ad0] sm:$0xff]  ;;  %v914_v61 = vld [vmem:[#allocation5 + $0x1ac8] sm:$0xff] }
 0x1e9   :  { %2770 = vmatpush2.msra.mxu1 %v644_v0  ;;  %2700 = vmatprep.subr.mxu0 %v480_v1  ;;  %v750_v63 = vld [vmem:[#allocation5 + $0x15a8] sm:$0xff]  ;;  %v749_v1 = vld [vmem:[#allocation5 + $0x15a0] sm:$0xff] }
 0x1ea   :  { %2771 = vmatprep.subr.mxu1 %v640_v2  ;;  %2701 = vmatpush2.msra.mxu0 %v479_v4  ;;  %v910_v0 = vld [vmem:[#allocation5 + $0x1aa8] sm:$0xff]  ;;  %v909_v2 = vld [vmem:[#allocation5 + $0x1aa0] sm:$0xff] }
 0x1eb   :  { %2772 = vmatpush2.msra.mxu1 %v639_v5  ;;  %2702 = vmatprep.subr.mxu0 %v475_v6  ;;  %v745_v4 = vld [vmem:[#allocation5 + $0x1580] sm:$0xff]  ;;  %v744_v6 = vld [vmem:[#allocation5 + $0x1578] sm:$0xff] }
 0x1ec   :  { %2773 = vmatprep.subr.mxu1 %v635_v7  ;;  %2703 = vmatpush2.msra.mxu0 %v474_v10  ;;  %v905_v5 = vld [vmem:[#allocation5 + $0x1a80] sm:$0xff]  ;;  %v904_v7 = vld [vmem:[#allocation5 + $0x1a78] sm:$0xff] }
 0x1ed   :  { %2774 = vmatpush2.msra.mxu1 %v634_v12  ;;  %2704 = vmatprep.subr.mxu0 %v470_v13  ;;  %v740_v10 = vld [vmem:[#allocation5 + $0x1558] sm:$0xff]  ;;  %v739_v13 = vld [vmem:[#allocation5 + $0x1550] sm:$0xff] }
 0x1ee   :  { %2775 = vmatprep.subr.mxu1 %v630_v14  ;;  %2705 = vmatpush2.msra.mxu0 %v469_v17  ;;  %v900_v12 = vld [vmem:[#allocation5 + $0x1a58] sm:$0xff]  ;;  %v899_v14 = vld [vmem:[#allocation5 + $0x1a50] sm:$0xff] }
 0x1ef   :  { %2776 = vmatpush2.msra.mxu1 %v629_v18  ;;  %2706 = vmatprep.subr.mxu0 %v465_v20  ;;  %v735_v17 = vld [vmem:[#allocation5 + $0x1530] sm:$0xff]  ;;  %v734_v20 = vld [vmem:[#allocation5 + $0x1528] sm:$0xff] }
 0x1f0   :  { %2777 = vmatprep.subr.mxu1 %v625_v22  ;;  %2707 = vmatpush2.msra.mxu0 %v464_v24  ;;  %v895_v18 = vld [vmem:[#allocation5 + $0x1a30] sm:$0xff]  ;;  %v894_v22 = vld [vmem:[#allocation5 + $0x1a28] sm:$0xff] }
 0x1f1   :  { %2778 = vmatpush2.msra.mxu1 %v624_v27  ;;  %2708 = vmatprep.subr.mxu0 %v460_v30  ;;  %v730_v24 = vld [vmem:[#allocation5 + $0x1508] sm:$0xff]  ;;  %v729_v30 = vld [vmem:[#allocation5 + $0x1500] sm:$0xff] }
 0x1f2   :  { %2779 = vmatprep.subr.mxu1 %v620_v31  ;;  %2709 = vmatpush2.msra.mxu0 %v459_v33  ;;  %v890_v27 = vld [vmem:[#allocation5 + $0x1a08] sm:$0xff]  ;;  %v889_v31 = vld [vmem:[#allocation5 + $0x1a00] sm:$0xff] }
 0x1f3   :  { %2710 = vmatprep.mubr.f32.mxu0 %v4479_v26  ;;  %2780 = vmatpush2.msra.mxu1 %v619_v34  ;;  %v725_v33 = vld [vmem:[#allocation5 + $0x14e0] sm:$0xff] }
 0x1f4   :  { %2711 = vmatmul.mubr.f32.vlgmr.msra.gmra.mxu0 %v4472_v16  ;;  %2781 = vmatprep.mubr.f32.mxu1 %v4483_v29  ;;  %v885_v34 = vld [vmem:[#allocation5 + $0x19e0] sm:$0xff] }
 0x1f5   :  { %2788 = vmatprep.subr.mxu0 %v775_v36  ;;  %2859 = vmatprep.subr.mxu1 %v935_v37  ;;  %v724_v36 = vld [vmem:[#allocation5 + $0x14d8] sm:$0xff] }
 0x1f6   :  { %2782 = vmatmul.mubr.f32.vlgmr.msra.gmra.mxu1 %v4475_v21  ;;  %2789 = vmatpush1.msra.mxu0 %v774_v38  ;;  %v884_v37 = vld [vmem:[#allocation5 + $0x19d8] sm:$0xff] }
 0x1f7   :  { %2860 = vmatpush1.msra.mxu1 %v934_v39  ;;  %2790 = vmatprep.subr.mxu0 %v770_v40  ;;  %v720_v38 = vld [vmem:[#allocation5 + $0x14b8] sm:$0xff]  ;;  %v719_v40 = vld [vmem:[#allocation5 + $0x14b0] sm:$0xff] }
 0x1f8   :  { %2861 = vmatprep.subr.mxu1 %v930_v42  ;;  %2791 = vmatpush1.msra.mxu0 %v769_v44  ;;  %v880_v39 = vld [vmem:[#allocation5 + $0x19b8] sm:$0xff]  ;;  %v879_v42 = vld [vmem:[#allocation5 + $0x19b0] sm:$0xff] }
 0x1f9   :  { %2862 = vmatpush1.msra.mxu1 %v929_v45  ;;  %2792 = vmatprep.subr.mxu0 %v765_v46  ;;  %v715_v44 = vld [vmem:[#allocation5 + $0x1490] sm:$0xff]  ;;  %v714_v46 = vld [vmem:[#allocation5 + $0x1488] sm:$0xff] }
 0x1fa   :  { %2863 = vmatprep.subr.mxu1 %v925_v47  ;;  %2793 = vmatpush1.msra.mxu0 %v764_v49  ;;  %v875_v45 = vld [vmem:[#allocation5 + $0x1990] sm:$0xff]  ;;  %v874_v47 = vld [vmem:[#allocation5 + $0x1988] sm:$0xff] }
 0x1fb   :  { %2864 = vmatpush1.msra.mxu1 %v924_v50  ;;  %2794 = vmatprep.subr.mxu0 %v760_v51  ;;  %v710_v49 = vld [vmem:[#allocation5 + $0x1468] sm:$0xff]  ;;  %v709_v51 = vld [vmem:[#allocation5 + $0x1460] sm:$0xff] }
 0x1fc   :  { %2865 = vmatprep.subr.mxu1 %v920_v53  ;;  %2795 = vmatpush1.msra.mxu0 %v759_v55  ;;  %v870_v50 = vld [vmem:[#allocation5 + $0x1968] sm:$0xff]  ;;  %v869_v53 = vld [vmem:[#allocation5 + $0x1960] sm:$0xff] }
 0x1fd   :  { %2866 = vmatpush1.msra.mxu1 %v919_v56  ;;  %2796 = vmatprep.subr.mxu0 %v755_v58  ;;  %v705_v55 = vld [vmem:[#allocation5 + $0x1440] sm:$0xff]  ;;  %v704_v58 = vld [vmem:[#allocation5 + $0x1438] sm:$0xff] }
 0x1fe   :  { %2867 = vmatprep.subr.mxu1 %v915_v59  ;;  %2797 = vmatpush1.msra.mxu0 %v754_v60  ;;  %v865_v56 = vld [vmem:[#allocation5 + $0x1940] sm:$0xff]  ;;  %v864_v59 = vld [vmem:[#allocation5 + $0x1938] sm:$0xff] }
 0x1ff   :  { %2868 = vmatpush1.msra.mxu1 %v914_v61  ;;  %2798 = vmatprep.subr.mxu0 %v750_v63  ;;  %v700_v60 = vld [vmem:[#allocation5 + $0x1418] sm:$0xff]  ;;  %v699_v63 = vld [vmem:[#allocation5 + $0x1410] sm:$0xff] }
 0x200   :  { %2869 = vmatprep.subr.mxu1 %v910_v0  ;;  %2799 = vmatpush1.msra.mxu0 %v749_v1  ;;  %v860_v61 = vld [vmem:[#allocation5 + $0x1918] sm:$0xff]  ;;  %v859_v0 = vld [vmem:[#allocation5 + $0x1910] sm:$0xff] }
 0x201   :  { %2870 = vmatpush1.msra.mxu1 %v909_v2  ;;  %2800 = vmatprep.subr.mxu0 %v745_v4  ;;  %v855_v1 = vld [vmem:[#allocation5 + $0x18f0] sm:$0xff]  ;;  %v854_v4 = vld [vmem:[#allocation5 + $0x18e8] sm:$0xff] }
 0x202   :  { %2871 = vmatprep.subr.mxu1 %v905_v5  ;;  %2801 = vmatpush1.msra.mxu0 %v744_v6  ;;  %v1015_v2 = vld [vmem:[#allocation5 + $0x1df0] sm:$0xff]  ;;  %v1014_v5 = vld [vmem:[#allocation5 + $0x1de8] sm:$0xff] }
 0x203   :  { %2872 = vmatpush1.msra.mxu1 %v904_v7  ;;  %2802 = vmatprep.subr.mxu0 %v740_v10  ;;  %v850_v6 = vld [vmem:[#allocation5 + $0x18c8] sm:$0xff]  ;;  %v849_v10 = vld [vmem:[#allocation5 + $0x18c0] sm:$0xff] }
 0x204   :  { %2873 = vmatprep.subr.mxu1 %v900_v12  ;;  %2803 = vmatpush1.msra.mxu0 %v739_v13  ;;  %v1010_v7 = vld [vmem:[#allocation5 + $0x1dc8] sm:$0xff]  ;;  %v1009_v12 = vld [vmem:[#allocation5 + $0x1dc0] sm:$0xff] }
 0x205   :  { %2874 = vmatpush1.msra.mxu1 %v899_v14  ;;  %2804 = vmatprep.subr.mxu0 %v735_v17  ;;  %v845_v13 = vld [vmem:[#allocation5 + $0x18a0] sm:$0xff]  ;;  %v844_v17 = vld [vmem:[#allocation5 + $0x1898] sm:$0xff] }
 0x206   :  { %2875 = vmatprep.subr.mxu1 %v895_v18  ;;  %2805 = vmatpush1.msra.mxu0 %v734_v20  ;;  %v1005_v14 = vld [vmem:[#allocation5 + $0x1da0] sm:$0xff]  ;;  %v1004_v18 = vld [vmem:[#allocation5 + $0x1d98] sm:$0xff] }
 0x207   :  { %2876 = vmatpush1.msra.mxu1 %v894_v22  ;;  %2806 = vmatprep.subr.mxu0 %v730_v24  ;;  %v840_v20 = vld [vmem:[#allocation5 + $0x1878] sm:$0xff]  ;;  %v839_v24 = vld [vmem:[#allocation5 + $0x1870] sm:$0xff] }
 0x208   :  { %2877 = vmatprep.subr.mxu1 %v890_v27  ;;  %2807 = vmatpush1.msra.mxu0 %v729_v30  ;;  %v1000_v22 = vld [vmem:[#allocation5 + $0x1d78] sm:$0xff]  ;;  %v999_v27 = vld [vmem:[#allocation5 + $0x1d70] sm:$0xff] }
 0x209   :  { %2878 = vmatpush1.msra.mxu1 %v889_v31  ;;  %2808 = vmatprep.subr.mxu0 %v725_v33  ;;  %v835_v30 = vld [vmem:[#allocation5 + $0x1850] sm:$0xff]  ;;  %v834_v33 = vld [vmem:[#allocation5 + $0x1848] sm:$0xff] }
 0x20a   :  { %2879 = vmatprep.subr.mxu1 %v885_v34  ;;  %2809 = vmatpush1.msra.mxu0 %v724_v36  ;;  %v995_v31 = vld [vmem:[#allocation5 + $0x1d50] sm:$0xff]  ;;  %v994_v34 = vld [vmem:[#allocation5 + $0x1d48] sm:$0xff] }
 0x20b   :  { %2880 = vmatpush1.msra.mxu1 %v884_v37  ;;  %2810 = vmatprep.subr.mxu0 %v720_v38  ;;  %v830_v36 = vld [vmem:[#allocation5 + $0x1828] sm:$0xff]  ;;  %v829_v38 = vld [vmem:[#allocation5 + $0x1820] sm:$0xff] }
 0x20c   :  { %2881 = vmatprep.subr.mxu1 %v880_v39  ;;  %2811 = vmatpush1.msra.mxu0 %v719_v40  ;;  %v990_v37 = vld [vmem:[#allocation5 + $0x1d28] sm:$0xff]  ;;  %v989_v39 = vld [vmem:[#allocation5 + $0x1d20] sm:$0xff] }
 0x20d   :  { %2882 = vmatpush1.msra.mxu1 %v879_v42  ;;  %2812 = vmatprep.subr.mxu0 %v715_v44  ;;  %v825_v40 = vld [vmem:[#allocation5 + $0x1800] sm:$0xff]  ;;  %v824_v44 = vld [vmem:[#allocation5 + $0x17f8] sm:$0xff] }
 0x20e   :  { %2883 = vmatprep.subr.mxu1 %v875_v45  ;;  %2813 = vmatpush1.msra.mxu0 %v714_v46  ;;  %v985_v42 = vld [vmem:[#allocation5 + $0x1d00] sm:$0xff]  ;;  %v984_v45 = vld [vmem:[#allocation5 + $0x1cf8] sm:$0xff] }
 0x20f   :  { %2884 = vmatpush1.msra.mxu1 %v874_v47  ;;  %2814 = vmatprep.subr.mxu0 %v710_v49  ;;  %v820_v46 = vld [vmem:[#allocation5 + $0x17d8] sm:$0xff]  ;;  %v819_v49 = vld [vmem:[#allocation5 + $0x17d0] sm:$0xff] }
 0x210   :  { %2885 = vmatprep.subr.mxu1 %v870_v50  ;;  %2815 = vmatpush1.msra.mxu0 %v709_v51  ;;  %v980_v47 = vld [vmem:[#allocation5 + $0x1cd8] sm:$0xff]  ;;  %v979_v50 = vld [vmem:[#allocation5 + $0x1cd0] sm:$0xff] }
 0x211   :  { %2886 = vmatpush1.msra.mxu1 %v869_v53  ;;  %2816 = vmatprep.subr.mxu0 %v705_v55  ;;  %v815_v51 = vld [vmem:[#allocation5 + $0x17b0] sm:$0xff]  ;;  %v814_v55 = vld [vmem:[#allocation5 + $0x17a8] sm:$0xff] }
 0x212   :  { %2887 = vmatprep.subr.mxu1 %v865_v56  ;;  %2817 = vmatpush1.msra.mxu0 %v704_v58  ;;  %v975_v53 = vld [vmem:[#allocation5 + $0x1cb0] sm:$0xff]  ;;  %v974_v56 = vld [vmem:[#allocation5 + $0x1ca8] sm:$0xff] }
 0x213   :  { %2888 = vmatpush1.msra.mxu1 %v864_v59  ;;  %2818 = vmatprep.subr.mxu0 %v700_v60  ;;  %v810_v58 = vld [vmem:[#allocation5 + $0x1788] sm:$0xff]  ;;  %v809_v60 = vld [vmem:[#allocation5 + $0x1780] sm:$0xff] }
 0x214   :  { %2889 = vmatprep.subr.mxu1 %v860_v61  ;;  %2819 = vmatpush1.msra.mxu0 %v699_v63  ;;  %v970_v59 = vld [vmem:[#allocation5 + $0x1c88] sm:$0xff]  ;;  %v969_v61 = vld [vmem:[#allocation5 + $0x1c80] sm:$0xff] }
 0x215   :  { %2890 = vmatpush1.msra.mxu1 %v859_v0  ;;  %2820 = vmatprep.subr.mxu0 %v855_v1  ;;  %v805_v63 = vld [vmem:[#allocation5 + $0x1760] sm:$0xff]  ;;  %v804_v1 = vld [vmem:[#allocation5 + $0x1758] sm:$0xff] }
 0x216   :  { %2891 = vmatprep.subr.mxu1 %v1015_v2  ;;  %2821 = vmatpush2.msra.mxu0 %v854_v4  ;;  %v965_v0 = vld [vmem:[#allocation5 + $0x1c60] sm:$0xff]  ;;  %v964_v2 = vld [vmem:[#allocation5 + $0x1c58] sm:$0xff] }
 0x217   :  { %2892 = vmatpush2.msra.mxu1 %v1014_v5  ;;  %2822 = vmatprep.subr.mxu0 %v850_v6  ;;  %v800_v4 = vld [vmem:[#allocation5 + $0x1738] sm:$0xff]  ;;  %v799_v6 = vld [vmem:[#allocation5 + $0x1730] sm:$0xff] }
 0x218   :  { %2893 = vmatprep.subr.mxu1 %v1010_v7  ;;  %2823 = vmatpush2.msra.mxu0 %v849_v10  ;;  %v960_v5 = vld [vmem:[#allocation5 + $0x1c38] sm:$0xff]  ;;  %v959_v7 = vld [vmem:[#allocation5 + $0x1c30] sm:$0xff] }
 0x219   :  { %2894 = vmatpush2.msra.mxu1 %v1009_v12  ;;  %2824 = vmatprep.subr.mxu0 %v845_v13  ;;  %v795_v10 = vld [vmem:[#allocation5 + $0x1710] sm:$0xff]  ;;  %v794_v13 = vld [vmem:[#allocation5 + $0x1708] sm:$0xff] }
 0x21a   :  { %2895 = vmatprep.subr.mxu1 %v1005_v14  ;;  %2825 = vmatpush2.msra.mxu0 %v844_v17  ;;  %v955_v12 = vld [vmem:[#allocation5 + $0x1c10] sm:$0xff]  ;;  %v954_v14 = vld [vmem:[#allocation5 + $0x1c08] sm:$0xff] }
 0x21b   :  { %2896 = vmatpush2.msra.mxu1 %v1004_v18  ;;  %2826 = vmatprep.subr.mxu0 %v840_v20  ;;  %v790_v17 = vld [vmem:[#allocation5 + $0x16e8] sm:$0xff]  ;;  %v789_v20 = vld [vmem:[#allocation5 + $0x16e0] sm:$0xff] }
 0x21c   :  { %2897 = vmatprep.subr.mxu1 %v1000_v22  ;;  %2827 = vmatpush2.msra.mxu0 %v839_v24  ;;  %v950_v18 = vld [vmem:[#allocation5 + $0x1be8] sm:$0xff]  ;;  %v949_v22 = vld [vmem:[#allocation5 + $0x1be0] sm:$0xff] }
 0x21d   :  { %2898 = vmatpush2.msra.mxu1 %v999_v27  ;;  %2828 = vmatprep.subr.mxu0 %v835_v30  ;;  %v785_v24 = vld [vmem:[#allocation5 + $0x16c0] sm:$0xff]  ;;  %v784_v30 = vld [vmem:[#allocation5 + $0x16b8] sm:$0xff] }
 0x21e   :  { %2899 = vmatprep.subr.mxu1 %v995_v31  ;;  %2829 = vmatpush2.msra.mxu0 %v834_v33  ;;  %v945_v27 = vld [vmem:[#allocation5 + $0x1bc0] sm:$0xff]  ;;  %v944_v31 = vld [vmem:[#allocation5 + $0x1bb8] sm:$0xff] }
 0x21f   :  { %2900 = vmatpush2.msra.mxu1 %v994_v34  ;;  %2830 = vmatprep.subr.mxu0 %v830_v36  ;;  %v780_v33 = vld [vmem:[#allocation5 + $0x1698] sm:$0xff]  ;;  %v779_v36 = vld [vmem:[#allocation5 + $0x1690] sm:$0xff] }
 0x220   :  { %2901 = vmatprep.subr.mxu1 %v990_v37  ;;  %2831 = vmatpush2.msra.mxu0 %v829_v38  ;;  %v940_v34 = vld [vmem:[#allocation5 + $0x1b98] sm:$0xff]  ;;  %v939_v37 = vld [vmem:[#allocation5 + $0x1b90] sm:$0xff] }
 0x221   :  { %2902 = vmatpush2.msra.mxu1 %v989_v39  ;;  %2832 = vmatprep.subr.mxu0 %v825_v40  ;;  %v1095_v38 = vld [vmem:[#allocation5 + $0x2070] sm:$0xff]  ;;  %v1094_v40 = vld [vmem:[#allocation5 + $0x2068] sm:$0xff] }
 0x222   :  { %2903 = vmatprep.subr.mxu1 %v985_v42  ;;  %2833 = vmatpush2.msra.mxu0 %v824_v44  ;;  %v1255_v39 = vld [vmem:[#allocation5 + $0x2570] sm:$0xff]  ;;  %v1254_v42 = vld [vmem:[#allocation5 + $0x2568] sm:$0xff] }
 0x223   :  { %2904 = vmatpush2.msra.mxu1 %v984_v45  ;;  %2834 = vmatprep.subr.mxu0 %v820_v46  ;;  %v1090_v44 = vld [vmem:[#allocation5 + $0x2048] sm:$0xff]  ;;  %v1089_v46 = vld [vmem:[#allocation5 + $0x2040] sm:$0xff] }
 0x224   :  { %2905 = vmatprep.subr.mxu1 %v980_v47  ;;  %2835 = vmatpush2.msra.mxu0 %v819_v49  ;;  %v1250_v45 = vld [vmem:[#allocation5 + $0x2548] sm:$0xff]  ;;  %v1249_v47 = vld [vmem:[#allocation5 + $0x2540] sm:$0xff] }
 0x225   :  { %2906 = vmatpush2.msra.mxu1 %v979_v50  ;;  %2836 = vmatprep.subr.mxu0 %v815_v51  ;;  %v1085_v49 = vld [vmem:[#allocation5 + $0x2020] sm:$0xff]  ;;  %v1084_v51 = vld [vmem:[#allocation5 + $0x2018] sm:$0xff] }
 0x226   :  { %2907 = vmatprep.subr.mxu1 %v975_v53  ;;  %2837 = vmatpush2.msra.mxu0 %v814_v55  ;;  %v1245_v50 = vld [vmem:[#allocation5 + $0x2520] sm:$0xff]  ;;  %v1244_v53 = vld [vmem:[#allocation5 + $0x2518] sm:$0xff] }
 0x227   :  { %2908 = vmatpush2.msra.mxu1 %v974_v56  ;;  %2838 = vmatprep.subr.mxu0 %v810_v58  ;;  %v1080_v55 = vld [vmem:[#allocation5 + $0x1ff8] sm:$0xff]  ;;  %v1079_v58 = vld [vmem:[#allocation5 + $0x1ff0] sm:$0xff] }
 0x228   :  { %2909 = vmatprep.subr.mxu1 %v970_v59  ;;  %2839 = vmatpush2.msra.mxu0 %v809_v60  ;;  %v1240_v56 = vld [vmem:[#allocation5 + $0x24f8] sm:$0xff]  ;;  %v1239_v59 = vld [vmem:[#allocation5 + $0x24f0] sm:$0xff] }
 0x229   :  { %2910 = vmatpush2.msra.mxu1 %v969_v61  ;;  %2840 = vmatprep.subr.mxu0 %v805_v63  ;;  %v1075_v60 = vld [vmem:[#allocation5 + $0x1fd0] sm:$0xff]  ;;  %v1074_v63 = vld [vmem:[#allocation5 + $0x1fc8] sm:$0xff] }
 0x22a   :  { %2911 = vmatprep.subr.mxu1 %v965_v0  ;;  %2841 = vmatpush2.msra.mxu0 %v804_v1  ;;  %v1235_v61 = vld [vmem:[#allocation5 + $0x24d0] sm:$0xff]  ;;  %v1234_v0 = vld [vmem:[#allocation5 + $0x24c8] sm:$0xff] }
 0x22b   :  { %2912 = vmatpush2.msra.mxu1 %v964_v2  ;;  %2842 = vmatprep.subr.mxu0 %v800_v4  ;;  %v1070_v1 = vld [vmem:[#allocation5 + $0x1fa8] sm:$0xff]  ;;  %v1069_v4 = vld [vmem:[#allocation5 + $0x1fa0] sm:$0xff] }
 0x22c   :  { %2913 = vmatprep.subr.mxu1 %v960_v5  ;;  %2843 = vmatpush2.msra.mxu0 %v799_v6  ;;  %v1230_v2 = vld [vmem:[#allocation5 + $0x24a8] sm:$0xff]  ;;  %v1229_v5 = vld [vmem:[#allocation5 + $0x24a0] sm:$0xff] }
 0x22d   :  { %2914 = vmatpush2.msra.mxu1 %v959_v7  ;;  %2844 = vmatprep.subr.mxu0 %v795_v10  ;;  %v1065_v6 = vld [vmem:[#allocation5 + $0x1f80] sm:$0xff]  ;;  %v1064_v10 = vld [vmem:[#allocation5 + $0x1f78] sm:$0xff] }
 0x22e   :  { %2915 = vmatprep.subr.mxu1 %v955_v12  ;;  %2845 = vmatpush2.msra.mxu0 %v794_v13  ;;  %v1225_v7 = vld [vmem:[#allocation5 + $0x2480] sm:$0xff]  ;;  %v1224_v12 = vld [vmem:[#allocation5 + $0x2478] sm:$0xff] }
 0x22f   :  { %2916 = vmatpush2.msra.mxu1 %v954_v14  ;;  %2846 = vmatprep.subr.mxu0 %v790_v17  ;;  %v1060_v13 = vld [vmem:[#allocation5 + $0x1f58] sm:$0xff]  ;;  %v1059_v17 = vld [vmem:[#allocation5 + $0x1f50] sm:$0xff] }
 0x230   :  { %2917 = vmatprep.subr.mxu1 %v950_v18  ;;  %2847 = vmatpush2.msra.mxu0 %v789_v20  ;;  %v1220_v14 = vld [vmem:[#allocation5 + $0x2458] sm:$0xff]  ;;  %v1219_v18 = vld [vmem:[#allocation5 + $0x2450] sm:$0xff] }
 0x231   :  { %2918 = vmatpush2.msra.mxu1 %v949_v22  ;;  %2848 = vmatprep.subr.mxu0 %v785_v24  ;;  %v1055_v20 = vld [vmem:[#allocation5 + $0x1f30] sm:$0xff]  ;;  %v1054_v24 = vld [vmem:[#allocation5 + $0x1f28] sm:$0xff] }
 0x232   :  { %2919 = vmatprep.subr.mxu1 %v945_v27  ;;  %2849 = vmatpush2.msra.mxu0 %v784_v30  ;;  %v1215_v22 = vld [vmem:[#allocation5 + $0x2430] sm:$0xff]  ;;  %v1214_v27 = vld [vmem:[#allocation5 + $0x2428] sm:$0xff] }
 0x233   :  { %2920 = vmatpush2.msra.mxu1 %v944_v31  ;;  %2850 = vmatprep.subr.mxu0 %v780_v33  ;;  %v1050_v30 = vld [vmem:[#allocation5 + $0x1f08] sm:$0xff]  ;;  %v1049_v33 = vld [vmem:[#allocation5 + $0x1f00] sm:$0xff] }
 0x234   :  { %2921 = vmatprep.subr.mxu1 %v940_v34  ;;  %2851 = vmatpush2.msra.mxu0 %v779_v36  ;;  %v1210_v31 = vld [vmem:[#allocation5 + $0x2408] sm:$0xff]  ;;  %v1209_v34 = vld [vmem:[#allocation5 + $0x2400] sm:$0xff] }
 0x235   :  { %2852 = vmatprep.mubr.f32.mxu0 %v4497_v54  ;;  %2922 = vmatpush2.msra.mxu1 %v939_v37  ;;  %v1045_v36 = vld [vmem:[#allocation5 + $0x1ee0] sm:$0xff] }
 0x236   :  { %2853 = vmatmul.mubr.f32.vlgmr.msra.gmra.mxu0 %v4490_v43  ;;  %2923 = vmatprep.mubr.f32.mxu1 %v4501_v57  ;;  %v1205_v37 = vld [vmem:[#allocation5 + $0x23e0] sm:$0xff] }
 0x237   :  { %2930 = vmatprep.subr.mxu0 %v1095_v38  ;;  %3001 = vmatprep.subr.mxu1 %v1255_v39  ;;  %v1044_v38 = vld [vmem:[#allocation5 + $0x1ed8] sm:$0xff] }
 0x238   :  { %2924 = vmatmul.mubr.f32.vlgmr.msra.gmra.mxu1 %v4493_v48  ;;  %2931 = vmatpush1.msra.mxu0 %v1094_v40  ;;  %v1204_v39 = vld [vmem:[#allocation5 + $0x23d8] sm:$0xff] }
 0x239   :  { %3002 = vmatpush1.msra.mxu1 %v1254_v42  ;;  %2932 = vmatprep.subr.mxu0 %v1090_v44  ;;  %v1040_v40 = vld [vmem:[#allocation5 + $0x1eb8] sm:$0xff]  ;;  %v1039_v44 = vld [vmem:[#allocation5 + $0x1eb0] sm:$0xff] }
 0x23a   :  { %3003 = vmatprep.subr.mxu1 %v1250_v45  ;;  %2933 = vmatpush1.msra.mxu0 %v1089_v46  ;;  %v1200_v42 = vld [vmem:[#allocation5 + $0x23b8] sm:$0xff]  ;;  %v1199_v45 = vld [vmem:[#allocation5 + $0x23b0] sm:$0xff] }
 0x23b   :  { %3004 = vmatpush1.msra.mxu1 %v1249_v47  ;;  %2934 = vmatprep.subr.mxu0 %v1085_v49  ;;  %v1035_v46 = vld [vmem:[#allocation5 + $0x1e90] sm:$0xff]  ;;  %v1034_v49 = vld [vmem:[#allocation5 + $0x1e88] sm:$0xff] }
 0x23c   :  { %3005 = vmatprep.subr.mxu1 %v1245_v50  ;;  %2935 = vmatpush1.msra.mxu0 %v1084_v51  ;;  %v1195_v47 = vld [vmem:[#allocation5 + $0x2390] sm:$0xff]  ;;  %v1194_v50 = vld [vmem:[#allocation5 + $0x2388] sm:$0xff] }
 0x23d   :  { %3006 = vmatpush1.msra.mxu1 %v1244_v53  ;;  %2936 = vmatprep.subr.mxu0 %v1080_v55  ;;  %v1030_v51 = vld [vmem:[#allocation5 + $0x1e68] sm:$0xff]  ;;  %v1029_v55 = vld [vmem:[#allocation5 + $0x1e60] sm:$0xff] }
 0x23e   :  { %3007 = vmatprep.subr.mxu1 %v1240_v56  ;;  %2937 = vmatpush1.msra.mxu0 %v1079_v58  ;;  %v1190_v53 = vld [vmem:[#allocation5 + $0x2368] sm:$0xff]  ;;  %v1189_v56 = vld [vmem:[#allocation5 + $0x2360] sm:$0xff] }
 0x23f   :  { %3008 = vmatpush1.msra.mxu1 %v1239_v59  ;;  %2938 = vmatprep.subr.mxu0 %v1075_v60  ;;  %v1025_v58 = vld [vmem:[#allocation5 + $0x1e40] sm:$0xff]  ;;  %v1024_v60 = vld [vmem:[#allocation5 + $0x1e38] sm:$0xff] }
 0x240   :  { %3009 = vmatprep.subr.mxu1 %v1235_v61  ;;  %2939 = vmatpush1.msra.mxu0 %v1074_v63  ;;  %v1185_v59 = vld [vmem:[#allocation5 + $0x2340] sm:$0xff]  ;;  %v1184_v61 = vld [vmem:[#allocation5 + $0x2338] sm:$0xff] }
 0x241   :  { %3010 = vmatpush1.msra.mxu1 %v1234_v0  ;;  %2940 = vmatprep.subr.mxu0 %v1070_v1  ;;  %v1020_v63 = vld [vmem:[#allocation5 + $0x1e18] sm:$0xff]  ;;  %v1019_v1 = vld [vmem:[#allocation5 + $0x1e10] sm:$0xff] }
 0x242   :  { %3011 = vmatprep.subr.mxu1 %v1230_v2  ;;  %2941 = vmatpush1.msra.mxu0 %v1069_v4  ;;  %v1180_v0 = vld [vmem:[#allocation5 + $0x2318] sm:$0xff]  ;;  %v1179_v2 = vld [vmem:[#allocation5 + $0x2310] sm:$0xff] }
 0x243   :  { %3012 = vmatpush1.msra.mxu1 %v1229_v5  ;;  %2942 = vmatprep.subr.mxu0 %v1065_v6  ;;  %v1175_v4 = vld [vmem:[#allocation5 + $0x22f0] sm:$0xff]  ;;  %v1174_v6 = vld [vmem:[#allocation5 + $0x22e8] sm:$0xff] }
 0x244   :  { %3013 = vmatprep.subr.mxu1 %v1225_v7  ;;  %2943 = vmatpush1.msra.mxu0 %v1064_v10  ;;  %v1335_v5 = vld [vmem:[#allocation5 + $0x27f0] sm:$0xff]  ;;  %v1334_v7 = vld [vmem:[#allocation5 + $0x27e8] sm:$0xff] }
 0x245   :  { %3014 = vmatpush1.msra.mxu1 %v1224_v12  ;;  %2944 = vmatprep.subr.mxu0 %v1060_v13  ;;  %v1170_v10 = vld [vmem:[#allocation5 + $0x22c8] sm:$0xff]  ;;  %v1169_v13 = vld [vmem:[#allocation5 + $0x22c0] sm:$0xff] }
 0x246   :  { %3015 = vmatprep.subr.mxu1 %v1220_v14  ;;  %2945 = vmatpush1.msra.mxu0 %v1059_v17  ;;  %v1330_v12 = vld [vmem:[#allocation5 + $0x27c8] sm:$0xff]  ;;  %v1329_v14 = vld [vmem:[#allocation5 + $0x27c0] sm:$0xff] }
 0x247   :  { %3016 = vmatpush1.msra.mxu1 %v1219_v18  ;;  %2946 = vmatprep.subr.mxu0 %v1055_v20  ;;  %v1165_v17 = vld [vmem:[#allocation5 + $0x22a0] sm:$0xff]  ;;  %v1164_v20 = vld [vmem:[#allocation5 + $0x2298] sm:$0xff] }
 0x248   :  { %3017 = vmatprep.subr.mxu1 %v1215_v22  ;;  %2947 = vmatpush1.msra.mxu0 %v1054_v24  ;;  %v1325_v18 = vld [vmem:[#allocation5 + $0x27a0] sm:$0xff]  ;;  %v1324_v22 = vld [vmem:[#allocation5 + $0x2798] sm:$0xff] }
 0x249   :  { %3018 = vmatpush1.msra.mxu1 %v1214_v27  ;;  %2948 = vmatprep.subr.mxu0 %v1050_v30  ;;  %v1160_v24 = vld [vmem:[#allocation5 + $0x2278] sm:$0xff]  ;;  %v1159_v30 = vld [vmem:[#allocation5 + $0x2270] sm:$0xff] }
 0x24a   :  { %3019 = vmatprep.subr.mxu1 %v1210_v31  ;;  %2949 = vmatpush1.msra.mxu0 %v1049_v33  ;;  %v1320_v27 = vld [vmem:[#allocation5 + $0x2778] sm:$0xff]  ;;  %v1319_v31 = vld [vmem:[#allocation5 + $0x2770] sm:$0xff] }
 0x24b   :  { %3020 = vmatpush1.msra.mxu1 %v1209_v34  ;;  %2950 = vmatprep.subr.mxu0 %v1045_v36  ;;  %v1155_v33 = vld [vmem:[#allocation5 + $0x2250] sm:$0xff]  ;;  %v1154_v36 = vld [vmem:[#allocation5 + $0x2248] sm:$0xff] }
 0x24c   :  { %3021 = vmatprep.subr.mxu1 %v1205_v37  ;;  %2951 = vmatpush1.msra.mxu0 %v1044_v38  ;;  %v1315_v34 = vld [vmem:[#allocation5 + $0x2750] sm:$0xff]  ;;  %v1314_v37 = vld [vmem:[#allocation5 + $0x2748] sm:$0xff] }
 0x24d   :  { %3022 = vmatpush1.msra.mxu1 %v1204_v39  ;;  %2952 = vmatprep.subr.mxu0 %v1040_v40  ;;  %v1150_v38 = vld [vmem:[#allocation5 + $0x2228] sm:$0xff]  ;;  %v1149_v40 = vld [vmem:[#allocation5 + $0x2220] sm:$0xff] }
 0x24e   :  { %3023 = vmatprep.subr.mxu1 %v1200_v42  ;;  %2953 = vmatpush1.msra.mxu0 %v1039_v44  ;;  %v1310_v39 = vld [vmem:[#allocation5 + $0x2728] sm:$0xff]  ;;  %v1309_v42 = vld [vmem:[#allocation5 + $0x2720] sm:$0xff] }
 0x24f   :  { %3024 = vmatpush1.msra.mxu1 %v1199_v45  ;;  %2954 = vmatprep.subr.mxu0 %v1035_v46  ;;  %v1145_v44 = vld [vmem:[#allocation5 + $0x2200] sm:$0xff]  ;;  %v1144_v46 = vld [vmem:[#allocation5 + $0x21f8] sm:$0xff] }
 0x250   :  { %3025 = vmatprep.subr.mxu1 %v1195_v47  ;;  %2955 = vmatpush1.msra.mxu0 %v1034_v49  ;;  %v1305_v45 = vld [vmem:[#allocation5 + $0x2700] sm:$0xff]  ;;  %v1304_v47 = vld [vmem:[#allocation5 + $0x26f8] sm:$0xff] }
 0x251   :  { %3026 = vmatpush1.msra.mxu1 %v1194_v50  ;;  %2956 = vmatprep.subr.mxu0 %v1030_v51  ;;  %v1140_v49 = vld [vmem:[#allocation5 + $0x21d8] sm:$0xff]  ;;  %v1139_v51 = vld [vmem:[#allocation5 + $0x21d0] sm:$0xff] }
 0x252   :  { %3027 = vmatprep.subr.mxu1 %v1190_v53  ;;  %2957 = vmatpush1.msra.mxu0 %v1029_v55  ;;  %v1300_v50 = vld [vmem:[#allocation5 + $0x26d8] sm:$0xff]  ;;  %v1299_v53 = vld [vmem:[#allocation5 + $0x26d0] sm:$0xff] }
 0x253   :  { %3028 = vmatpush1.msra.mxu1 %v1189_v56  ;;  %2958 = vmatprep.subr.mxu0 %v1025_v58  ;;  %v1135_v55 = vld [vmem:[#allocation5 + $0x21b0] sm:$0xff]  ;;  %v1134_v58 = vld [vmem:[#allocation5 + $0x21a8] sm:$0xff] }
 0x254   :  { %3029 = vmatprep.subr.mxu1 %v1185_v59  ;;  %2959 = vmatpush1.msra.mxu0 %v1024_v60  ;;  %v1295_v56 = vld [vmem:[#allocation5 + $0x26b0] sm:$0xff]  ;;  %v1294_v59 = vld [vmem:[#allocation5 + $0x26a8] sm:$0xff] }
 0x255   :  { %3030 = vmatpush1.msra.mxu1 %v1184_v61  ;;  %2960 = vmatprep.subr.mxu0 %v1020_v63  ;;  %v1130_v60 = vld [vmem:[#allocation5 + $0x2188] sm:$0xff]  ;;  %v1129_v63 = vld [vmem:[#allocation5 + $0x2180] sm:$0xff] }
 0x256   :  { %3031 = vmatprep.subr.mxu1 %v1180_v0  ;;  %2961 = vmatpush1.msra.mxu0 %v1019_v1  ;;  %v1290_v61 = vld [vmem:[#allocation5 + $0x2688] sm:$0xff]  ;;  %v1289_v0 = vld [vmem:[#allocation5 + $0x2680] sm:$0xff] }
 0x257   :  { %3032 = vmatpush1.msra.mxu1 %v1179_v2  ;;  %2962 = vmatprep.subr.mxu0 %v1175_v4  ;;  %v1125_v1 = vld [vmem:[#allocation5 + $0x2160] sm:$0xff]  ;;  %v1124_v4 = vld [vmem:[#allocation5 + $0x2158] sm:$0xff] }
 0x258   :  { %3033 = vmatprep.subr.mxu1 %v1335_v5  ;;  %2963 = vmatpush2.msra.mxu0 %v1174_v6  ;;  %v1285_v2 = vld [vmem:[#allocation5 + $0x2660] sm:$0xff]  ;;  %v1284_v5 = vld [vmem:[#allocation5 + $0x2658] sm:$0xff] }
 0x259   :  { %3034 = vmatpush2.msra.mxu1 %v1334_v7  ;;  %2964 = vmatprep.subr.mxu0 %v1170_v10  ;;  %v1120_v6 = vld [vmem:[#allocation5 + $0x2138] sm:$0xff]  ;;  %v1119_v10 = vld [vmem:[#allocation5 + $0x2130] sm:$0xff] }
 0x25a   :  { %3035 = vmatprep.subr.mxu1 %v1330_v12  ;;  %2965 = vmatpush2.msra.mxu0 %v1169_v13  ;;  %v1280_v7 = vld [vmem:[#allocation5 + $0x2638] sm:$0xff]  ;;  %v1279_v12 = vld [vmem:[#allocation5 + $0x2630] sm:$0xff] }
 0x25b   :  { %3036 = vmatpush2.msra.mxu1 %v1329_v14  ;;  %2966 = vmatprep.subr.mxu0 %v1165_v17  ;;  %v1115_v13 = vld [vmem:[#allocation5 + $0x2110] sm:$0xff]  ;;  %v1114_v17 = vld [vmem:[#allocation5 + $0x2108] sm:$0xff] }
 0x25c   :  { %3037 = vmatprep.subr.mxu1 %v1325_v18  ;;  %2967 = vmatpush2.msra.mxu0 %v1164_v20  ;;  %v1275_v14 = vld [vmem:[#allocation5 + $0x2610] sm:$0xff]  ;;  %v1274_v18 = vld [vmem:[#allocation5 + $0x2608] sm:$0xff] }
 0x25d   :  { %3038 = vmatpush2.msra.mxu1 %v1324_v22  ;;  %2968 = vmatprep.subr.mxu0 %v1160_v24  ;;  %v1110_v20 = vld [vmem:[#allocation5 + $0x20e8] sm:$0xff]  ;;  %v1109_v24 = vld [vmem:[#allocation5 + $0x20e0] sm:$0xff] }
 0x25e   :  { %3039 = vmatprep.subr.mxu1 %v1320_v27  ;;  %2969 = vmatpush2.msra.mxu0 %v1159_v30  ;;  %v1270_v22 = vld [vmem:[#allocation5 + $0x25e8] sm:$0xff]  ;;  %v1269_v27 = vld [vmem:[#allocation5 + $0x25e0] sm:$0xff] }
 0x25f   :  { %3040 = vmatpush2.msra.mxu1 %v1319_v31  ;;  %2970 = vmatprep.subr.mxu0 %v1155_v33  ;;  %v1105_v30 = vld [vmem:[#allocation5 + $0x20c0] sm:$0xff]  ;;  %v1104_v33 = vld [vmem:[#allocation5 + $0x20b8] sm:$0xff] }
 0x260   :  { %3041 = vmatprep.subr.mxu1 %v1315_v34  ;;  %2971 = vmatpush2.msra.mxu0 %v1154_v36  ;;  %v1265_v31 = vld [vmem:[#allocation5 + $0x25c0] sm:$0xff]  ;;  %v1264_v34 = vld [vmem:[#allocation5 + $0x25b8] sm:$0xff] }
 0x261   :  { %3042 = vmatpush2.msra.mxu1 %v1314_v37  ;;  %2972 = vmatprep.subr.mxu0 %v1150_v38  ;;  %v1100_v36 = vld [vmem:[#allocation5 + $0x2098] sm:$0xff]  ;;  %v1099_v38 = vld [vmem:[#allocation5 + $0x2090] sm:$0xff] }
 0x262   :  { %3043 = vmatprep.subr.mxu1 %v1310_v39  ;;  %2973 = vmatpush2.msra.mxu0 %v1149_v40  ;;  %v1260_v37 = vld [vmem:[#allocation5 + $0x2598] sm:$0xff]  ;;  %v1259_v39 = vld [vmem:[#allocation5 + $0x2590] sm:$0xff] }
 0x263   :  { %3044 = vmatpush2.msra.mxu1 %v1309_v42  ;;  %2974 = vmatprep.subr.mxu0 %v1145_v44  ;;  %v1415_v40 = vld [vmem:[#allocation5 + $0x2a70] sm:$0xff]  ;;  %v1414_v44 = vld [vmem:[#allocation5 + $0x2a68] sm:$0xff] }
 0x264   :  { %3045 = vmatprep.subr.mxu1 %v1305_v45  ;;  %2975 = vmatpush2.msra.mxu0 %v1144_v46  ;;  %v1575_v42 = vld [vmem:[#allocation5 + $0x2f70] sm:$0xff]  ;;  %v1574_v45 = vld [vmem:[#allocation5 + $0x2f68] sm:$0xff] }
 0x265   :  { %3046 = vmatpush2.msra.mxu1 %v1304_v47  ;;  %2976 = vmatprep.subr.mxu0 %v1140_v49  ;;  %v1410_v46 = vld [vmem:[#allocation5 + $0x2a48] sm:$0xff]  ;;  %v1409_v49 = vld [vmem:[#allocation5 + $0x2a40] sm:$0xff] }
 0x266   :  { %3047 = vmatprep.subr.mxu1 %v1300_v50  ;;  %2977 = vmatpush2.msra.mxu0 %v1139_v51  ;;  %v1570_v47 = vld [vmem:[#allocation5 + $0x2f48] sm:$0xff]  ;;  %v1569_v50 = vld [vmem:[#allocation5 + $0x2f40] sm:$0xff] }
 0x267   :  { %3048 = vmatpush2.msra.mxu1 %v1299_v53  ;;  %2978 = vmatprep.subr.mxu0 %v1135_v55  ;;  %v1405_v51 = vld [vmem:[#allocation5 + $0x2a20] sm:$0xff]  ;;  %v1404_v55 = vld [vmem:[#allocation5 + $0x2a18] sm:$0xff] }
 0x268   :  { %3049 = vmatprep.subr.mxu1 %v1295_v56  ;;  %2979 = vmatpush2.msra.mxu0 %v1134_v58  ;;  %v1565_v53 = vld [vmem:[#allocation5 + $0x2f20] sm:$0xff]  ;;  %v1564_v56 = vld [vmem:[#allocation5 + $0x2f18] sm:$0xff] }
 0x269   :  { %3050 = vmatpush2.msra.mxu1 %v1294_v59  ;;  %2980 = vmatprep.subr.mxu0 %v1130_v60  ;;  %v1400_v58 = vld [vmem:[#allocation5 + $0x29f8] sm:$0xff]  ;;  %v1399_v60 = vld [vmem:[#allocation5 + $0x29f0] sm:$0xff] }
 0x26a   :  { %3051 = vmatprep.subr.mxu1 %v1290_v61  ;;  %2981 = vmatpush2.msra.mxu0 %v1129_v63  ;;  %v1560_v59 = vld [vmem:[#allocation5 + $0x2ef8] sm:$0xff]  ;;  %v1559_v61 = vld [vmem:[#allocation5 + $0x2ef0] sm:$0xff] }
 0x26b   :  { %3052 = vmatpush2.msra.mxu1 %v1289_v0  ;;  %2982 = vmatprep.subr.mxu0 %v1125_v1  ;;  %v1395_v63 = vld [vmem:[#allocation5 + $0x29d0] sm:$0xff]  ;;  %v1394_v1 = vld [vmem:[#allocation5 + $0x29c8] sm:$0xff] }
 0x26c   :  { %3053 = vmatprep.subr.mxu1 %v1285_v2  ;;  %2983 = vmatpush2.msra.mxu0 %v1124_v4  ;;  %v1555_v0 = vld [vmem:[#allocation5 + $0x2ed0] sm:$0xff]  ;;  %v1554_v2 = vld [vmem:[#allocation5 + $0x2ec8] sm:$0xff] }
 0x26d   :  { %3054 = vmatpush2.msra.mxu1 %v1284_v5  ;;  %2984 = vmatprep.subr.mxu0 %v1120_v6  ;;  %v1390_v4 = vld [vmem:[#allocation5 + $0x29a8] sm:$0xff]  ;;  %v1389_v6 = vld [vmem:[#allocation5 + $0x29a0] sm:$0xff] }
 0x26e   :  { %3055 = vmatprep.subr.mxu1 %v1280_v7  ;;  %2985 = vmatpush2.msra.mxu0 %v1119_v10  ;;  %v1550_v5 = vld [vmem:[#allocation5 + $0x2ea8] sm:$0xff]  ;;  %v1549_v7 = vld [vmem:[#allocation5 + $0x2ea0] sm:$0xff] }
 0x26f   :  { %3056 = vmatpush2.msra.mxu1 %v1279_v12  ;;  %2986 = vmatprep.subr.mxu0 %v1115_v13  ;;  %v1385_v10 = vld [vmem:[#allocation5 + $0x2980] sm:$0xff]  ;;  %v1384_v13 = vld [vmem:[#allocation5 + $0x2978] sm:$0xff] }
 0x270   :  { %3057 = vmatprep.subr.mxu1 %v1275_v14  ;;  %2987 = vmatpush2.msra.mxu0 %v1114_v17  ;;  %v1545_v12 = vld [vmem:[#allocation5 + $0x2e80] sm:$0xff]  ;;  %v1544_v14 = vld [vmem:[#allocation5 + $0x2e78] sm:$0xff] }
 0x271   :  { %3058 = vmatpush2.msra.mxu1 %v1274_v18  ;;  %2988 = vmatprep.subr.mxu0 %v1110_v20  ;;  %v1380_v17 = vld [vmem:[#allocation5 + $0x2958] sm:$0xff]  ;;  %v1379_v20 = vld [vmem:[#allocation5 + $0x2950] sm:$0xff] }
 0x272   :  { %3059 = vmatprep.subr.mxu1 %v1270_v22  ;;  %2989 = vmatpush2.msra.mxu0 %v1109_v24  ;;  %v1540_v18 = vld [vmem:[#allocation5 + $0x2e58] sm:$0xff]  ;;  %v1539_v22 = vld [vmem:[#allocation5 + $0x2e50] sm:$0xff] }
 0x273   :  { %3060 = vmatpush2.msra.mxu1 %v1269_v27  ;;  %2990 = vmatprep.subr.mxu0 %v1105_v30  ;;  %v1375_v24 = vld [vmem:[#allocation5 + $0x2930] sm:$0xff]  ;;  %v1374_v30 = vld [vmem:[#allocation5 + $0x2928] sm:$0xff] }
 0x274   :  { %3061 = vmatprep.subr.mxu1 %v1265_v31  ;;  %2991 = vmatpush2.msra.mxu0 %v1104_v33  ;;  %v1535_v27 = vld [vmem:[#allocation5 + $0x2e30] sm:$0xff]  ;;  %v1534_v31 = vld [vmem:[#allocation5 + $0x2e28] sm:$0xff] }
 0x275   :  { %3062 = vmatpush2.msra.mxu1 %v1264_v34  ;;  %2992 = vmatprep.subr.mxu0 %v1100_v36  ;;  %v1370_v33 = vld [vmem:[#allocation5 + $0x2908] sm:$0xff]  ;;  %v1369_v36 = vld [vmem:[#allocation5 + $0x2900] sm:$0xff] }
 0x276   :  { %3063 = vmatprep.subr.mxu1 %v1260_v37  ;;  %2993 = vmatpush2.msra.mxu0 %v1099_v38  ;;  %v1530_v34 = vld [vmem:[#allocation5 + $0x2e08] sm:$0xff]  ;;  %v1529_v37 = vld [vmem:[#allocation5 + $0x2e00] sm:$0xff] }
 0x277   :  { %2994 = vmatprep.mubr.f32.mxu0 %v4515_v32  ;;  %3064 = vmatpush2.msra.mxu1 %v1259_v39  ;;  %v1365_v38 = vld [vmem:[#allocation5 + $0x28e0] sm:$0xff] }
 0x278   :  { %2995 = vmatmul.mubr.f32.vlgmr.msra.gmra.mxu0 %v4508_v19  ;;  %3065 = vmatprep.mubr.f32.mxu1 %v4519_v35  ;;  %v1525_v39 = vld [vmem:[#allocation5 + $0x2de0] sm:$0xff] }
 0x279   :  { %3072 = vmatprep.subr.mxu0 %v1415_v40  ;;  %3143 = vmatprep.subr.mxu1 %v1575_v42  ;;  %v1364_v40 = vld [vmem:[#allocation5 + $0x28d8] sm:$0xff] }
 0x27a   :  { %3066 = vmatmul.mubr.f32.vlgmr.msra.gmra.mxu1 %v4511_v25  ;;  %3073 = vmatpush1.msra.mxu0 %v1414_v44  ;;  %v1524_v42 = vld [vmem:[#allocation5 + $0x2dd8] sm:$0xff] }
 0x27b   :  { %3144 = vmatpush1.msra.mxu1 %v1574_v45  ;;  %3074 = vmatprep.subr.mxu0 %v1410_v46  ;;  %v1360_v44 = vld [vmem:[#allocation5 + $0x28b8] sm:$0xff]  ;;  %v1359_v46 = vld [vmem:[#allocation5 + $0x28b0] sm:$0xff] }
 0x27c   :  { %3145 = vmatprep.subr.mxu1 %v1570_v47  ;;  %3075 = vmatpush1.msra.mxu0 %v1409_v49  ;;  %v1520_v45 = vld [vmem:[#allocation5 + $0x2db8] sm:$0xff]  ;;  %v1519_v47 = vld [vmem:[#allocation5 + $0x2db0] sm:$0xff] }
 0x27d   :  { %3146 = vmatpush1.msra.mxu1 %v1569_v50  ;;  %3076 = vmatprep.subr.mxu0 %v1405_v51  ;;  %v1355_v49 = vld [vmem:[#allocation5 + $0x2890] sm:$0xff]  ;;  %v1354_v51 = vld [vmem:[#allocation5 + $0x2888] sm:$0xff] }
 0x27e   :  { %3147 = vmatprep.subr.mxu1 %v1565_v53  ;;  %3077 = vmatpush1.msra.mxu0 %v1404_v55  ;;  %v1515_v50 = vld [vmem:[#allocation5 + $0x2d90] sm:$0xff]  ;;  %v1514_v53 = vld [vmem:[#allocation5 + $0x2d88] sm:$0xff] }
 0x27f   :  { %3148 = vmatpush1.msra.mxu1 %v1564_v56  ;;  %3078 = vmatprep.subr.mxu0 %v1400_v58  ;;  %v1350_v55 = vld [vmem:[#allocation5 + $0x2868] sm:$0xff]  ;;  %v1349_v58 = vld [vmem:[#allocation5 + $0x2860] sm:$0xff] }
 0x280   :  { %3149 = vmatprep.subr.mxu1 %v1560_v59  ;;  %3079 = vmatpush1.msra.mxu0 %v1399_v60  ;;  %v1510_v56 = vld [vmem:[#allocation5 + $0x2d68] sm:$0xff]  ;;  %v1509_v59 = vld [vmem:[#allocation5 + $0x2d60] sm:$0xff] }
 0x281   :  { %3150 = vmatpush1.msra.mxu1 %v1559_v61  ;;  %3080 = vmatprep.subr.mxu0 %v1395_v63  ;;  %v1345_v60 = vld [vmem:[#allocation5 + $0x2840] sm:$0xff]  ;;  %v1344_v63 = vld [vmem:[#allocation5 + $0x2838] sm:$0xff] }
 0x282   :  { %3151 = vmatprep.subr.mxu1 %v1555_v0  ;;  %3081 = vmatpush1.msra.mxu0 %v1394_v1  ;;  %v1505_v61 = vld [vmem:[#allocation5 + $0x2d40] sm:$0xff]  ;;  %v1504_v0 = vld [vmem:[#allocation5 + $0x2d38] sm:$0xff] }
 0x283   :  { %3152 = vmatpush1.msra.mxu1 %v1554_v2  ;;  %3082 = vmatprep.subr.mxu0 %v1390_v4  ;;  %v1340_v1 = vld [vmem:[#allocation5 + $0x2818] sm:$0xff]  ;;  %v1339_v4 = vld [vmem:[#allocation5 + $0x2810] sm:$0xff] }
 0x284   :  { %3153 = vmatprep.subr.mxu1 %v1550_v5  ;;  %3083 = vmatpush1.msra.mxu0 %v1389_v6  ;;  %v1500_v2 = vld [vmem:[#allocation5 + $0x2d18] sm:$0xff]  ;;  %v1499_v5 = vld [vmem:[#allocation5 + $0x2d10] sm:$0xff] }
 0x285   :  { %3154 = vmatpush1.msra.mxu1 %v1549_v7  ;;  %3084 = vmatprep.subr.mxu0 %v1385_v10  ;;  %v1495_v6 = vld [vmem:[#allocation5 + $0x2cf0] sm:$0xff]  ;;  %v1494_v10 = vld [vmem:[#allocation5 + $0x2ce8] sm:$0xff] }
 0x286   :  { %3155 = vmatprep.subr.mxu1 %v1545_v12  ;;  %3085 = vmatpush1.msra.mxu0 %v1384_v13  ;;  %v1655_v7 = vld [vmem:[#allocation5 + $0x31f0] sm:$0xff]  ;;  %v1654_v12 = vld [vmem:[#allocation5 + $0x31e8] sm:$0xff] }
 0x287   :  { %3156 = vmatpush1.msra.mxu1 %v1544_v14  ;;  %3086 = vmatprep.subr.mxu0 %v1380_v17  ;;  %v1490_v13 = vld [vmem:[#allocation5 + $0x2cc8] sm:$0xff]  ;;  %v1489_v17 = vld [vmem:[#allocation5 + $0x2cc0] sm:$0xff] }
 0x288   :  { %3157 = vmatprep.subr.mxu1 %v1540_v18  ;;  %3087 = vmatpush1.msra.mxu0 %v1379_v20  ;;  %v1650_v14 = vld [vmem:[#allocation5 + $0x31c8] sm:$0xff]  ;;  %v1649_v18 = vld [vmem:[#allocation5 + $0x31c0] sm:$0xff] }
 0x289   :  { %3158 = vmatpush1.msra.mxu1 %v1539_v22  ;;  %3088 = vmatprep.subr.mxu0 %v1375_v24  ;;  %v1485_v20 = vld [vmem:[#allocation5 + $0x2ca0] sm:$0xff]  ;;  %v1484_v24 = vld [vmem:[#allocation5 + $0x2c98] sm:$0xff] }
 0x28a   :  { %3159 = vmatprep.subr.mxu1 %v1535_v27  ;;  %3089 = vmatpush1.msra.mxu0 %v1374_v30  ;;  %v1645_v22 = vld [vmem:[#allocation5 + $0x31a0] sm:$0xff]  ;;  %v1644_v27 = vld [vmem:[#allocation5 + $0x3198] sm:$0xff] }
 0x28b   :  { %3160 = vmatpush1.msra.mxu1 %v1534_v31  ;;  %3090 = vmatprep.subr.mxu0 %v1370_v33  ;;  %v1480_v30 = vld [vmem:[#allocation5 + $0x2c78] sm:$0xff]  ;;  %v1479_v33 = vld [vmem:[#allocation5 + $0x2c70] sm:$0xff] }
 0x28c   :  { %3161 = vmatprep.subr.mxu1 %v1530_v34  ;;  %3091 = vmatpush1.msra.mxu0 %v1369_v36  ;;  %v1640_v31 = vld [vmem:[#allocation5 + $0x3178] sm:$0xff]  ;;  %v1639_v34 = vld [vmem:[#allocation5 + $0x3170] sm:$0xff] }
 0x28d   :  { %3162 = vmatpush1.msra.mxu1 %v1529_v37  ;;  %3092 = vmatprep.subr.mxu0 %v1365_v38  ;;  %v1475_v36 = vld [vmem:[#allocation5 + $0x2c50] sm:$0xff]  ;;  %v1474_v38 = vld [vmem:[#allocation5 + $0x2c48] sm:$0xff] }
 0x28e   :  { %3163 = vmatprep.subr.mxu1 %v1525_v39  ;;  %3093 = vmatpush1.msra.mxu0 %v1364_v40  ;;  %v1635_v37 = vld [vmem:[#allocation5 + $0x3150] sm:$0xff]  ;;  %v1634_v39 = vld [vmem:[#allocation5 + $0x3148] sm:$0xff] }
 0x28f   :  { %3164 = vmatpush1.msra.mxu1 %v1524_v42  ;;  %3094 = vmatprep.subr.mxu0 %v1360_v44  ;;  %v1470_v40 = vld [vmem:[#allocation5 + $0x2c28] sm:$0xff]  ;;  %v1469_v44 = vld [vmem:[#allocation5 + $0x2c20] sm:$0xff] }
 0x290   :  { %3165 = vmatprep.subr.mxu1 %v1520_v45  ;;  %3095 = vmatpush1.msra.mxu0 %v1359_v46  ;;  %v1630_v42 = vld [vmem:[#allocation5 + $0x3128] sm:$0xff]  ;;  %v1629_v45 = vld [vmem:[#allocation5 + $0x3120] sm:$0xff] }
 0x291   :  { %3166 = vmatpush1.msra.mxu1 %v1519_v47  ;;  %3096 = vmatprep.subr.mxu0 %v1355_v49  ;;  %v1465_v46 = vld [vmem:[#allocation5 + $0x2c00] sm:$0xff]  ;;  %v1464_v49 = vld [vmem:[#allocation5 + $0x2bf8] sm:$0xff] }
 0x292   :  { %3167 = vmatprep.subr.mxu1 %v1515_v50  ;;  %3097 = vmatpush1.msra.mxu0 %v1354_v51  ;;  %v1625_v47 = vld [vmem:[#allocation5 + $0x3100] sm:$0xff]  ;;  %v1624_v50 = vld [vmem:[#allocation5 + $0x30f8] sm:$0xff] }
 0x293   :  { %3168 = vmatpush1.msra.mxu1 %v1514_v53  ;;  %3098 = vmatprep.subr.mxu0 %v1350_v55  ;;  %v1460_v51 = vld [vmem:[#allocation5 + $0x2bd8] sm:$0xff]  ;;  %v1459_v55 = vld [vmem:[#allocation5 + $0x2bd0] sm:$0xff] }
 0x294   :  { %3169 = vmatprep.subr.mxu1 %v1510_v56  ;;  %3099 = vmatpush1.msra.mxu0 %v1349_v58  ;;  %v1620_v53 = vld [vmem:[#allocation5 + $0x30d8] sm:$0xff]  ;;  %v1619_v56 = vld [vmem:[#allocation5 + $0x30d0] sm:$0xff] }
 0x295   :  { %3170 = vmatpush1.msra.mxu1 %v1509_v59  ;;  %3100 = vmatprep.subr.mxu0 %v1345_v60  ;;  %v1455_v58 = vld [vmem:[#allocation5 + $0x2bb0] sm:$0xff]  ;;  %v1454_v60 = vld [vmem:[#allocation5 + $0x2ba8] sm:$0xff] }
 0x296   :  { %3171 = vmatprep.subr.mxu1 %v1505_v61  ;;  %3101 = vmatpush1.msra.mxu0 %v1344_v63  ;;  %v1615_v59 = vld [vmem:[#allocation5 + $0x30b0] sm:$0xff]  ;;  %v1614_v61 = vld [vmem:[#allocation5 + $0x30a8] sm:$0xff] }
 0x297   :  { %3172 = vmatpush1.msra.mxu1 %v1504_v0  ;;  %3102 = vmatprep.subr.mxu0 %v1340_v1  ;;  %v1450_v63 = vld [vmem:[#allocation5 + $0x2b88] sm:$0xff]  ;;  %v1449_v1 = vld [vmem:[#allocation5 + $0x2b80] sm:$0xff] }
 0x298   :  { %3173 = vmatprep.subr.mxu1 %v1500_v2  ;;  %3103 = vmatpush1.msra.mxu0 %v1339_v4  ;;  %v1610_v0 = vld [vmem:[#allocation5 + $0x3088] sm:$0xff]  ;;  %v1609_v2 = vld [vmem:[#allocation5 + $0x3080] sm:$0xff] }
 0x299   :  { %3174 = vmatpush1.msra.mxu1 %v1499_v5  ;;  %3104 = vmatprep.subr.mxu0 %v1495_v6  ;;  %v1445_v4 = vld [vmem:[#allocation5 + $0x2b60] sm:$0xff]  ;;  %v1444_v6 = vld [vmem:[#allocation5 + $0x2b58] sm:$0xff] }
 0x29a   :  { %3175 = vmatprep.subr.mxu1 %v1655_v7  ;;  %3105 = vmatpush2.msra.mxu0 %v1494_v10  ;;  %v1605_v5 = vld [vmem:[#allocation5 + $0x3060] sm:$0xff]  ;;  %v1604_v7 = vld [vmem:[#allocation5 + $0x3058] sm:$0xff] }
 0x29b   :  { %3176 = vmatpush2.msra.mxu1 %v1654_v12  ;;  %3106 = vmatprep.subr.mxu0 %v1490_v13  ;;  %v1440_v10 = vld [vmem:[#allocation5 + $0x2b38] sm:$0xff]  ;;  %v1439_v13 = vld [vmem:[#allocation5 + $0x2b30] sm:$0xff] }
 0x29c   :  { %3177 = vmatprep.subr.mxu1 %v1650_v14  ;;  %3107 = vmatpush2.msra.mxu0 %v1489_v17  ;;  %v1600_v12 = vld [vmem:[#allocation5 + $0x3038] sm:$0xff]  ;;  %v1599_v14 = vld [vmem:[#allocation5 + $0x3030] sm:$0xff] }
 0x29d   :  { %3178 = vmatpush2.msra.mxu1 %v1649_v18  ;;  %3108 = vmatprep.subr.mxu0 %v1485_v20  ;;  %v1435_v17 = vld [vmem:[#allocation5 + $0x2b10] sm:$0xff]  ;;  %v1434_v20 = vld [vmem:[#allocation5 + $0x2b08] sm:$0xff] }
 0x29e   :  { %3179 = vmatprep.subr.mxu1 %v1645_v22  ;;  %3109 = vmatpush2.msra.mxu0 %v1484_v24  ;;  %v1595_v18 = vld [vmem:[#allocation5 + $0x3010] sm:$0xff]  ;;  %v1594_v22 = vld [vmem:[#allocation5 + $0x3008] sm:$0xff] }
 0x29f   :  { %3180 = vmatpush2.msra.mxu1 %v1644_v27  ;;  %3110 = vmatprep.subr.mxu0 %v1480_v30  ;;  %v1430_v24 = vld [vmem:[#allocation5 + $0x2ae8] sm:$0xff]  ;;  %v1429_v30 = vld [vmem:[#allocation5 + $0x2ae0] sm:$0xff] }
 0x2a0   :  { %3181 = vmatprep.subr.mxu1 %v1640_v31  ;;  %3111 = vmatpush2.msra.mxu0 %v1479_v33  ;;  %v1590_v27 = vld [vmem:[#allocation5 + $0x2fe8] sm:$0xff]  ;;  %v1589_v31 = vld [vmem:[#allocation5 + $0x2fe0] sm:$0xff] }
 0x2a1   :  { %3182 = vmatpush2.msra.mxu1 %v1639_v34  ;;  %3112 = vmatprep.subr.mxu0 %v1475_v36  ;;  %v1425_v33 = vld [vmem:[#allocation5 + $0x2ac0] sm:$0xff]  ;;  %v1424_v36 = vld [vmem:[#allocation5 + $0x2ab8] sm:$0xff] }
 0x2a2   :  { %3183 = vmatprep.subr.mxu1 %v1635_v37  ;;  %3113 = vmatpush2.msra.mxu0 %v1474_v38  ;;  %v1585_v34 = vld [vmem:[#allocation5 + $0x2fc0] sm:$0xff]  ;;  %v1584_v37 = vld [vmem:[#allocation5 + $0x2fb8] sm:$0xff] }
 0x2a3   :  { %3184 = vmatpush2.msra.mxu1 %v1634_v39  ;;  %3114 = vmatprep.subr.mxu0 %v1470_v40  ;;  %v1420_v38 = vld [vmem:[#allocation5 + $0x2a98] sm:$0xff]  ;;  %v1419_v40 = vld [vmem:[#allocation5 + $0x2a90] sm:$0xff] }
 0x2a4   :  { %3185 = vmatprep.subr.mxu1 %v1630_v42  ;;  %3115 = vmatpush2.msra.mxu0 %v1469_v44  ;;  %v1580_v39 = vld [vmem:[#allocation5 + $0x2f98] sm:$0xff]  ;;  %v1579_v42 = vld [vmem:[#allocation5 + $0x2f90] sm:$0xff] }
 0x2a5   :  { %3186 = vmatpush2.msra.mxu1 %v1629_v45  ;;  %3116 = vmatprep.subr.mxu0 %v1465_v46  ;;  %v216_v44 = vld [vmem:[#allocation5 + $0x4f8] sm:$0xff] }
 0x2a6   :  { %3187 = vmatprep.subr.mxu1 %v1625_v47  ;;  %3117 = vmatpush2.msra.mxu0 %v1464_v49  ;;  %v376_v45 = vld [vmem:[#allocation5 + $0x9f8] sm:$0xff]  ;;  %v211_v49 = vld [vmem:[#allocation5 + $0x4d0] sm:$0xff] }
 0x2a7   :  { %3188 = vmatpush2.msra.mxu1 %v1624_v50  ;;  %3118 = vmatprep.subr.mxu0 %v1460_v51  ;;  %v136_v46 = vld [vmem:[#allocation5 + $0x278] sm:$0xff]  ;;  %v371_v50 = vld [vmem:[#allocation5 + $0x9d0] sm:$0xff] }
 0x2a8   :  { %3189 = vmatprep.subr.mxu1 %v1620_v53  ;;  %3119 = vmatpush2.msra.mxu0 %v1459_v55  ;;  %v296_v47 = vld [vmem:[#allocation5 + $0x778] sm:$0xff]  ;;  %v131_v51 = vld [vmem:[#allocation5 + $0x250] sm:$0xff]  ;;  %v206_v55 = vld [vmem:[#allocation5 + $0x4a8] sm:$0xff] }
 0x2a9   :  { %3190 = vmatpush2.msra.mxu1 %v1619_v56  ;;  %3120 = vmatprep.subr.mxu0 %v1455_v58  ;;  %v291_v53 = vld [vmem:[#allocation5 + $0x750] sm:$0xff]  ;;  %v366_v56 = vld [vmem:[#allocation5 + $0x9a8] sm:$0xff] }
 0x2aa   :  { %3191 = vmatprep.subr.mxu1 %v1615_v59  ;;  %3121 = vmatpush2.msra.mxu0 %v1454_v60  ;;  %v126_v58 = vld [vmem:[#allocation5 + $0x228] sm:$0xff]  ;;  %v201_v60 = vld [vmem:[#allocation5 + $0x480] sm:$0xff] }
 0x2ab   :  { %3192 = vmatpush2.msra.mxu1 %v1614_v61  ;;  %3122 = vmatprep.subr.mxu0 %v1450_v63  ;;  %v286_v59 = vld [vmem:[#allocation5 + $0x728] sm:$0xff]  ;;  %v361_v61 = vld [vmem:[#allocation5 + $0x980] sm:$0xff] }
 0x2ac   :  { %3193 = vmatprep.subr.mxu1 %v1610_v0  ;;  %3123 = vmatpush2.msra.mxu0 %v1449_v1  ;;  %v121_v63 = vld [vmem:[#allocation5 + $0x200] sm:$0xff]  ;;  %v196_v1 = vld [vmem:[#allocation5 + $0x458] sm:$0xff] }
 0x2ad   :  { %3194 = vmatpush2.msra.mxu1 %v1609_v2  ;;  %3124 = vmatprep.subr.mxu0 %v1445_v4  ;;  %v281_v0 = vld [vmem:[#allocation5 + $0x700] sm:$0xff]  ;;  %v356_v2 = vld [vmem:[#allocation5 + $0x958] sm:$0xff] }
 0x2ae   :  { %3195 = vmatprep.subr.mxu1 %v1605_v5  ;;  %3125 = vmatpush2.msra.mxu0 %v1444_v6  ;;  %v116_v4 = vld [vmem:[#allocation5 + $0x1d8] sm:$0xff]  ;;  %v191_v6 = vld [vmem:[#allocation5 + $0x430] sm:$0xff] }
 0x2af   :  { %3196 = vmatpush2.msra.mxu1 %v1604_v7  ;;  %3126 = vmatprep.subr.mxu0 %v1440_v10  ;;  %v276_v5 = vld [vmem:[#allocation5 + $0x6d8] sm:$0xff]  ;;  %v351_v7 = vld [vmem:[#allocation5 + $0x930] sm:$0xff] }
 0x2b0   :  { %3197 = vmatprep.subr.mxu1 %v1600_v12  ;;  %3127 = vmatpush2.msra.mxu0 %v1439_v13  ;;  %v111_v10 = vld [vmem:[#allocation5 + $0x1b0] sm:$0xff]  ;;  %v186_v13 = vld [vmem:[#allocation5 + $0x408] sm:$0xff] }
 0x2b1   :  { %3198 = vmatpush2.msra.mxu1 %v1599_v14  ;;  %3128 = vmatprep.subr.mxu0 %v1435_v17  ;;  %v271_v12 = vld [vmem:[#allocation5 + $0x6b0] sm:$0xff]  ;;  %v346_v14 = vld [vmem:[#allocation5 + $0x908] sm:$0xff] }
 0x2b2   :  { %3199 = vmatprep.subr.mxu1 %v1595_v18  ;;  %3129 = vmatpush2.msra.mxu0 %v1434_v20  ;;  %v106_v17 = vld [vmem:[#allocation5 + $0x188] sm:$0xff]  ;;  %v181_v20 = vld [vmem:[#allocation5 + $0x3e0] sm:$0xff] }
 0x2b3   :  { %3200 = vmatpush2.msra.mxu1 %v1594_v22  ;;  %3130 = vmatprep.subr.mxu0 %v1430_v24  ;;  %v266_v18 = vld [vmem:[#allocation5 + $0x688] sm:$0xff]  ;;  %v341_v22 = vld [vmem:[#allocation5 + $0x8e0] sm:$0xff] }
 0x2b4   :  { %3201 = vmatprep.subr.mxu1 %v1590_v27  ;;  %3131 = vmatpush2.msra.mxu0 %v1429_v30  ;;  %v101_v24 = vld [vmem:[#allocation5 + $0x160] sm:$0xff]  ;;  %v176_v30 = vld [vmem:[#allocation5 + $0x3b8] sm:$0xff] }
 0x2b5   :  { %3202 = vmatpush2.msra.mxu1 %v1589_v31  ;;  %3132 = vmatprep.subr.mxu0 %v1425_v33  ;;  %v261_v27 = vld [vmem:[#allocation5 + $0x660] sm:$0xff]  ;;  %v336_v31 = vld [vmem:[#allocation5 + $0x8b8] sm:$0xff] }
 0x2b6   :  { %3203 = vmatprep.subr.mxu1 %v1585_v34  ;;  %3133 = vmatpush2.msra.mxu0 %v1424_v36  ;;  %v96_v33 = vld [vmem:[#allocation5 + $0x138] sm:$0xff]  ;;  %v171_v36 = vld [vmem:[#allocation5 + $0x390] sm:$0xff] }
 0x2b7   :  { %3204 = vmatpush2.msra.mxu1 %v1584_v37  ;;  %3134 = vmatprep.subr.mxu0 %v1420_v38  ;;  %v256_v34 = vld [vmem:[#allocation5 + $0x638] sm:$0xff]  ;;  %v331_v37 = vld [vmem:[#allocation5 + $0x890] sm:$0xff] }
 0x2b8   :  { %3205 = vmatprep.subr.mxu1 %v1580_v39  ;;  %3135 = vmatpush2.msra.mxu0 %v1419_v40  ;;  %v91_v38 = vld [vmem:[#allocation5 + $0x110] sm:$0xff]  ;;  %v166_v40 = vld [vmem:[#allocation5 + $0x368] sm:$0xff] }
 0x2b9   :  { %3136 = vmatprep.mubr.f32.mxu0 %v4533_v23  ;;  %3206 = vmatpush2.msra.mxu1 %v1579_v42  ;;  %v251_v39 = vld [vmem:[#allocation5 + $0x610] sm:$0xff]  ;;  %v326_v42 = vld [vmem:[#allocation5 + $0x868] sm:$0xff] }
 0x2ba   :  { %3137 = vmatmul.mubr.f32.vlgmr.msra.gmra.mxu0 %v4526_v9  ;;  %3207 = vmatprep.mubr.f32.mxu1 %v4537_v28 }
 0x2bb   :  { %3964 = vmatprep.subr.mxu0 %v216_v44  ;;  %3999 = vmatprep.subr.mxu1 %v376_v45  ;;  %v86_v44 = vld [vmem:[#allocation5 + $0xe8] sm:$0xff] }
 0x2bc   :  { %3208 = vmatmul.mubr.f32.vlgmr.msra.gmra.mxu1 %v4529_v15  ;;  %3965 = vmatpush3.msra.mxu0 %v136_v46  ;;  %v246_v45 = vld [vmem:[#allocation5 + $0x5e8] sm:$0xff]  ;;  %v161_v46 = vld [vmem:[#allocation5 + $0x340] sm:$0xff] }
 0x2bd   :  { %4000 = vmatpush3.msra.mxu1 %v296_v47  ;;  %3966 = vmatprep.subr.mxu0 %v211_v49  ;;  %v321_v47 = vld [vmem:[#allocation5 + $0x840] sm:$0xff] }
 0x2be   :  { %4001 = vmatprep.subr.mxu1 %v371_v50  ;;  %3967 = vmatpush3.msra.mxu0 %v131_v51  ;;  %v81_v49 = vld [vmem:[#allocation5 + $0xc0] sm:$0xff]  ;;  %v156_v51 = vld [vmem:[#allocation5 + $0x318] sm:$0xff] }
 0x2bf   :  { %4002 = vmatpush3.msra.mxu1 %v291_v53  ;;  %3968 = vmatprep.subr.mxu0 %v206_v55  ;;  %v241_v50 = vld [vmem:[#allocation5 + $0x5c0] sm:$0xff]  ;;  %v316_v53 = vld [vmem:[#allocation5 + $0x818] sm:$0xff] }
 0x2c0   :  { %4003 = vmatprep.subr.mxu1 %v366_v56  ;;  %3969 = vmatpush3.msra.mxu0 %v126_v58  ;;  %v76_v55 = vld [vmem:[#allocation5 + $0x98] sm:$0xff]  ;;  %v151_v58 = vld [vmem:[#allocation5 + $0x2f0] sm:$0xff] }
 0x2c1   :  { %4004 = vmatpush3.msra.mxu1 %v286_v59  ;;  %3970 = vmatprep.subr.mxu0 %v201_v60  ;;  %v236_v56 = vld [vmem:[#allocation5 + $0x598] sm:$0xff]  ;;  %v311_v59 = vld [vmem:[#allocation5 + $0x7f0] sm:$0xff] }
 0x2c2   :  { %4005 = vmatprep.subr.mxu1 %v361_v61  ;;  %3971 = vmatpush3.msra.mxu0 %v121_v63  ;;  %v71_v60 = vld [vmem:[#allocation5 + $0x70] sm:$0xff]  ;;  %v146_v63 = vld [vmem:[#allocation5 + $0x2c8] sm:$0xff] }
 0x2c3   :  { %4006 = vmatpush3.msra.mxu1 %v281_v0  ;;  %3972 = vmatprep.subr.mxu0 %v196_v1  ;;  %v231_v61 = vld [vmem:[#allocation5 + $0x570] sm:$0xff]  ;;  %v306_v0 = vld [vmem:[#allocation5 + $0x7c8] sm:$0xff] }
 0x2c4   :  { %4007 = vmatprep.subr.mxu1 %v356_v2  ;;  %3973 = vmatpush3.msra.mxu0 %v116_v4  ;;  %v66_v1 = vld [vmem:[#allocation5 + $0x48] sm:$0xff]  ;;  %v141_v4 = vld [vmem:[#allocation5 + $0x2a0] sm:$0xff] }
 0x2c5   :  { %4008 = vmatpush3.msra.mxu1 %v276_v5  ;;  %3974 = vmatprep.subr.mxu0 %v191_v6  ;;  %v226_v2 = vld [vmem:[#allocation5 + $0x548] sm:$0xff]  ;;  %v301_v5 = vld [vmem:[#allocation5 + $0x7a0] sm:$0xff] }
 0x2c6   :  { %4009 = vmatprep.subr.mxu1 %v351_v7  ;;  %3975 = vmatpush3.msra.mxu0 %v111_v10  ;;  %v61_v6 = vld [vmem:[#allocation5 + $0x20] sm:$0xff]  ;;  %v536_v10 = vld [vmem:[#allocation5 + $0xef8] sm:$0xff] }
 0x2c7   :  { %4010 = vmatpush3.msra.mxu1 %v271_v12  ;;  %3976 = vmatprep.subr.mxu0 %v186_v13  ;;  %v221_v7 = vld [vmem:[#allocation5 + $0x520] sm:$0xff]  ;;  %v696_v12 = vld [vmem:[#allocation5 + $0x13f8] sm:$0xff] }
 0x2c8   :  { %4011 = vmatprep.subr.mxu1 %v346_v14  ;;  %3977 = vmatpush3.msra.mxu0 %v106_v17  ;;  %v456_v13 = vld [vmem:[#allocation5 + $0xc78] sm:$0xff]  ;;  %v531_v17 = vld [vmem:[#allocation5 + $0xed0] sm:$0xff] }
 0x2c9   :  { %4012 = vmatpush3.msra.mxu1 %v266_v18  ;;  %3978 = vmatprep.subr.mxu0 %v181_v20  ;;  %v616_v14 = vld [vmem:[#allocation5 + $0x1178] sm:$0xff]  ;;  %v691_v18 = vld [vmem:[#allocation5 + $0x13d0] sm:$0xff] }
 0x2ca   :  { %4013 = vmatprep.subr.mxu1 %v341_v22  ;;  %3979 = vmatpush3.msra.mxu0 %v101_v24  ;;  %v451_v20 = vld [vmem:[#allocation5 + $0xc50] sm:$0xff]  ;;  %v526_v24 = vld [vmem:[#allocation5 + $0xea8] sm:$0xff] }
 0x2cb   :  { %4014 = vmatpush3.msra.mxu1 %v261_v27  ;;  %3980 = vmatprep.subr.mxu0 %v176_v30  ;;  %v611_v22 = vld [vmem:[#allocation5 + $0x1150] sm:$0xff]  ;;  %v446_v27 = vld [vmem:[#allocation5 + $0xc28] sm:$0xff]  ;;  %v521_v30 = vld [vmem:[#allocation5 + $0xe80] sm:$0xff] }
 0x2cc   :  { %4015 = vmatprep.subr.mxu1 %v336_v31  ;;  %3981 = vmatpush3.msra.mxu0 %v96_v33  ;;  %v441_v31 = vld [vmem:[#allocation5 + $0xc00] sm:$0xff] }
 0x2cd   :  { %4016 = vmatpush3.msra.mxu1 %v256_v34  ;;  %3982 = vmatprep.subr.mxu0 %v171_v36  ;;  %v601_v33 = vld [vmem:[#allocation5 + $0x1100] sm:$0xff]  ;;  %v676_v34 = vld [vmem:[#allocation5 + $0x1358] sm:$0xff] }
 0x2ce   :  { %4017 = vmatprep.subr.mxu1 %v331_v37  ;;  %3983 = vmatpush3.msra.mxu0 %v91_v38  ;;  %v436_v36 = vld [vmem:[#allocation5 + $0xbd8] sm:$0xff]  ;;  %v511_v38 = vld [vmem:[#allocation5 + $0xe30] sm:$0xff] }
 0x2cf   :  { %4018 = vmatpush3.msra.mxu1 %v251_v39  ;;  %3984 = vmatprep.subr.mxu0 %v166_v40  ;;  %v596_v37 = vld [vmem:[#allocation5 + $0x10d8] sm:$0xff]  ;;  %v671_v39 = vld [vmem:[#allocation5 + $0x1330] sm:$0xff] }
 0x2d0   :  { %4019 = vmatprep.subr.mxu1 %v326_v42  ;;  %3985 = vmatpush3.msra.mxu0 %v86_v44  ;;  %v431_v40 = vld [vmem:[#allocation5 + $0xbb0] sm:$0xff]  ;;  %v506_v44 = vld [vmem:[#allocation5 + $0xe08] sm:$0xff] }
 0x2d1   :  { %4020 = vmatpush3.msra.mxu1 %v246_v45  ;;  %3986 = vmatprep.subr.mxu0 %v161_v46  ;;  %v591_v42 = vld [vmem:[#allocation5 + $0x10b0] sm:$0xff]  ;;  %v666_v45 = vld [vmem:[#allocation5 + $0x1308] sm:$0xff] }
 0x2d2   :  { %4021 = vmatprep.subr.mxu1 %v321_v47  ;;  %3987 = vmatpush3.msra.mxu0 %v81_v49  ;;  %v426_v46 = vld [vmem:[#allocation5 + $0xb88] sm:$0xff]  ;;  %v501_v49 = vld [vmem:[#allocation5 + $0xde0] sm:$0xff] }
 0x2d3   :  { %4022 = vmatpush3.msra.mxu1 %v241_v50  ;;  %3988 = vmatprep.subr.mxu0 %v156_v51  ;;  %v586_v47 = vld [vmem:[#allocation5 + $0x1088] sm:$0xff]  ;;  %v661_v50 = vld [vmem:[#allocation5 + $0x12e0] sm:$0xff] }
 0x2d4   :  { %4023 = vmatprep.subr.mxu1 %v316_v53  ;;  %3989 = vmatpush3.msra.mxu0 %v76_v55  ;;  %v421_v51 = vld [vmem:[#allocation5 + $0xb60] sm:$0xff]  ;;  %v496_v55 = vld [vmem:[#allocation5 + $0xdb8] sm:$0xff] }
 0x2d5   :  { %4024 = vmatpush3.msra.mxu1 %v236_v56  ;;  %3990 = vmatprep.subr.mxu0 %v151_v58  ;;  %v581_v53 = vld [vmem:[#allocation5 + $0x1060] sm:$0xff]  ;;  %v656_v56 = vld [vmem:[#allocation5 + $0x12b8] sm:$0xff] }
 0x2d6   :  { %4025 = vmatprep.subr.mxu1 %v311_v59  ;;  %3991 = vmatpush3.msra.mxu0 %v71_v60  ;;  %v416_v58 = vld [vmem:[#allocation5 + $0xb38] sm:$0xff]  ;;  %v491_v60 = vld [vmem:[#allocation5 + $0xd90] sm:$0xff] }
 0x2d7   :  { %4026 = vmatpush3.msra.mxu1 %v231_v61  ;;  %3992 = vmatprep.subr.mxu0 %v146_v63  ;;  %v576_v59 = vld [vmem:[#allocation5 + $0x1038] sm:$0xff]  ;;  %v651_v61 = vld [vmem:[#allocation5 + $0x1290] sm:$0xff] }
 0x2d8   :  { %4027 = vmatprep.subr.mxu1 %v306_v0  ;;  %3993 = vmatpush3.msra.mxu0 %v66_v1  ;;  %v411_v63 = vld [vmem:[#allocation5 + $0xb10] sm:$0xff]  ;;  %v486_v1 = vld [vmem:[#allocation5 + $0xd68] sm:$0xff] }
 0x2d9   :  { %4028 = vmatpush3.msra.mxu1 %v226_v2  ;;  %3994 = vmatprep.subr.mxu0 %v141_v4  ;;  %v571_v0 = vld [vmem:[#allocation5 + $0x1010] sm:$0xff]  ;;  %v646_v2 = vld [vmem:[#allocation5 + $0x1268] sm:$0xff] }
 0x2da   :  { %4029 = vmatprep.subr.mxu1 %v301_v5  ;;  %3995 = vmatpush3.msra.mxu0 %v61_v6  ;;  %v406_v4 = vld [vmem:[#allocation5 + $0xae8] sm:$0xff]  ;;  %v481_v6 = vld [vmem:[#allocation5 + $0xd40] sm:$0xff] }
 0x2db   :  { %3278 = vmatprep.mubr.f32.mxu0 %v4461_v8  ;;  %4030 = vmatpush3.msra.mxu1 %v221_v7  ;;  %v686_v8 = vld [vmem:[#allocation5 + $0x13a8] sm:$0xff]  ;;  %v641_v7 = vld [vmem:[#allocation5 + $0x1240] sm:$0xff] }
 0x2dc   :  { %3279 = vmatmul.mubr.f32.vlgmr.msra.gmra.mxu0 %v4454_v62  ;;  %3348 = vmatprep.mubr.f32.mxu1 %v4465_v11  ;;  %v606_v62 = vld [vmem:[#allocation5 + $0x1128] sm:$0xff]  ;;  %v681_v11 = vld [vmem:[#allocation5 + $0x1380] sm:$0xff] }
 0x2dd   :  { %4034 = vmatprep.subr.mxu0 %v536_v10  ;;  %4069 = vmatprep.subr.mxu1 %v696_v12  ;;  %v566_v5 = vld [vmem:[#allocation5 + $0xfe8] sm:$0xff]  ;;  %v401_v10 = vld [vmem:[#allocation5 + $0xac0] sm:$0xff] }
 0x2de   :  { %3349 = vmatmul.mubr.f32.vlgmr.msra.gmra.mxu1 %v4457_v3  ;;  %4035 = vmatpush3.msra.mxu0 %v456_v13  ;;  %v516_v3 = vld [vmem:[#allocation5 + $0xe58] sm:$0xff]  ;;  %v561_v12 = vld [vmem:[#allocation5 + $0xfc0] sm:$0xff] }
 0x2df   :  { %4070 = vmatpush3.msra.mxu1 %v616_v14  ;;  %4036 = vmatprep.subr.mxu0 %v531_v17  ;;  %v476_v13 = vld [vmem:[#allocation5 + $0xd18] sm:$0xff] }
 0x2e0   :  { %4071 = vmatprep.subr.mxu1 %v691_v18  ;;  %4037 = vmatpush3.msra.mxu0 %v451_v20  ;;  %v636_v14 = vld [vmem:[#allocation5 + $0x1218] sm:$0xff]  ;;  %v471_v20 = vld [vmem:[#allocation5 + $0xcf0] sm:$0xff] }
 0x2e1   :  { %4072 = vmatpush3.msra.mxu1 %v611_v22  ;;  %4038 = vmatprep.subr.mxu0 %v526_v24  ;;  %v396_v17 = vld [vmem:[#allocation5 + $0xa98] sm:$0xff]  ;;  %v631_v22 = vld [vmem:[#allocation5 + $0x11f0] sm:$0xff] }
 0x2e2   :  { %4073 = vmatprep.subr.mxu1 %v686_v8  ;;  %4039 = vmatpush3.msra.mxu0 %v446_v27  ;;  %v556_v18 = vld [vmem:[#allocation5 + $0xf98] sm:$0xff]  ;;  %v391_v24 = vld [vmem:[#allocation5 + $0xa70] sm:$0xff]  ;;  %v466_v27 = vld [vmem:[#allocation5 + $0xcc8] sm:$0xff] }
 0x2e3   :  { %4074 = vmatpush3.msra.mxu1 %v606_v62  ;;  %4040 = vmatprep.subr.mxu0 %v521_v30  ;;  %v551_v8 = vld [vmem:[#allocation5 + $0xf70] sm:$0xff]  ;;  %v626_v62 = vld [vmem:[#allocation5 + $0x11c8] sm:$0xff] }
 0x2e4   :  { %4075 = vmatprep.subr.mxu1 %v681_v11  ;;  %4041 = vmatpush3.msra.mxu0 %v441_v31  ;;  %v386_v30 = vld [vmem:[#allocation5 + $0xa48] sm:$0xff]  ;;  %v461_v31 = vld [vmem:[#allocation5 + $0xca0] sm:$0xff] }
 0x2e5   :  { %4076 = vmatpush3.msra.mxu1 %v601_v33  ;;  %4042 = vmatprep.subr.mxu0 %v516_v3  ;;  %v546_v11 = vld [vmem:[#allocation5 + $0xf48] sm:$0xff]  ;;  %v621_v33 = vld [vmem:[#allocation5 + $0x11a0] sm:$0xff] }
 0x2e6   :  { %4077 = vmatprep.subr.mxu1 %v676_v34  ;;  %4043 = vmatpush3.msra.mxu0 %v436_v36  ;;  %v381_v3 = vld [vmem:[#allocation5 + $0xa20] sm:$0xff]  ;;  %v856_v36 = vld [vmem:[#allocation5 + $0x18f8] sm:$0xff] }
 0x2e7   :  { %4078 = vmatpush3.msra.mxu1 %v596_v37  ;;  %4044 = vmatprep.subr.mxu0 %v511_v38  ;;  %v541_v34 = vld [vmem:[#allocation5 + $0xf20] sm:$0xff]  ;;  %v1016_v37 = vld [vmem:[#allocation5 + $0x1df8] sm:$0xff] }
 0x2e8   :  { %4079 = vmatprep.subr.mxu1 %v671_v39  ;;  %4045 = vmatpush3.msra.mxu0 %v431_v40  ;;  %v776_v38 = vld [vmem:[#allocation5 + $0x1678] sm:$0xff]  ;;  %v851_v40 = vld [vmem:[#allocation5 + $0x18d0] sm:$0xff] }
 0x2e9   :  { %4080 = vmatpush3.msra.mxu1 %v591_v42  ;;  %4046 = vmatprep.subr.mxu0 %v506_v44  ;;  %v936_v39 = vld [vmem:[#allocation5 + $0x1b78] sm:$0xff]  ;;  %v1011_v42 = vld [vmem:[#allocation5 + $0x1dd0] sm:$0xff] }
 0x2ea   :  { %4081 = vmatprep.subr.mxu1 %v666_v45  ;;  %4047 = vmatpush3.msra.mxu0 %v426_v46  ;;  %v771_v44 = vld [vmem:[#allocation5 + $0x1650] sm:$0xff]  ;;  %v846_v46 = vld [vmem:[#allocation5 + $0x18a8] sm:$0xff] }
 0x2eb   :  { %4082 = vmatpush3.msra.mxu1 %v586_v47  ;;  %4048 = vmatprep.subr.mxu0 %v501_v49  ;;  %v931_v45 = vld [vmem:[#allocation5 + $0x1b50] sm:$0xff]  ;;  %v766_v47 = vld [vmem:[#allocation5 + $0x1628] sm:$0xff]  ;;  %v841_v49 = vld [vmem:[#allocation5 + $0x1880] sm:$0xff] }
 0x2ec   :  { %4083 = vmatprep.subr.mxu1 %v661_v50  ;;  %4049 = vmatpush3.msra.mxu0 %v421_v51  ;;  %v761_v50 = vld [vmem:[#allocation5 + $0x1600] sm:$0xff] }
 0x2ed   :  { %4084 = vmatpush3.msra.mxu1 %v581_v53  ;;  %4050 = vmatprep.subr.mxu0 %v496_v55  ;;  %v921_v51 = vld [vmem:[#allocation5 + $0x1b00] sm:$0xff]  ;;  %v996_v53 = vld [vmem:[#allocation5 + $0x1d58] sm:$0xff] }
 0x2ee   :  { %4085 = vmatprep.subr.mxu1 %v656_v56  ;;  %4051 = vmatpush3.msra.mxu0 %v416_v58  ;;  %v756_v55 = vld [vmem:[#allocation5 + $0x15d8] sm:$0xff]  ;;  %v831_v58 = vld [vmem:[#allocation5 + $0x1830] sm:$0xff] }
 0x2ef   :  { %4086 = vmatpush3.msra.mxu1 %v576_v59  ;;  %4052 = vmatprep.subr.mxu0 %v491_v60  ;;  %v916_v56 = vld [vmem:[#allocation5 + $0x1ad8] sm:$0xff]  ;;  %v991_v59 = vld [vmem:[#allocation5 + $0x1d30] sm:$0xff] }
 0x2f0   :  { %4087 = vmatprep.subr.mxu1 %v651_v61  ;;  %4053 = vmatpush3.msra.mxu0 %v411_v63  ;;  %v751_v60 = vld [vmem:[#allocation5 + $0x15b0] sm:$0xff]  ;;  %v826_v63 = vld [vmem:[#allocation5 + $0x1808] sm:$0xff] }
 0x2f1   :  { %4088 = vmatpush3.msra.mxu1 %v571_v0  ;;  %4054 = vmatprep.subr.mxu0 %v486_v1  ;;  %v911_v61 = vld [vmem:[#allocation5 + $0x1ab0] sm:$0xff]  ;;  %v986_v0 = vld [vmem:[#allocation5 + $0x1d08] sm:$0xff] }
 0x2f2   :  { %4089 = vmatprep.subr.mxu1 %v646_v2  ;;  %4055 = vmatpush3.msra.mxu0 %v406_v4  ;;  %v746_v1 = vld [vmem:[#allocation5 + $0x1588] sm:$0xff]  ;;  %v821_v4 = vld [vmem:[#allocation5 + $0x17e0] sm:$0xff] }
 0x2f3   :  { %4090 = vmatpush3.msra.mxu1 %v566_v5  ;;  %4056 = vmatprep.subr.mxu0 %v481_v6  ;;  %v906_v2 = vld [vmem:[#allocation5 + $0x1a88] sm:$0xff]  ;;  %v981_v5 = vld [vmem:[#allocation5 + $0x1ce0] sm:$0xff] }
 0x2f4   :  { %4091 = vmatprep.subr.mxu1 %v641_v7  ;;  %4057 = vmatpush3.msra.mxu0 %v401_v10  ;;  %v741_v6 = vld [vmem:[#allocation5 + $0x1560] sm:$0xff]  ;;  %v816_v10 = vld [vmem:[#allocation5 + $0x17b8] sm:$0xff] }
 0x2f5   :  { %4092 = vmatpush3.msra.mxu1 %v561_v12  ;;  %4058 = vmatprep.subr.mxu0 %v476_v13  ;;  %v901_v7 = vld [vmem:[#allocation5 + $0x1a60] sm:$0xff]  ;;  %v976_v12 = vld [vmem:[#allocation5 + $0x1cb8] sm:$0xff] }
 0x2f6   :  { %4093 = vmatprep.subr.mxu1 %v636_v14  ;;  %4059 = vmatpush3.msra.mxu0 %v396_v17  ;;  %v736_v13 = vld [vmem:[#allocation5 + $0x1538] sm:$0xff]  ;;  %v811_v17 = vld [vmem:[#allocation5 + $0x1790] sm:$0xff] }
 0x2f7   :  { %4094 = vmatpush3.msra.mxu1 %v556_v18  ;;  %4060 = vmatprep.subr.mxu0 %v471_v20  ;;  %v896_v14 = vld [vmem:[#allocation5 + $0x1a38] sm:$0xff]  ;;  %v971_v18 = vld [vmem:[#allocation5 + $0x1c90] sm:$0xff] }
 0x2f8   :  { %4095 = vmatprep.subr.mxu1 %v631_v22  ;;  %4061 = vmatpush3.msra.mxu0 %v391_v24  ;;  %v731_v20 = vld [vmem:[#allocation5 + $0x1510] sm:$0xff]  ;;  %v806_v24 = vld [vmem:[#allocation5 + $0x1768] sm:$0xff] }
 0x2f9   :  { %4096 = vmatpush3.msra.mxu1 %v551_v8  ;;  %4062 = vmatprep.subr.mxu0 %v466_v27  ;;  %v891_v22 = vld [vmem:[#allocation5 + $0x1a10] sm:$0xff]  ;;  %v966_v8 = vld [vmem:[#allocation5 + $0x1c68] sm:$0xff] }
 0x2fa   :  { %4097 = vmatprep.subr.mxu1 %v626_v62  ;;  %4063 = vmatpush3.msra.mxu0 %v386_v30  ;;  %v726_v27 = vld [vmem:[#allocation5 + $0x14e8] sm:$0xff]  ;;  %v801_v30 = vld [vmem:[#allocation5 + $0x1740] sm:$0xff] }
 0x2fb   :  { %4098 = vmatpush3.msra.mxu1 %v546_v11  ;;  %4064 = vmatprep.subr.mxu0 %v461_v31  ;;  %v886_v62 = vld [vmem:[#allocation5 + $0x19e8] sm:$0xff]  ;;  %v961_v11 = vld [vmem:[#allocation5 + $0x1c40] sm:$0xff] }
 0x2fc   :  { %4099 = vmatprep.subr.mxu1 %v621_v33  ;;  %4065 = vmatpush3.msra.mxu0 %v381_v3  ;;  %v721_v31 = vld [vmem:[#allocation5 + $0x14c0] sm:$0xff]  ;;  %v796_v3 = vld [vmem:[#allocation5 + $0x1718] sm:$0xff] }
 0x2fd   :  { %3418 = vmatprep.mubr.f32.mxu0 %v4479_v26  ;;  %4100 = vmatpush3.msra.mxu1 %v541_v34  ;;  %v1006_v26 = vld [vmem:[#allocation5 + $0x1da8] sm:$0xff]  ;;  %v881_v33 = vld [vmem:[#allocation5 + $0x19c0] sm:$0xff]  ;;  %v956_v34 = vld [vmem:[#allocation5 + $0x1c18] sm:$0xff] }
 0x2fe   :  { %3419 = vmatmul.mubr.f32.vlgmr.msra.gmra.mxu0 %v4472_v16  ;;  %3488 = vmatprep.mubr.f32.mxu1 %v4483_v29  ;;  %v926_v16 = vld [vmem:[#allocation5 + $0x1b28] sm:$0xff]  ;;  %v1001_v29 = vld [vmem:[#allocation5 + $0x1d80] sm:$0xff] }
 0x2ff   :  { %4104 = vmatprep.subr.mxu0 %v856_v36  ;;  %4139 = vmatprep.subr.mxu1 %v1016_v37  ;;  %v716_v36 = vld [vmem:[#allocation5 + $0x1498] sm:$0xff] }
 0x300   :  { %3489 = vmatmul.mubr.f32.vlgmr.msra.gmra.mxu1 %v4475_v21  ;;  %4105 = vmatpush3.msra.mxu0 %v776_v38  ;;  %v836_v21 = vld [vmem:[#allocation5 + $0x1858] sm:$0xff]  ;;  %v791_v38 = vld [vmem:[#allocation5 + $0x16f0] sm:$0xff] }
 0x301   :  { %4140 = vmatpush3.msra.mxu1 %v936_v39  ;;  %4106 = vmatprep.subr.mxu0 %v851_v40  ;;  %v876_v37 = vld [vmem:[#allocation5 + $0x1998] sm:$0xff]  ;;  %v951_v39 = vld [vmem:[#allocation5 + $0x1bf0] sm:$0xff] }
 0x302   :  { %4141 = vmatprep.subr.mxu1 %v1011_v42  ;;  %4107 = vmatpush3.msra.mxu0 %v771_v44  ;;  %v711_v40 = vld [vmem:[#allocation5 + $0x1470] sm:$0xff]  ;;  %v786_v44 = vld [vmem:[#allocation5 + $0x16c8] sm:$0xff] }
 0x303   :  { %4142 = vmatpush3.msra.mxu1 %v931_v45  ;;  %4108 = vmatprep.subr.mxu0 %v846_v46  ;;  %v871_v42 = vld [vmem:[#allocation5 + $0x1970] sm:$0xff]  ;;  %v946_v45 = vld [vmem:[#allocation5 + $0x1bc8] sm:$0xff] }
 0x304   :  { %4143 = vmatprep.subr.mxu1 %v1006_v26  ;;  %4109 = vmatpush3.msra.mxu0 %v766_v47  ;;  %v706_v46 = vld [vmem:[#allocation5 + $0x1448] sm:$0xff]  ;;  %v781_v47 = vld [vmem:[#allocation5 + $0x16a0] sm:$0xff] }
 0x305   :  { %4144 = vmatpush3.msra.mxu1 %v926_v16  ;;  %4110 = vmatprep.subr.mxu0 %v841_v49  ;;  %v866_v26 = vld [vmem:[#allocation5 + $0x1948] sm:$0xff]  ;;  %v941_v16 = vld [vmem:[#allocation5 + $0x1ba0] sm:$0xff] }
 0x306   :  { %4145 = vmatprep.subr.mxu1 %v1001_v29  ;;  %4111 = vmatpush3.msra.mxu0 %v761_v50  ;;  %v701_v49 = vld [vmem:[#allocation5 + $0x1420] sm:$0xff]  ;;  %v1176_v50 = vld [vmem:[#allocation5 + $0x22f8] sm:$0xff] }
 0x307   :  { %4146 = vmatpush3.msra.mxu1 %v921_v51  ;;  %4112 = vmatprep.subr.mxu0 %v836_v21  ;;  %v861_v29 = vld [vmem:[#allocation5 + $0x1920] sm:$0xff]  ;;  %v1336_v51 = vld [vmem:[#allocation5 + $0x27f8] sm:$0xff] }
 0x308   :  { %4147 = vmatprep.subr.mxu1 %v996_v53  ;;  %4113 = vmatpush3.msra.mxu0 %v756_v55  ;;  %v1096_v21 = vld [vmem:[#allocation5 + $0x2078] sm:$0xff]  ;;  %v1171_v55 = vld [vmem:[#allocation5 + $0x22d0] sm:$0xff] }
 0x309   :  { %4148 = vmatpush3.msra.mxu1 %v916_v56  ;;  %4114 = vmatprep.subr.mxu0 %v831_v58  ;;  %v1256_v53 = vld [vmem:[#allocation5 + $0x2578] sm:$0xff]  ;;  %v1331_v56 = vld [vmem:[#allocation5 + $0x27d0] sm:$0xff] }
 0x30a   :  { %4149 = vmatprep.subr.mxu1 %v991_v59  ;;  %4115 = vmatpush3.msra.mxu0 %v751_v60  ;;  %v1091_v58 = vld [vmem:[#allocation5 + $0x2050] sm:$0xff]  ;;  %v1166_v60 = vld [vmem:[#allocation5 + $0x22a8] sm:$0xff] }
 0x30b   :  { %4150 = vmatpush3.msra.mxu1 %v911_v61  ;;  %4116 = vmatprep.subr.mxu0 %v826_v63  ;;  %v1251_v59 = vld [vmem:[#allocation5 + $0x2550] sm:$0xff]  ;;  %v1086_v61 = vld [vmem:[#allocation5 + $0x2028] sm:$0xff]  ;;  %v1161_v63 = vld [vmem:[#allocation5 + $0x2280] sm:$0xff] }
 0x30c   :  { %4151 = vmatprep.subr.mxu1 %v986_v0  ;;  %4117 = vmatpush3.msra.mxu0 %v746_v1  ;;  %v1081_v0 = vld [vmem:[#allocation5 + $0x2000] sm:$0xff] }
 0x30d   :  { %4152 = vmatpush3.msra.mxu1 %v906_v2  ;;  %4118 = vmatprep.subr.mxu0 %v821_v4  ;;  %v1241_v1 = vld [vmem:[#allocation5 + $0x2500] sm:$0xff]  ;;  %v1316_v2 = vld [vmem:[#allocation5 + $0x2758] sm:$0xff] }
 0x30e   :  { %4153 = vmatprep.subr.mxu1 %v981_v5  ;;  %4119 = vmatpush3.msra.mxu0 %v741_v6  ;;  %v1076_v4 = vld [vmem:[#allocation5 + $0x1fd8] sm:$0xff]  ;;  %v1151_v6 = vld [vmem:[#allocation5 + $0x2230] sm:$0xff] }
 0x30f   :  { %4154 = vmatpush3.msra.mxu1 %v901_v7  ;;  %4120 = vmatprep.subr.mxu0 %v816_v10  ;;  %v1236_v5 = vld [vmem:[#allocation5 + $0x24d8] sm:$0xff]  ;;  %v1311_v7 = vld [vmem:[#allocation5 + $0x2730] sm:$0xff] }
 0x310   :  { %4155 = vmatprep.subr.mxu1 %v976_v12  ;;  %4121 = vmatpush3.msra.mxu0 %v736_v13  ;;  %v1071_v10 = vld [vmem:[#allocation5 + $0x1fb0] sm:$0xff]  ;;  %v1146_v13 = vld [vmem:[#allocation5 + $0x2208] sm:$0xff] }
 0x311   :  { %4156 = vmatpush3.msra.mxu1 %v896_v14  ;;  %4122 = vmatprep.subr.mxu0 %v811_v17  ;;  %v1231_v12 = vld [vmem:[#allocation5 + $0x24b0] sm:$0xff]  ;;  %v1306_v14 = vld [vmem:[#allocation5 + $0x2708] sm:$0xff] }
 0x312   :  { %4157 = vmatprep.subr.mxu1 %v971_v18  ;;  %4123 = vmatpush3.msra.mxu0 %v731_v20  ;;  %v1066_v17 = vld [vmem:[#allocation5 + $0x1f88] sm:$0xff]  ;;  %v1141_v20 = vld [vmem:[#allocation5 + $0x21e0] sm:$0xff] }
 0x313   :  { %4158 = vmatpush3.msra.mxu1 %v891_v22  ;;  %4124 = vmatprep.subr.mxu0 %v806_v24  ;;  %v1226_v18 = vld [vmem:[#allocation5 + $0x2488] sm:$0xff]  ;;  %v1301_v22 = vld [vmem:[#allocation5 + $0x26e0] sm:$0xff] }
 0x314   :  { %4159 = vmatprep.subr.mxu1 %v966_v8  ;;  %4125 = vmatpush3.msra.mxu0 %v726_v27  ;;  %v1061_v24 = vld [vmem:[#allocation5 + $0x1f60] sm:$0xff]  ;;  %v1136_v27 = vld [vmem:[#allocation5 + $0x21b8] sm:$0xff] }
 0x315   :  { %4160 = vmatpush3.msra.mxu1 %v886_v62  ;;  %4126 = vmatprep.subr.mxu0 %v801_v30  ;;  %v1221_v8 = vld [vmem:[#allocation5 + $0x2460] sm:$0xff]  ;;  %v1296_v62 = vld [vmem:[#allocation5 + $0x26b8] sm:$0xff] }
 0x316   :  { %4161 = vmatprep.subr.mxu1 %v961_v11  ;;  %4127 = vmatpush3.msra.mxu0 %v721_v31  ;;  %v1056_v30 = vld [vmem:[#allocation5 + $0x1f38] sm:$0xff]  ;;  %v1131_v31 = vld [vmem:[#allocation5 + $0x2190] sm:$0xff] }
 0x317   :  { %4162 = vmatpush3.msra.mxu1 %v881_v33  ;;  %4128 = vmatprep.subr.mxu0 %v796_v3  ;;  %v1216_v11 = vld [vmem:[#allocation5 + $0x2438] sm:$0xff]  ;;  %v1291_v33 = vld [vmem:[#allocation5 + $0x2690] sm:$0xff] }
 0x318   :  { %4163 = vmatprep.subr.mxu1 %v956_v34  ;;  %4129 = vmatpush3.msra.mxu0 %v716_v36  ;;  %v1051_v3 = vld [vmem:[#allocation5 + $0x1f10] sm:$0xff]  ;;  %v1126_v36 = vld [vmem:[#allocation5 + $0x2168] sm:$0xff] }
 0x319   :  { %4164 = vmatpush3.msra.mxu1 %v876_v37  ;;  %4130 = vmatprep.subr.mxu0 %v791_v38  ;;  %v1211_v34 = vld [vmem:[#allocation5 + $0x2410] sm:$0xff]  ;;  %v1286_v37 = vld [vmem:[#allocation5 + $0x2668] sm:$0xff] }
 0x31a   :  { %4165 = vmatprep.subr.mxu1 %v951_v39  ;;  %4131 = vmatpush3.msra.mxu0 %v711_v40  ;;  %v1046_v38 = vld [vmem:[#allocation5 + $0x1ee8] sm:$0xff]  ;;  %v1121_v40 = vld [vmem:[#allocation5 + $0x2140] sm:$0xff] }
 0x31b   :  { %4166 = vmatpush3.msra.mxu1 %v871_v42  ;;  %4132 = vmatprep.subr.mxu0 %v786_v44  ;;  %v1206_v39 = vld [vmem:[#allocation5 + $0x23e8] sm:$0xff]  ;;  %v1281_v42 = vld [vmem:[#allocation5 + $0x2640] sm:$0xff] }
 0x31c   :  { %4167 = vmatprep.subr.mxu1 %v946_v45  ;;  %4133 = vmatpush3.msra.mxu0 %v706_v46  ;;  %v1041_v44 = vld [vmem:[#allocation5 + $0x1ec0] sm:$0xff]  ;;  %v1116_v46 = vld [vmem:[#allocation5 + $0x2118] sm:$0xff] }
 0x31d   :  { %4168 = vmatpush3.msra.mxu1 %v866_v26  ;;  %4134 = vmatprep.subr.mxu0 %v781_v47  ;;  %v1201_v45 = vld [vmem:[#allocation5 + $0x23c0] sm:$0xff]  ;;  %v1276_v26 = vld [vmem:[#allocation5 + $0x2618] sm:$0xff] }
 0x31e   :  { %4169 = vmatprep.subr.mxu1 %v941_v16  ;;  %4135 = vmatpush3.msra.mxu0 %v701_v49  ;;  %v1036_v47 = vld [vmem:[#allocation5 + $0x1e98] sm:$0xff]  ;;  %v1111_v49 = vld [vmem:[#allocation5 + $0x20f0] sm:$0xff] }
 0x31f   :  { %3558 = vmatprep.mubr.f32.mxu0 %v4497_v54  ;;  %4170 = vmatpush3.msra.mxu1 %v861_v29  ;;  %v1326_v54 = vld [vmem:[#allocation5 + $0x27a8] sm:$0xff]  ;;  %v1196_v16 = vld [vmem:[#allocation5 + $0x2398] sm:$0xff]  ;;  %v1271_v29 = vld [vmem:[#allocation5 + $0x25f0] sm:$0xff] }
 0x320   :  { %3559 = vmatmul.mubr.f32.vlgmr.msra.gmra.mxu0 %v4490_v43  ;;  %3628 = vmatprep.mubr.f32.mxu1 %v4501_v57  ;;  %v1246_v43 = vld [vmem:[#allocation5 + $0x2528] sm:$0xff]  ;;  %v1321_v57 = vld [vmem:[#allocation5 + $0x2780] sm:$0xff] }
 0x321   :  { %4174 = vmatprep.subr.mxu0 %v1176_v50  ;;  %4209 = vmatprep.subr.mxu1 %v1336_v51  ;;  %v1031_v50 = vld [vmem:[#allocation5 + $0x1e70] sm:$0xff] }
 0x322   :  { %3629 = vmatmul.mubr.f32.vlgmr.msra.gmra.mxu1 %v4493_v48  ;;  %4175 = vmatpush3.msra.mxu0 %v1096_v21  ;;  %v1156_v48 = vld [vmem:[#allocation5 + $0x2258] sm:$0xff]  ;;  %v1191_v51 = vld [vmem:[#allocation5 + $0x2370] sm:$0xff]  ;;  %v1106_v21 = vld [vmem:[#allocation5 + $0x20c8] sm:$0xff] }
 0x323   :  { %4210 = vmatpush3.msra.mxu1 %v1256_v53  ;;  %4176 = vmatprep.subr.mxu0 %v1171_v55  ;;  %v1266_v53 = vld [vmem:[#allocation5 + $0x25c8] sm:$0xff] }
 0x324   :  { %4211 = vmatprep.subr.mxu1 %v1331_v56  ;;  %4177 = vmatpush3.msra.mxu0 %v1091_v58  ;;  %v1026_v55 = vld [vmem:[#allocation5 + $0x1e48] sm:$0xff]  ;;  %v1101_v58 = vld [vmem:[#allocation5 + $0x20a0] sm:$0xff] }
 0x325   :  { %4212 = vmatpush3.msra.mxu1 %v1251_v59  ;;  %4178 = vmatprep.subr.mxu0 %v1166_v60  ;;  %v1186_v56 = vld [vmem:[#allocation5 + $0x2348] sm:$0xff]  ;;  %v1261_v59 = vld [vmem:[#allocation5 + $0x25a0] sm:$0xff] }
 0x326   :  { %4213 = vmatprep.subr.mxu1 %v1326_v54  ;;  %4179 = vmatpush3.msra.mxu0 %v1086_v61  ;;  %v1021_v60 = vld [vmem:[#allocation5 + $0x1e20] sm:$0xff]  ;;  %v4575_v61 = vpop.f32.mrf.mxu0 }
 0x327   :  { %4214 = vmatpush3.msra.mxu1 %v1246_v43  ;;  %4180 = vmatprep.subr.mxu0 %v1161_v63  ;;  %v1181_v54 = vld [vmem:[#allocation5 + $0x2320] sm:$0xff]  ;;  %v1496_v43 = vld [vmem:[#allocation5 + $0x2cf8] sm:$0xff] }
 0x328   :  { %4215 = vmatprep.subr.mxu1 %v1321_v57  ;;  %4181 = vmatpush3.msra.mxu0 %v1081_v0  ;;  %v1656_v63 = vld [vmem:[#allocation5 + $0x31f8] sm:$0xff] }
 0x329   :  { %4216 = vmatpush3.msra.mxu1 %v1241_v1  ;;  %4182 = vmatprep.subr.mxu0 %v1156_v48  ;;  %v1416_v57 = vld [vmem:[#allocation5 + $0x2a78] sm:$0xff]  ;;  %v1491_v1 = vld [vmem:[#allocation5 + $0x2cd0] sm:$0xff] }
 0x32a   :  { %4217 = vmatprep.subr.mxu1 %v1316_v2  ;;  %4183 = vmatpush3.msra.mxu0 %v1076_v4  ;;  %v1576_v0 = vld [vmem:[#allocation5 + $0x2f78] sm:$0xff]  ;;  %v1651_v48 = vld [vmem:[#allocation5 + $0x31d0] sm:$0xff]  ;;  %v4580_v2 = vpop.f32.mrf.mxu1  ;;  %v4582_v4 = vpop.f32.mrf.mxu0 }
 0x32b   :  { %4218 = vmatpush3.msra.mxu1 %v1236_v5  ;;  %4184 = vmatprep.subr.mxu0 %v1151_v6  ;;  %v1411_v5 = vld [vmem:[#allocation5 + $0x2a50] sm:$0xff]  ;;  %v1486_v6 = vld [vmem:[#allocation5 + $0x2ca8] sm:$0xff] }
 0x32c   :  { %4219 = vmatprep.subr.mxu1 %v1311_v7  ;;  %4185 = vmatpush3.msra.mxu0 %v1071_v10  ;;  %v4585_v7 = vpop.f32.mrf.mxu0  ;;  %v1566_v10 = vld [vmem:[#allocation5 + $0x2f28] sm:$0xff] }
 0x32d   :  { %4220 = vmatpush3.msra.mxu1 %v1231_v12  ;;  %4186 = vmatprep.subr.mxu0 %v1146_v13  ;;  %v1481_v12 = vld [vmem:[#allocation5 + $0x2c80] sm:$0xff] }
 0x32e   :  { %4221 = vmatprep.subr.mxu1 %v1306_v14  ;;  %4187 = vmatpush3.msra.mxu0 %v1066_v17  ;;  %v1641_v13 = vld [vmem:[#allocation5 + $0x3180] sm:$0xff]  ;;  %v4587_v14 = vpop.f32.mrf.mxu1 }
 0x32f   :  { %4222 = vmatpush3.msra.mxu1 %v1226_v18  ;;  %4188 = vmatprep.subr.mxu0 %v1141_v20  ;;  %v1561_v17 = vld [vmem:[#allocation5 + $0x2f00] sm:$0xff]  ;;  %v1476_v18 = vld [vmem:[#allocation5 + $0x2c58] sm:$0xff] }
 0x330   :  { %4223 = vmatprep.subr.mxu1 %v1301_v22  ;;  %4189 = vmatpush3.msra.mxu0 %v1061_v24  ;;  %v1636_v20 = vld [vmem:[#allocation5 + $0x3158] sm:$0xff]  ;;  %v4589_v22 = vpop.f32.mrf.mxu1  ;;  %v4591_v24 = vpop.f32.mrf.mxu0 }
 0x331   :  { %4224 = vmatpush3.msra.mxu1 %v1221_v8  ;;  %4190 = vmatprep.subr.mxu0 %v1136_v27  ;;  %v1396_v8 = vld [vmem:[#allocation5 + $0x29d8] sm:$0xff] }
 0x332   :  { %4225 = vmatprep.subr.mxu1 %v1296_v62  ;;  %4191 = vmatpush3.msra.mxu0 %v1056_v30  ;;  %v1556_v27 = vld [vmem:[#allocation5 + $0x2ed8] sm:$0xff]  ;;  %v1471_v62 = vld [vmem:[#allocation5 + $0x2c30] sm:$0xff] }
 0x333   :  { %4226 = vmatpush3.msra.mxu1 %v1216_v11  ;;  %4192 = vmatprep.subr.mxu0 %v1131_v31  ;;  %v1631_v30 = vld [vmem:[#allocation5 + $0x3130] sm:$0xff]  ;;  %v4593_v11 = vpop.f32.mrf.mxu0 }
 0x334   :  { %4227 = vmatprep.subr.mxu1 %v1291_v33  ;;  %4193 = vmatpush3.msra.mxu0 %v1051_v3  ;;  %v1391_v31 = vld [vmem:[#allocation5 + $0x29b0] sm:$0xff]  ;;  %v1466_v3 = vld [vmem:[#allocation5 + $0x2c08] sm:$0xff] }
 0x335   :  { %4228 = vmatpush3.msra.mxu1 %v1211_v34  ;;  %4194 = vmatprep.subr.mxu0 %v1126_v36  ;;  %v1551_v33 = vld [vmem:[#allocation5 + $0x2eb0] sm:$0xff]  ;;  %v1626_v34 = vld [vmem:[#allocation5 + $0x3108] sm:$0xff]  ;;  %v4595_v36 = vpop.f32.mrf.mxu1 }
 0x336   :  { %4229 = vmatprep.subr.mxu1 %v1286_v37  ;;  %4195 = vmatpush3.msra.mxu0 %v1046_v38  ;;  %v1386_v37 = vld [vmem:[#allocation5 + $0x2988] sm:$0xff] }
 0x337   :  { %4230 = vmatpush3.msra.mxu1 %v1206_v39  ;;  %4196 = vmatprep.subr.mxu0 %v1121_v40  ;;  %v1546_v38 = vld [vmem:[#allocation5 + $0x2e88] sm:$0xff]  ;;  %v1461_v39 = vld [vmem:[#allocation5 + $0x2be0] sm:$0xff] }
 0x338   :  { %4231 = vmatprep.subr.mxu1 %v1281_v42  ;;  %4197 = vmatpush3.msra.mxu0 %v1041_v44  ;;  %v1621_v40 = vld [vmem:[#allocation5 + $0x30e0] sm:$0xff]  ;;  %v4597_v42 = vpop.f32.mrf.mxu1  ;;  %v4599_v44 = vpop.f32.mrf.mxu0 }
 0x339   :  { %4232 = vmatpush3.msra.mxu1 %v1201_v45  ;;  %4198 = vmatprep.subr.mxu0 %v1116_v46  ;;  %v1381_v45 = vld [vmem:[#allocation5 + $0x2960] sm:$0xff] }
 0x33a   :  { %4233 = vmatprep.subr.mxu1 %v1276_v26  ;;  %4199 = vmatpush3.msra.mxu0 %v1036_v47  ;;  %v1541_v46 = vld [vmem:[#allocation5 + $0x2e60] sm:$0xff]  ;;  %v1456_v26 = vld [vmem:[#allocation5 + $0x2bb8] sm:$0xff] }
 0x33b   :  { %4234 = vmatpush3.msra.mxu1 %v1196_v16  ;;  %4200 = vmatprep.subr.mxu0 %v1111_v49  ;;  %v1616_v47 = vld [vmem:[#allocation5 + $0x30b8] sm:$0xff]  ;;  %v4601_v16 = vpop.f32.mrf.mxu0 }
 0x33c   :  { %4235 = vmatprep.subr.mxu1 %v1271_v29  ;;  %4201 = vmatpush3.msra.mxu0 %v1031_v50  ;;  %v1376_v49 = vld [vmem:[#allocation5 + $0x2938] sm:$0xff]  ;;  %v1451_v50 = vld [vmem:[#allocation5 + $0x2b90] sm:$0xff] }
 0x33d   :  { %4236 = vmatpush3.msra.mxu1 %v1191_v51  ;;  %4202 = vmatprep.subr.mxu0 %v1106_v21  ;;  %v1536_v29 = vld [vmem:[#allocation5 + $0x2e38] sm:$0xff]  ;;  %v1611_v51 = vld [vmem:[#allocation5 + $0x3090] sm:$0xff]  ;;  %v4603_v21 = vpop.f32.mrf.mxu1 }
 0x33e   :  { %4237 = vmatprep.subr.mxu1 %v1266_v53  ;;  %4203 = vmatpush3.msra.mxu0 %v1026_v55  ;;  %v1371_v53 = vld [vmem:[#allocation5 + $0x2910] sm:$0xff] }
 0x33f   :  { %4238 = vmatpush3.msra.mxu1 %v1186_v56  ;;  %4204 = vmatprep.subr.mxu0 %v1101_v58  ;;  %v1531_v55 = vld [vmem:[#allocation5 + $0x2e10] sm:$0xff]  ;;  %v1446_v56 = vld [vmem:[#allocation5 + $0x2b68] sm:$0xff] }
 0x340   :  { %4239 = vmatprep.subr.mxu1 %v1261_v59  ;;  %4205 = vmatpush3.msra.mxu0 %v1021_v60  ;;  %v1606_v58 = vld [vmem:[#allocation5 + $0x3068] sm:$0xff]  ;;  %v4605_v59 = vpop.f32.mrf.mxu1  ;;  %v4607_v60 = vpop.f32.mrf.mxu0 }
 0x341   :  { %3698 = vmatprep.mubr.f32.mxu0 %v4515_v32  ;;  %4240 = vmatpush3.msra.mxu1 %v1181_v54  ;;  %v1571_v32 = vld [vmem:[#allocation5 + $0x2f50] sm:$0xff]  ;;  %v1366_v54 = vld [vmem:[#allocation5 + $0x28e8] sm:$0xff] }
 0x342   :  { %3699 = vmatmul.mubr.f32.vlgmr.msra.gmra.mxu0 %v4508_v19  ;;  %3768 = vmatprep.mubr.f32.mxu1 %v4519_v35  ;;  %v1646_v19 = vld [vmem:[#allocation5 + $0x31a8] sm:$0xff] }
 0x343   :  { %4244 = vmatprep.subr.mxu0 %v1496_v43  ;;  %4279 = vmatprep.subr.mxu1 %v1656_v63  ;;  %v1406_v35 = vld [vmem:[#allocation5 + $0x2a28] sm:$0xff]  ;;  %v1665_v63 = vsub.s32 1, %v4448_v41 }
 0x344   :  { %3769 = vmatmul.mubr.f32.vlgmr.msra.gmra.mxu1 %v4511_v25  ;;  %4245 = vmatpush3.msra.mxu0 %v1416_v57  ;;  %v1401_v25 = vld [vmem:[#allocation5 + $0x2a00] sm:$0xff]  ;;  %v1526_v43 = vld [vmem:[#allocation5 + $0x2de8] sm:$0xff] }
 0x345   :  { %4280 = vmatpush3.msra.mxu1 %v1576_v0  ;;  %4246 = vmatprep.subr.mxu0 %v1491_v1  ;;  %v1441_v57 = vld [vmem:[#allocation5 + $0x2b40] sm:$0xff] }
 0x346   :  { %4281 = vmatprep.subr.mxu1 %v1651_v48  ;;  %4247 = vmatpush3.msra.mxu0 %v1411_v5  ;;  %v1601_v0 = vld [vmem:[#allocation5 + $0x3040] sm:$0xff]  ;;  %v4612_v48 = vpop.f32.mrf.mxu0 }
 0x347   :  { %4282 = vmatpush3.msra.mxu1 %v1571_v32  ;;  %4248 = vmatprep.subr.mxu0 %v1486_v6  ;;  %v4610_v1 = vld [vmem:[#allocation7] sm:$0x1f]  ;;  %v1661_v6 = vsub.s32 0, %v4448_v41 }
 0x348   :  { %4283 = vmatprep.subr.mxu1 %v1646_v19  ;;  %4249 = vmatpush3.msra.mxu0 %v1406_v35  ;;  %v1361_v5 = vld [vmem:[#allocation5 + $0x28c0] sm:$0xff]  ;;  %v1436_v19 = vld [vmem:[#allocation5 + $0x2b18] sm:$0xff] }
 0x349   :  { %4284 = vmatpush3.msra.mxu1 %v1566_v10  ;;  %4250 = vmatprep.subr.mxu0 %v1481_v12  ;;  %v1521_v32 = vld [vmem:[#allocation5 + $0x2dc0] sm:$0xff]  ;;  %v1596_v35 = vld [vmem:[#allocation5 + $0x3018] sm:$0xff]  ;;  %v4615_v10 = vpop.f32.mrf.mxu1 }
 0x34a   :  { %4285 = vmatprep.subr.mxu1 %v1641_v13  ;;  %4251 = vmatpush3.msra.mxu0 %v1401_v25  ;;  %v1356_v12 = vld [vmem:[#allocation5 + $0x2898] sm:$0xff]  ;;  %v1666_v25 = vrot.slane %v4610_v1, %v1665_v63 }
 0x34b   :  { %4286 = vmatpush3.msra.mxu1 %v1561_v17  ;;  %4252 = vmatprep.subr.mxu0 %v1476_v18  ;;  %v1516_v13 = vld [vmem:[#allocation5 + $0x2d98] sm:$0xff]  ;;  %v1669_v17 = vsub.s32 2, %v4448_v41  ;;  %v1431_v18 = vld [vmem:[#allocation5 + $0x2af0] sm:$0xff] }
 0x34c   :  { %4287 = vmatprep.subr.mxu1 %v1636_v20  ;;  %4253 = vmatpush3.msra.mxu0 %v1396_v8  ;;  %v1591_v20 = vld [vmem:[#allocation5 + $0x2ff0] sm:$0xff]  ;;  %v4619_v8 = vpop.f32.mrf.mxu1 }
 0x34d   :  { %4288 = vmatpush3.msra.mxu1 %v1556_v27  ;;  %4254 = vmatprep.subr.mxu0 %v1471_v62  ;;  %v4621_v27 = vpop.f32.mrf.mxu0  ;;  %v1351_v62 = vld [vmem:[#allocation5 + $0x2870] sm:$0xff] }
 0x34e   :  { %4289 = vmatprep.subr.mxu1 %v1631_v30  ;;  %4255 = vmatpush3.msra.mxu0 %v1391_v31  ;;  %v1511_v30 = vld [vmem:[#allocation5 + $0x2d70] sm:$0xff]  ;;  %v1662_v31 = vrot.slane %v4610_v1, %v1661_v6 }
 0x34f   :  { %4290 = vmatpush3.msra.mxu1 %v1551_v33  ;;  %4256 = vmatprep.subr.mxu0 %v1466_v3  ;;  %v1673_v33 = vsub.s32 3, %v4448_v41  ;;  %v1426_v3 = vld [vmem:[#allocation5 + $0x2ac8] sm:$0xff] }
 0x350   :  { %4291 = vmatprep.subr.mxu1 %v1626_v34  ;;  %4257 = vmatpush3.msra.mxu0 %v1386_v37  ;;  %v1586_v34 = vld [vmem:[#allocation5 + $0x2fc8] sm:$0xff]  ;;  %v2570_v37 = vpop.f32.mrf.mxu0 }
 0x351   :  { %4292 = vmatpush3.msra.mxu1 %v1546_v38  ;;  %4258 = vmatprep.subr.mxu0 %v1461_v39  ;;  %v1346_v38 = vld [vmem:[#allocation5 + $0x2848] sm:$0xff] }
 0x352   :  { %4293 = vmatprep.subr.mxu1 %v1621_v40  ;;  %4259 = vmatpush3.msra.mxu0 %v1381_v45  ;;  %v1506_v39 = vld [vmem:[#allocation5 + $0x2d48] sm:$0xff]  ;;  %v1863_v40 = vadd.f32 %v4582_v4, %v1666_v25  ;;  %v1670_v45 = vrot.slane %v4610_v1, %v1669_v17  ;;  %v2572_v4 = vpop.f32.mrf.mxu0 }
 0x353   :  { %4294 = vmatpush3.msra.mxu1 %v1541_v46  ;;  %4260 = vmatprep.subr.mxu0 %v1456_v26  ;;  %v1421_v46 = vld [vmem:[#allocation5 + $0x2aa0] sm:$0xff] }
 0x354   :  { %4295 = vmatprep.subr.mxu1 %v1616_v47  ;;  %4261 = vmatpush3.msra.mxu0 %v1376_v49  ;;  %v1581_v26 = vld [vmem:[#allocation5 + $0x2fa0] sm:$0xff]  ;;  %v4627_v47 = vpop.f32.mrf.mxu1 }
 0x355   :  { %4296 = vmatpush3.msra.mxu1 %v1536_v29  ;;  %4262 = vmatprep.subr.mxu0 %v1451_v50  ;;  %v1341_v49 = vld [vmem:[#allocation5 + $0x2820] sm:$0xff]  ;;  %v1861_v29 = vadd.f32 %v4575_v61, %v1662_v31  ;;  %v1674_v50 = vrot.slane %v4610_v1, %v1673_v33 }
 0x356   :  { %4297 = vmatprep.subr.mxu1 %v1611_v51  ;;  %4263 = vmatpush3.msra.mxu0 %v1371_v53  ;;  %v1501_v51 = vld [vmem:[#allocation5 + $0x2d20] sm:$0xff]  ;;  %v2641_v53 = vpop.f32.mrf.mxu1 }
 0x357   :  { %4298 = vmatpush3.msra.mxu1 %v1531_v55  ;;  %4264 = vmatprep.subr.mxu0 %v1446_v56  ;;  %v1934_v55 = vadd.f32 %v4587_v14, %v1863_v40  ;;  %v2571_v56 = vadd.f32 %v2570_v37, %v1670_v45  ;;  %v1932_v61 = vadd.f32 %v4580_v2, %v1861_v29 }
 0x358   :  { %4299 = vmatprep.subr.mxu1 %v1606_v58  ;;  %4265 = vmatpush3.msra.mxu0 %v1366_v54  ;;  %v2712_v58 = vpop.f32.mrf.mxu0  ;;  %v2643_v63 = vpop.f32.mrf.mxu1 }
 0x359   :  { %4300 = vmatpush3.msra.mxu1 %v1526_v43  ;;  %4266 = vmatprep.subr.mxu0 %v1441_v57  ;;  %v2005_v54 = vadd.f32 %v4591_v24, %v1934_v55  ;;  %v2573_v43 = vadd.f32 %v2572_v4, %v1674_v50  ;;  %v2003_v14 = vadd.f32 %v4585_v7, %v1932_v61 }
 0x35a   :  { %4301 = vmatprep.subr.mxu1 %v1601_v0  ;;  %4267 = vmatpush3.msra.mxu0 %v1361_v5  ;;  %v2642_v57 = vadd.f32 %v2641_v53, %v2571_v56  ;;  %v2783_v0 = vpop.f32.mrf.mxu1  ;;  %v2714_v5 = vpop.f32.mrf.mxu0 }
 0x35b   :  { %4302 = vmatpush3.msra.mxu1 %v1521_v32  ;;  %4268 = vmatprep.subr.mxu0 %v1436_v19  ;;  %v2644_v32 = vadd.f32 %v2643_v63, %v2573_v43  ;;  %v2074_v2 = vadd.f32 %v4589_v22, %v2003_v14 }
 0x35c   :  { %4303 = vmatprep.subr.mxu1 %v1596_v35  ;;  %4269 = vmatpush3.msra.mxu0 %v1356_v12  ;;  %v2713_v6 = vadd.f32 %v2712_v58, %v2642_v57  ;;  %v2785_v35 = vpop.f32.mrf.mxu1 }
 0x35d   :  { %4304 = vmatpush3.msra.mxu1 %v1516_v13  ;;  %4270 = vmatprep.subr.mxu0 %v1431_v18  ;;  %v2715_v19 = vadd.f32 %v2714_v5, %v2644_v32 }
 0x35e   :  { %4305 = vmatprep.subr.mxu1 %v1591_v20  ;;  %4271 = vmatpush3.msra.mxu0 %v1351_v62  ;;  %v2925_v12 = vpop.f32.mrf.mxu1 }
 0x35f   :  { %4306 = vmatpush3.msra.mxu1 %v1511_v30  ;;  %4272 = vmatprep.subr.mxu0 %v1426_v3  ;;  %v2786_v25 = vadd.f32 %v2785_v35, %v2715_v19 }
 0x360   :  { %4307 = vmatprep.subr.mxu1 %v1586_v34  ;;  %4273 = vmatpush3.msra.mxu0 %v1346_v38  ;;  %v2927_v22 = vpop.f32.mrf.mxu1 }
 0x361   :  { %4308 = vmatpush3.msra.mxu1 %v1506_v39  ;;  %4274 = vmatprep.subr.mxu0 %v1421_v46 }
 0x362   :  { %4309 = vmatprep.subr.mxu1 %v1581_v26  ;;  %4275 = vmatpush3.msra.mxu0 %v1341_v49  ;;  %v3067_v31 = vpop.f32.mrf.mxu1 }
 0x363   :  { %3838 = vmatprep.mubr.f32.mxu0 %v4533_v23  ;;  %4310 = vmatpush3.msra.mxu1 %v1501_v51  ;;  %v2076_v23 = vadd.f32 %v4595_v36, %v2005_v54 }
 0x364   :  { %3908 = vmatprep.mubr.f32.mxu1 %v4537_v28  ;;  %3839 = vmatmul.mubr.f32.vlgmr.msra.gmra.mxu0 %v4526_v9  ;;  %v2854_v28 = vpop.f32.mrf.mxu0  ;;  %v2145_v9 = vadd.f32 %v4593_v11, %v2074_v2  ;;  %v3069_v39 = vpop.f32.mrf.mxu1 }
 0x365   :  { %3909 = vmatmul.mubr.f32.vlgmr.msra.gmra.mxu1 %v4529_v15  ;;  %v2147_v24 = vadd.f32 %v4599_v44, %v2076_v23  ;;  %v2784_v15 = vadd.f32 %v2783_v0, %v2713_v6 }
 0x366   :  { %v2856_v13 = vpop.f32.mrf.mxu0  ;;  %v2216_v36 = vadd.f32 %v4597_v42, %v2145_v9 }
 0x367   :  { %v2218_v7 = vadd.f32 %v4603_v21, %v2147_v24  ;;  %v2855_v17 = vadd.f32 %v2854_v28, %v2784_v15  ;;  %v2857_v62 = vadd.f32 %v2856_v13, %v2786_v25 }
 0x368   :  { %v2996_v18 = vpop.f32.mrf.mxu0  ;;  %v2287_v44 = vadd.f32 %v4601_v16, %v2216_v36 }
 0x369   :  { %v2289_v20 = vadd.f32 %v4607_v60, %v2218_v7  ;;  %v2926_v30 = vadd.f32 %v2925_v12, %v2855_v17  ;;  %v2928_v3 = vadd.f32 %v2927_v22, %v2857_v62 }
 0x36a   :  { %v2998_v33 = vpop.f32.mrf.mxu0  ;;  %v2358_v21 = vadd.f32 %v4605_v59, %v2287_v44 }
 0x36b   :  { %v2360_v11 = vadd.f32 %v4615_v10, %v2289_v20  ;;  %v2997_v34 = vadd.f32 %v2996_v18, %v2926_v30  ;;  %v2999_v38 = vadd.f32 %v2998_v33, %v2928_v3 }
 0x36c   :  { %v2429_v42 = vadd.f32 %v4612_v48, %v2358_v21 }
 0x36d   :  { %v2431_v37 = vadd.f32 %v4621_v27, %v2360_v11  ;;  %v3068_v60 = vadd.f32 %v3067_v31, %v2997_v34  ;;  %v3070_v16 = vadd.f32 %v3069_v39, %v2999_v38 }
 0x36e   :  { %v2500_v10 = vadd.f32 %v4619_v8, %v2429_v42 }
 0x36f   :  { %v2502_v45 = vadd.f32 %v4627_v47, %v2431_v37  ;;  %v1677_v47 = vsub.s32 4, %v4448_v41 }
 0x371   :  { %v3919_v51 = vcombine.low %v2500_v10, %v2502_v45  ;;  %v1678_v8 = vrot.slane %v4610_v1, %v1677_v47 }
 0x373   :  { %v3927_v4 = vrot.slane %v3919_v51, %v4451_v52 }
 0x37a   :  { %v3138_v40 = vpop.f32.mrf.mxu0 }
 0x37b   :  { %v3139_v46 = vadd.f32 %v3138_v40, %v3068_v60 }
 0x37c   :  { %v3209_v26 = vpop.f32.mrf.mxu1  ;;  %v3140_v49 = vpop.f32.mrf.mxu0 }
 0x37d   :  { %v3141_v29 = vadd.f32 %v3140_v49, %v3070_v16  ;;  %v3210_v59 = vadd.f32 %v3209_v26, %v3139_v46 }
 0x37e   :  { %v3211_v50 = vpop.f32.mrf.mxu1 }
 0x37f   :  { %v3212_v53 = vadd.f32 %v3211_v50, %v3141_v29 }
 0x381   :  { %v3920_v27 = vcombine.low %v3210_v59, %v3212_v53 }
 0x383   :  { %v3934_v48 = vrot.slane %v3920_v27, %v4451_v52 }
 0x385   :  { %v3935_v55 = vcombine.low %v3927_v4, %v3934_v48 }
 0x387   :  { %3945 = vst [vmem:[#allocation8] sm:$0xff] %v3935_v55 }
 0x39c   :  { %v3996_v56 = vpop.f32.mrf.mxu0 }
 0x39e   :  { %v4031_v58 = vpop.f32.mrf.mxu1  ;;  %v3997_v61 = vpop.f32.mrf.mxu0 }
 0x39f   :  { %v3998_v43 = vadd.f32 %v3997_v61, %v3996_v56 }
 0x3a0   :  { %v4032_v63 = vpop.f32.mrf.mxu1 }
 0x3a1   :  { %v3281_v0 = vadd.f32 %v3998_v43, %v1678_v8  ;;  %v4033_v5 = vadd.f32 %v4032_v63, %v4031_v58 }
 0x3a3   :  { %v3351_v52 = vadd.f32 %v4033_v5, %v3281_v0 }
 0x3be   :  { %v4066_v54 = vpop.f32.mrf.mxu0 }
 0x3c0   :  { %v4101_v14 = vpop.f32.mrf.mxu1  ;;  %v4067_v57 = vpop.f32.mrf.mxu0 }
 0x3c1   :  { %v4068_v32 = vadd.f32 %v4067_v57, %v4066_v54 }
 0x3c2   :  { %v4102_v6 = vpop.f32.mrf.mxu1 }
 0x3c3   :  { %v3421_v24 = vadd.f32 %v4068_v32, %v3351_v52  ;;  %v4103_v19 = vadd.f32 %v4102_v6, %v4101_v14 }
 0x3c5   :  { %v3491_v15 = vadd.f32 %v4103_v19, %v3421_v24 }
 0x3e0   :  { %v4136_v23 = vpop.f32.mrf.mxu0 }
 0x3e2   :  { %v4171_v28 = vpop.f32.mrf.mxu1  ;;  %v4137_v2 = vpop.f32.mrf.mxu0 }
 0x3e3   :  { %v4138_v35 = vadd.f32 %v4137_v2, %v4136_v23 }
 0x3e4   :  { %v4172_v9 = vpop.f32.mrf.mxu1 }
 0x3e5   :  { %v3561_v13 = vadd.f32 %v4138_v35, %v3491_v15  ;;  %v4173_v7 = vadd.f32 %v4172_v9, %v4171_v28 }
 0x3e7   :  { %v3631_v18 = vadd.f32 %v4173_v7, %v3561_v13 }
 0x402   :  { %v4206_v41 = vpop.f32.mrf.mxu0 }
 0x404   :  { %v4241_v12 = vpop.f32.mrf.mxu1  ;;  %v4207_v1 = vpop.f32.mrf.mxu0 }
 0x405   :  { %v4208_v25 = vadd.f32 %v4207_v1, %v4206_v41 }
 0x406   :  { %v4242_v17 = vpop.f32.mrf.mxu1 }
 0x407   :  { %v3701_v36 = vadd.f32 %v4208_v25, %v3631_v18  ;;  %v4243_v20 = vadd.f32 %v4242_v17, %v4241_v12 }
 0x409   :  { %v3771_v31 = vadd.f32 %v4243_v20, %v3701_v36 }
 0x424   :  { %v4276_v62 = vpop.f32.mrf.mxu0 }
 0x425   :  { %v4311_v22 = vpop.f32.mrf.mxu1 }
 0x426   :  { %v4277_v44 = vpop.f32.mrf.mxu0 }
 0x427   :  { %v4312_v30 = vpop.f32.mrf.mxu1  ;;  %v4278_v33 = vadd.f32 %v4277_v44, %v4276_v62 }
 0x428   :  { %v4313_v3 = vadd.f32 %v4312_v30, %v4311_v22 }
 0x429   :  { %v3841_v11 = vadd.f32 %v4278_v33, %v3771_v31 }
 0x42b   :  { %v3911_v34 = vadd.f32 %v4313_v3, %v3841_v11 }
 0x42d   :  { %3963 = vst.sshfl [vmem:[#allocation8 + $0x8] sm:$0x3 pattern:$0x76325410] %v3911_v34 }
 0x42e   :  { %4397 = shalt.err (!%p4394_p5)
}
 0x42f   :  { %3956 = dma.vmem_to_hbm [thread:$0]  %s3954_s2, 160, %s4663_s3, [#allocation4]  }
 0x430   :  { %4410 = dma.done.wait [#allocation4], 160  }
 0x431   :  { %4411 = vsyncadd [#allocation4], 4294967136 }
 0x432   :  { %3960 = vsyncpa [#allocation3], 1 }
 0x433   :  { %3961 = vsyncpa [#allocation6], 1 }
 0x434   :  { %3962 = vsyncpa [#allocation4], 1 }

</bundles_post_ra>
